<compile_context>
chip_gen: v6e
topology: v6e:2x2x1
jax: 0.10.0
libtpu: 0.0.40
codegen_flags: <defaults>
</compile_context>

<pallas_src>
import functools

import jax
import jax.numpy as jnp
from jax.experimental import pallas as pl
from jax.experimental.pallas import tpu as pltpu


def _dw_taps(x_ref, w_ref, b_ref, *, KH, KW, S, OH, OW):
    """KH*KW-tap depthwise conv (+ bias) on one channels-last block.

    x_ref: (Hp, Wp, TC) zero-padded input block (channels in lanes).
    w_ref: (KH*KW, TC) per-channel taps.
    b_ref: (1, TC)     conv bias.
    Returns (OH, OW, TC) float32.
    """
    acc = None
    for kh in range(KH):
        for kw in range(KW):
            if S == 1:
                patch = x_ref[kh:kh + OH, kw:kw + OW, :]
            else:
                # Strided Ref load: read only the needed output positions
                # (stride never touches the lane dim).
                patch = x_ref[pl.ds(kh, OH, S), pl.ds(kw, OW, S), :]
            k = kh * KW + kw
            term = patch * w_ref[k:k + 1, :]          # (1,TC) lane vector bcast
            acc = term if acc is None else acc + term
    return acc + b_ref[0:1, :]


def _dw_stats_kernel(x_ref, w_ref, b_ref, stat_ref, *, KH, KW, S, OH, OW):
    """Pass 1: conv stays in VMEM; emit packed per-channel sum / sum-of-squares."""
    acc = _dw_taps(x_ref, w_ref, b_ref, KH=KH, KW=KW, S=S, OH=OH, OW=OW)
    s = jnp.sum(acc, axis=(0, 1), keepdims=True)         # (1, 1, TC)
    q = jnp.sum(acc * acc, axis=(0, 1), keepdims=True)   # (1, 1, TC)
    stat_ref[0:1, :] = s[0]
    stat_ref[1:2, :] = q[0]


def _dw_apply_kernel(x_ref, w_ref, b_ref, scale_ref, shift_ref, o_ref, *,
                     KH, KW, S, OH, OW):
    """Pass 2: recompute the cheap conv, fuse the BN affine into the store."""
    acc = _dw_taps(x_ref, w_ref, b_ref, KH=KH, KW=KW, S=S, OH=OH, OW=OW)
    o_ref[...] = (acc * scale_ref[0:1, :] + shift_ref[0:1, :]).astype(o_ref.dtype)


def _pick_channel_tile(C, Hp, Wp, OH, OW, budget_bytes=24 * 1024 * 1024):
    """Largest lane-dense channel tile (multiple of 128 dividing C) within budget."""
    if C % 128 != 0:
        return C      # last block dim must be a multiple of 128 or the full C
    per_c = 4 * (2 * Hp * Wp + 2 * OH * OW + 2 * 16)      # f32, double-buffered blocks
    tc = 128
    for cand in (512, 384, 256):
        if C % cand == 0 and cand * per_c <= budget_bytes:
            tc = cand
            break
    return tc


def depthwise_conv2d_bn(x, w, b, gamma, beta, *, stride, padding, eps=1e-5):
    """Conv2d(groups=C) + BatchNorm2d (training-mode stats). NCHW in / NCHW out."""
    N, C, H, W = x.shape
    Cw, cin_per_group, KH, KW = w.shape
    assert Cw == C and cin_per_group == 1, "depthwise: groups == in == out channels"
    S, P = stride, padding
    Hp, Wp = H + 2 * P, W + 2 * P
    OH, OW = (Hp - KH) // S + 1, (Wp - KW) // S + 1
    assert OH >= 1 and OW >= 1

    # Channels-last + zero padding folded into one wrapper-side relayout.
    xp = jnp.pad(jnp.transpose(x.astype(jnp.float32), (0, 2, 3, 1)),
                 ((0, 0), (P, P), (P, P), (0, 0)))

    # Per-channel taps / bias as lane vectors (C in lanes).
    w_taps = jnp.transpose(w.astype(jnp.float32).reshape(C, KH * KW))  # (KH*KW, C)
    b_row = b.astype(jnp.float32).reshape(1, C)

    TC = _pick_channel_tile(C, Hp, Wp, OH, OW)
    nc = C // TC
    dims = dict(KH=KH, KW=KW, S=S, OH=OH, OW=OW)

    x_spec = pl.BlockSpec((None, Hp, Wp, TC), lambda n, c: (n, 0, 0, c))
    w_spec = pl.BlockSpec((KH * KW, TC), lambda n, c: (0, c))
    row_spec = pl.BlockSpec((1, TC), lambda n, c: (0, c))

    # Per-step VMEM estimate (double-buffered in/out blocks); raise the scoped
    # limit only when the default (16-32 MiB) would be too small, capped below
    # v7x's 64 MiB physical VMEM.
    est = 4 * TC * (2 * Hp * Wp + 2 * OH * OW + 2 * (KH * KW + 4))
    cp_kwargs = dict(dimension_semantics=("parallel", "parallel"))
    if est > 12 * 1024 * 1024:
        cp_kwargs["vmem_limit_bytes"] = int(min(max(2 * est, 32 << 20), 56 << 20))
    cparams = pltpu.CompilerParams(**cp_kwargs)

    # Pass 1: per-image per-channel sums / sums-of-squares of the conv output
    # (the conv tensor itself never touches HBM).
    stats = pl.pallas_call(
        functools.partial(_dw_stats_kernel, **dims),
        out_shape=jax.ShapeDtypeStruct((N, 2, C), jnp.float32),
        grid=(N, nc),
        in_specs=[x_spec, w_spec, row_spec],
        out_specs=pl.BlockSpec((None, 2, TC), lambda n, c: (n, 0, c)),
        compiler_params=cparams,
    )(xp, w_taps, b_row)

    # Tiny C-length BatchNorm (training-mode) statistics glue in plain JAX.
    cnt = N * OH * OW
    mean = jnp.sum(stats[:, 0, :], axis=0) / cnt
    ex2 = jnp.sum(stats[:, 1, :], axis=0) / cnt
    var = jnp.maximum(ex2 - mean * mean, 0.0)   # clamp: single-pass variance can dip < 0
    scale = gamma.astype(jnp.float32) / jnp.sqrt(var + eps)
    shift = beta.astype(jnp.float32) - mean * scale

    # Pass 2: recompute the cheap 9-tap conv and fuse the BN affine into the
    # lane-dense channels-last store.
    out_nhwc = pl.pallas_call(
        functools.partial(_dw_apply_kernel, **dims),
        out_shape=jax.ShapeDtypeStruct((N, OH, OW, C), jnp.float32),
        grid=(N, nc),
        in_specs=[x_spec, w_spec, row_spec, row_spec, row_spec],
        out_specs=pl.BlockSpec((None, OH, OW, TC), lambda n, c: (n, 0, 0, c)),
        compiler_params=cparams,
    )(xp, w_taps, b_row, scale.reshape(1, C), shift.reshape(1, C))

    return jnp.transpose(out_nhwc, (0, 3, 1, 2))


def _reference(x, w, b, gamma, beta, *, stride, padding, eps=1e-5):
    """Pure-JAX reference mirroring PyTorch Conv2d(groups=C) + BatchNorm2d(train)."""
    C = x.shape[1]
    conv = jax.lax.conv_general_dilated(
        x.astype(jnp.float32), w.astype(jnp.float32),
        window_strides=(stride, stride),
        padding=((padding, padding), (padding, padding)),
        dimension_numbers=("NCHW", "OIHW", "NCHW"),
        feature_group_count=C,
        precision=jax.lax.Precision.HIGHEST,
    ) + b[None, :, None, None]
    mean = jnp.mean(conv, axis=(0, 2, 3))
    var = jnp.var(conv, axis=(0, 2, 3))
    return ((conv - mean[None, :, None, None])
            / jnp.sqrt(var + eps)[None, :, None, None]
            * gamma[None, :, None, None] + beta[None, :, None, None])


if __name__ == "__main__":
    # DepthwiseConv2d(in_channels=4, out_channels=4, kernel_size=3, groups=4)
    N, C, H, W = 2, 4, 16, 16
    KH = KW = 3

    key = jax.random.PRNGKey(0)
    kx, kwt, kb, kg, kbe = jax.random.split(key, 5)
    x = jax.random.normal(kx, (N, C, H, W), dtype=jnp.float32)
    w = jax.random.normal(kwt, (C, 1, KH, KW), dtype=jnp.float32) * 0.1   # Conv2d weight
    b = jax.random.normal(kb, (C,), dtype=jnp.float32) * 0.1              # Conv2d bias
    gamma = 1.0 + 0.1 * jax.random.normal(kg, (C,), dtype=jnp.float32)    # BN weight
    beta = 0.1 * jax.random.normal(kbe, (C,), dtype=jnp.float32)          # BN bias

    # Module default (stride=1, padding=1) plus the previously untested
    # padding=0 and stride=2 paths flagged in review.
    for (stride, padding) in ((1, 1), (1, 0), (2, 1)):
        fwd = jax.jit(functools.partial(depthwise_conv2d_bn,
                                        stride=stride, padding=padding))
        out = jax.block_until_ready(fwd(x, w, b, gamma, beta))
        ref = _reference(x, w, b, gamma, beta, stride=stride, padding=padding)
        err = float(jnp.max(jnp.abs(out - ref)))
        if err > 2e-4:
            raise AssertionError(
                f"Pallas mismatch (stride={stride}, padding={padding}): "
                f"max abs err {err}")

    print("KERNEL_OK")
</pallas_src>

<mosaic_0001>
module attributes {stable_mosaic.version = 11 : i64} {
  func.func @_dw_apply_kernel(%arg0: i32, %arg1: i32, %arg2: memref<1x18x18x4xf32, #tpu.memory_space<vmem>>, %arg3: memref<9x4xf32, #tpu.memory_space<vmem>>, %arg4: memref<1x4xf32, #tpu.memory_space<vmem>>, %arg5: memref<1x4xf32, #tpu.memory_space<vmem>>, %arg6: memref<1x4xf32, #tpu.memory_space<vmem>>, %arg7: memref<1x16x16x4xf32, #tpu.memory_space<vmem>>) attributes {dimension_semantics = [#tpu.dimension_semantics<parallel>, #tpu.dimension_semantics<parallel>], iteration_bounds = array<i64: 2, 1>, scalar_prefetch = 0 : i64, scratch_operands = 0 : i64, tpu.core_type = #tpu.core_type<tc>, window_params = [{transform_indices = @transform_0, window_bounds = array<i64: 1, 18, 18, 4>}, {transform_indices = @transform_1, window_bounds = array<i64: 9, 4>}, {transform_indices = @transform_2, window_bounds = array<i64: 1, 4>}, {transform_indices = @transform_3, window_bounds = array<i64: 1, 4>}, {transform_indices = @transform_4, window_bounds = array<i64: 1, 4>}, {transform_indices = @transform_5, window_bounds = array<i64: 1, 16, 16, 4>}]} {
    %c0 = arith.constant 0 : index
    %c0_0 = arith.constant 0 : index
    %c0_1 = arith.constant 0 : index
    %c0_2 = arith.constant 0 : index
    %0 = vector.load %arg2[%c0, %c0_0, %c0_1, %c0_2] : memref<1x18x18x4xf32, #tpu.memory_space<vmem>>, vector<1x16x16x4xf32>
    %1 = vector.shape_cast %0 : vector<1x16x16x4xf32> to vector<16x16x4xf32>
    %c0_3 = arith.constant 0 : index
    %c0_4 = arith.constant 0 : index
    %2 = vector.load %arg3[%c0_3, %c0_4] : memref<9x4xf32, #tpu.memory_space<vmem>>, vector<1x4xf32>
    %3 = vector.shape_cast %2 : vector<1x4xf32> to vector<1x1x4xf32>
    %4 = vector.broadcast %3 : vector<1x1x4xf32> to vector<16x16x4xf32>
    %5 = arith.mulf %1, %4 : vector<16x16x4xf32>
    %c0_5 = arith.constant 0 : index
    %c0_6 = arith.constant 0 : index
    %c1 = arith.constant 1 : index
    %c0_7 = arith.constant 0 : index
    %6 = vector.load %arg2[%c0_5, %c0_6, %c1, %c0_7] : memref<1x18x18x4xf32, #tpu.memory_space<vmem>>, vector<1x16x16x4xf32>
    %7 = vector.shape_cast %6 : vector<1x16x16x4xf32> to vector<16x16x4xf32>
    %c1_8 = arith.constant 1 : index
    %c0_9 = arith.constant 0 : index
    %8 = vector.load %arg3[%c1_8, %c0_9] : memref<9x4xf32, #tpu.memory_space<vmem>>, vector<1x4xf32>
    %9 = vector.shape_cast %8 : vector<1x4xf32> to vector<1x1x4xf32>
    %10 = vector.broadcast %9 : vector<1x1x4xf32> to vector<16x16x4xf32>
    %11 = arith.mulf %7, %10 : vector<16x16x4xf32>
    %12 = arith.addf %5, %11 : vector<16x16x4xf32>
    %c0_10 = arith.constant 0 : index
    %c0_11 = arith.constant 0 : index
    %c2 = arith.constant 2 : index
    %c0_12 = arith.constant 0 : index
    %13 = vector.load %arg2[%c0_10, %c0_11, %c2, %c0_12] : memref<1x18x18x4xf32, #tpu.memory_space<vmem>>, vector<1x16x16x4xf32>
    %14 = vector.shape_cast %13 : vector<1x16x16x4xf32> to vector<16x16x4xf32>
    %c2_13 = arith.constant 2 : index
    %c0_14 = arith.constant 0 : index
    %15 = vector.load %arg3[%c2_13, %c0_14] : memref<9x4xf32, #tpu.memory_space<vmem>>, vector<1x4xf32>
    %16 = vector.shape_cast %15 : vector<1x4xf32> to vector<1x1x4xf32>
    %17 = vector.broadcast %16 : vector<1x1x4xf32> to vector<16x16x4xf32>
    %18 = arith.mulf %14, %17 : vector<16x16x4xf32>
    %19 = arith.addf %12, %18 : vector<16x16x4xf32>
    %c0_15 = arith.constant 0 : index
    %c1_16 = arith.constant 1 : index
    %c0_17 = arith.constant 0 : index
    %c0_18 = arith.constant 0 : index
    %20 = vector.load %arg2[%c0_15, %c1_16, %c0_17, %c0_18] : memref<1x18x18x4xf32, #tpu.memory_space<vmem>>, vector<1x16x16x4xf32>
    %21 = vector.shape_cast %20 : vector<1x16x16x4xf32> to vector<16x16x4xf32>
    %c3 = arith.constant 3 : index
    %c0_19 = arith.constant 0 : index
    %22 = vector.load %arg3[%c3, %c0_19] : memref<9x4xf32, #tpu.memory_space<vmem>>, vector<1x4xf32>
    %23 = vector.shape_cast %22 : vector<1x4xf32> to vector<1x1x4xf32>
    %24 = vector.broadcast %23 : vector<1x1x4xf32> to vector<16x16x4xf32>
    %25 = arith.mulf %21, %24 : vector<16x16x4xf32>
    %26 = arith.addf %19, %25 : vector<16x16x4xf32>
    %c0_20 = arith.constant 0 : index
    %c1_21 = arith.constant 1 : index
    %c1_22 = arith.constant 1 : index
    %c0_23 = arith.constant 0 : index
    %27 = vector.load %arg2[%c0_20, %c1_21, %c1_22, %c0_23] : memref<1x18x18x4xf32, #tpu.memory_space<vmem>>, vector<1x16x16x4xf32>
    %28 = vector.shape_cast %27 : vector<1x16x16x4xf32> to vector<16x16x4xf32>
    %c4 = arith.constant 4 : index
    %c0_24 = arith.constant 0 : index
    %29 = vector.load %arg3[%c4, %c0_24] : memref<9x4xf32, #tpu.memory_space<vmem>>, vector<1x4xf32>
    %30 = vector.shape_cast %29 : vector<1x4xf32> to vector<1x1x4xf32>
    %31 = vector.broadcast %30 : vector<1x1x4xf32> to vector<16x16x4xf32>
    %32 = arith.mulf %28, %31 : vector<16x16x4xf32>
    %33 = arith.addf %26, %32 : vector<16x16x4xf32>
    %c0_25 = arith.constant 0 : index
    %c1_26 = arith.constant 1 : index
    %c2_27 = arith.constant 2 : index
    %c0_28 = arith.constant 0 : index
    %34 = vector.load %arg2[%c0_25, %c1_26, %c2_27, %c0_28] : memref<1x18x18x4xf32, #tpu.memory_space<vmem>>, vector<1x16x16x4xf32>
    %35 = vector.shape_cast %34 : vector<1x16x16x4xf32> to vector<16x16x4xf32>
    %c5 = arith.constant 5 : index
    %c0_29 = arith.constant 0 : index
    %36 = vector.load %arg3[%c5, %c0_29] : memref<9x4xf32, #tpu.memory_space<vmem>>, vector<1x4xf32>
    %37 = vector.shape_cast %36 : vector<1x4xf32> to vector<1x1x4xf32>
    %38 = vector.broadcast %37 : vector<1x1x4xf32> to vector<16x16x4xf32>
    %39 = arith.mulf %35, %38 : vector<16x16x4xf32>
    %40 = arith.addf %33, %39 : vector<16x16x4xf32>
    %c0_30 = arith.constant 0 : index
    %c2_31 = arith.constant 2 : index
    %c0_32 = arith.constant 0 : index
    %c0_33 = arith.constant 0 : index
    %41 = vector.load %arg2[%c0_30, %c2_31, %c0_32, %c0_33] : memref<1x18x18x4xf32, #tpu.memory_space<vmem>>, vector<1x16x16x4xf32>
    %42 = vector.shape_cast %41 : vector<1x16x16x4xf32> to vector<16x16x4xf32>
    %c6 = arith.constant 6 : index
    %c0_34 = arith.constant 0 : index
    %43 = vector.load %arg3[%c6, %c0_34] : memref<9x4xf32, #tpu.memory_space<vmem>>, vector<1x4xf32>
    %44 = vector.shape_cast %43 : vector<1x4xf32> to vector<1x1x4xf32>
    %45 = vector.broadcast %44 : vector<1x1x4xf32> to vector<16x16x4xf32>
    %46 = arith.mulf %42, %45 : vector<16x16x4xf32>
    %47 = arith.addf %40, %46 : vector<16x16x4xf32>
    %c0_35 = arith.constant 0 : index
    %c2_36 = arith.constant 2 : index
    %c1_37 = arith.constant 1 : index
    %c0_38 = arith.constant 0 : index
    %48 = vector.load %arg2[%c0_35, %c2_36, %c1_37, %c0_38] : memref<1x18x18x4xf32, #tpu.memory_space<vmem>>, vector<1x16x16x4xf32>
    %49 = vector.shape_cast %48 : vector<1x16x16x4xf32> to vector<16x16x4xf32>
    %c7 = arith.constant 7 : index
    %c0_39 = arith.constant 0 : index
    %50 = vector.load %arg3[%c7, %c0_39] : memref<9x4xf32, #tpu.memory_space<vmem>>, vector<1x4xf32>
    %51 = vector.shape_cast %50 : vector<1x4xf32> to vector<1x1x4xf32>
    %52 = vector.broadcast %51 : vector<1x1x4xf32> to vector<16x16x4xf32>
    %53 = arith.mulf %49, %52 : vector<16x16x4xf32>
    %54 = arith.addf %47, %53 : vector<16x16x4xf32>
    %c0_40 = arith.constant 0 : index
    %c2_41 = arith.constant 2 : index
    %c2_42 = arith.constant 2 : index
    %c0_43 = arith.constant 0 : index
    %55 = vector.load %arg2[%c0_40, %c2_41, %c2_42, %c0_43] : memref<1x18x18x4xf32, #tpu.memory_space<vmem>>, vector<1x16x16x4xf32>
    %56 = vector.shape_cast %55 : vector<1x16x16x4xf32> to vector<16x16x4xf32>
    %c8 = arith.constant 8 : index
    %c0_44 = arith.constant 0 : index
    %57 = vector.load %arg3[%c8, %c0_44] : memref<9x4xf32, #tpu.memory_space<vmem>>, vector<1x4xf32>
    %58 = vector.shape_cast %57 : vector<1x4xf32> to vector<1x1x4xf32>
    %59 = vector.broadcast %58 : vector<1x1x4xf32> to vector<16x16x4xf32>
    %60 = arith.mulf %56, %59 : vector<16x16x4xf32>
    %61 = arith.addf %54, %60 : vector<16x16x4xf32>
    %c0_45 = arith.constant 0 : index
    %c0_46 = arith.constant 0 : index
    %62 = vector.load %arg4[%c0_45, %c0_46] : memref<1x4xf32, #tpu.memory_space<vmem>>, vector<1x4xf32>
    %63 = vector.shape_cast %62 : vector<1x4xf32> to vector<1x1x4xf32>
    %64 = vector.broadcast %63 : vector<1x1x4xf32> to vector<16x16x4xf32>
    %65 = arith.addf %61, %64 : vector<16x16x4xf32>
    %c0_47 = arith.constant 0 : index
    %c0_48 = arith.constant 0 : index
    %66 = vector.load %arg5[%c0_47, %c0_48] : memref<1x4xf32, #tpu.memory_space<vmem>>, vector<1x4xf32>
    %67 = vector.shape_cast %66 : vector<1x4xf32> to vector<1x1x4xf32>
    %68 = vector.broadcast %67 : vector<1x1x4xf32> to vector<16x16x4xf32>
    %69 = arith.mulf %65, %68 : vector<16x16x4xf32>
    %c0_49 = arith.constant 0 : index
    %c0_50 = arith.constant 0 : index
    %70 = vector.load %arg6[%c0_49, %c0_50] : memref<1x4xf32, #tpu.memory_space<vmem>>, vector<1x4xf32>
    %71 = vector.shape_cast %70 : vector<1x4xf32> to vector<1x1x4xf32>
    %72 = vector.broadcast %71 : vector<1x1x4xf32> to vector<16x16x4xf32>
    %73 = arith.addf %69, %72 : vector<16x16x4xf32>
    %c0_51 = arith.constant 0 : index
    %c0_52 = arith.constant 0 : index
    %c0_53 = arith.constant 0 : index
    %c0_54 = arith.constant 0 : index
    %74 = vector.load %arg7[%c0_51, %c0_52, %c0_53, %c0_54] : memref<1x16x16x4xf32, #tpu.memory_space<vmem>>, vector<1x16x16x4xf32>
    %75 = vector.shape_cast %74 : vector<1x16x16x4xf32> to vector<16x16x4xf32>
    %76 = vector.shape_cast %73 : vector<16x16x4xf32> to vector<1x16x16x4xf32>
    tpu.vector_store %arg7[%c0_51, %c0_52, %c0_53, %c0_54], %76 {strides = array<i32>} : memref<1x16x16x4xf32, #tpu.memory_space<vmem>>, vector<1x16x16x4xf32>,
    return
  }
  func.func @transform_0(%arg0: i32, %arg1: i32) -> (i32, i32, i32, i32) {
    %c0_i32 = arith.constant 0 : i32
    %c0_i32_0 = arith.constant 0 : i32
    %c0_i32_1 = arith.constant 0 : i32
    return %arg0, %c0_i32, %c0_i32_0, %arg1 : i32, i32, i32, i32
  }
  func.func @transform_1(%arg0: i32, %arg1: i32) -> (i32, i32) {
    %c0_i32 = arith.constant 0 : i32
    %c0_i32_0 = arith.constant 0 : i32
    return %c0_i32, %arg1 : i32, i32
  }
  func.func @transform_2(%arg0: i32, %arg1: i32) -> (i32, i32) {
    %c0_i32 = arith.constant 0 : i32
    %c0_i32_0 = arith.constant 0 : i32
    return %c0_i32, %arg1 : i32, i32
  }
  func.func @transform_3(%arg0: i32, %arg1: i32) -> (i32, i32) {
    %c0_i32 = arith.constant 0 : i32
    %c0_i32_0 = arith.constant 0 : i32
    return %c0_i32, %arg1 : i32, i32
  }
  func.func @transform_4(%arg0: i32, %arg1: i32) -> (i32, i32) {
    %c0_i32 = arith.constant 0 : i32
    %c0_i32_0 = arith.constant 0 : i32
    return %c0_i32, %arg1 : i32, i32
  }
  func.func @transform_5(%arg0: i32, %arg1: i32) -> (i32, i32, i32, i32) {
    %c0_i32 = arith.constant 0 : i32
    %c0_i32_0 = arith.constant 0 : i32
    %c0_i32_1 = arith.constant 0 : i32
    return %arg0, %c0_i32, %c0_i32_0, %arg1 : i32, i32, i32, i32
  }
}

module attributes {stable_mosaic.version = 11 : i64} {
  func.func @_dw_stats_kernel(%arg0: i32, %arg1: i32, %arg2: memref<1x18x18x4xf32, #tpu.memory_space<vmem>>, %arg3: memref<9x4xf32, #tpu.memory_space<vmem>>, %arg4: memref<1x4xf32, #tpu.memory_space<vmem>>, %arg5: memref<1x2x4xf32, #tpu.memory_space<vmem>>) attributes {dimension_semantics = [#tpu.dimension_semantics<parallel>, #tpu.dimension_semantics<parallel>], iteration_bounds = array<i64: 2, 1>, scalar_prefetch = 0 : i64, scratch_operands = 0 : i64, tpu.core_type = #tpu.core_type<tc>, window_params = [{transform_indices = @transform_0, window_bounds = array<i64: 1, 18, 18, 4>}, {transform_indices = @transform_1, window_bounds = array<i64: 9, 4>}, {transform_indices = @transform_2, window_bounds = array<i64: 1, 4>}, {transform_indices = @transform_3, window_bounds = array<i64: 1, 2, 4>}]} {
    %c0 = arith.constant 0 : index
    %c0_0 = arith.constant 0 : index
    %c0_1 = arith.constant 0 : index
    %c0_2 = arith.constant 0 : index
    %0 = vector.load %arg2[%c0, %c0_0, %c0_1, %c0_2] : memref<1x18x18x4xf32, #tpu.memory_space<vmem>>, vector<1x16x16x4xf32>
    %1 = vector.shape_cast %0 : vector<1x16x16x4xf32> to vector<16x16x4xf32>
    %c0_3 = arith.constant 0 : index
    %c0_4 = arith.constant 0 : index
    %2 = vector.load %arg3[%c0_3, %c0_4] : memref<9x4xf32, #tpu.memory_space<vmem>>, vector<1x4xf32>
    %3 = vector.shape_cast %2 : vector<1x4xf32> to vector<1x1x4xf32>
    %4 = vector.broadcast %3 : vector<1x1x4xf32> to vector<16x16x4xf32>
    %5 = arith.mulf %1, %4 : vector<16x16x4xf32>
    %c0_5 = arith.constant 0 : index
    %c0_6 = arith.constant 0 : index
    %c1 = arith.constant 1 : index
    %c0_7 = arith.constant 0 : index
    %6 = vector.load %arg2[%c0_5, %c0_6, %c1, %c0_7] : memref<1x18x18x4xf32, #tpu.memory_space<vmem>>, vector<1x16x16x4xf32>
    %7 = vector.shape_cast %6 : vector<1x16x16x4xf32> to vector<16x16x4xf32>
    %c1_8 = arith.constant 1 : index
    %c0_9 = arith.constant 0 : index
    %8 = vector.load %arg3[%c1_8, %c0_9] : memref<9x4xf32, #tpu.memory_space<vmem>>, vector<1x4xf32>
    %9 = vector.shape_cast %8 : vector<1x4xf32> to vector<1x1x4xf32>
    %10 = vector.broadcast %9 : vector<1x1x4xf32> to vector<16x16x4xf32>
    %11 = arith.mulf %7, %10 : vector<16x16x4xf32>
    %12 = arith.addf %5, %11 : vector<16x16x4xf32>
    %c0_10 = arith.constant 0 : index
    %c0_11 = arith.constant 0 : index
    %c2 = arith.constant 2 : index
    %c0_12 = arith.constant 0 : index
    %13 = vector.load %arg2[%c0_10, %c0_11, %c2, %c0_12] : memref<1x18x18x4xf32, #tpu.memory_space<vmem>>, vector<1x16x16x4xf32>
    %14 = vector.shape_cast %13 : vector<1x16x16x4xf32> to vector<16x16x4xf32>
    %c2_13 = arith.constant 2 : index
    %c0_14 = arith.constant 0 : index
    %15 = vector.load %arg3[%c2_13, %c0_14] : memref<9x4xf32, #tpu.memory_space<vmem>>, vector<1x4xf32>
    %16 = vector.shape_cast %15 : vector<1x4xf32> to vector<1x1x4xf32>
    %17 = vector.broadcast %16 : vector<1x1x4xf32> to vector<16x16x4xf32>
    %18 = arith.mulf %14, %17 : vector<16x16x4xf32>
    %19 = arith.addf %12, %18 : vector<16x16x4xf32>
    %c0_15 = arith.constant 0 : index
    %c1_16 = arith.constant 1 : index
    %c0_17 = arith.constant 0 : index
    %c0_18 = arith.constant 0 : index
    %20 = vector.load %arg2[%c0_15, %c1_16, %c0_17, %c0_18] : memref<1x18x18x4xf32, #tpu.memory_space<vmem>>, vector<1x16x16x4xf32>
    %21 = vector.shape_cast %20 : vector<1x16x16x4xf32> to vector<16x16x4xf32>
    %c3 = arith.constant 3 : index
    %c0_19 = arith.constant 0 : index
    %22 = vector.load %arg3[%c3, %c0_19] : memref<9x4xf32, #tpu.memory_space<vmem>>, vector<1x4xf32>
    %23 = vector.shape_cast %22 : vector<1x4xf32> to vector<1x1x4xf32>
    %24 = vector.broadcast %23 : vector<1x1x4xf32> to vector<16x16x4xf32>
    %25 = arith.mulf %21, %24 : vector<16x16x4xf32>
    %26 = arith.addf %19, %25 : vector<16x16x4xf32>
    %c0_20 = arith.constant 0 : index
    %c1_21 = arith.constant 1 : index
    %c1_22 = arith.constant 1 : index
    %c0_23 = arith.constant 0 : index
    %27 = vector.load %arg2[%c0_20, %c1_21, %c1_22, %c0_23] : memref<1x18x18x4xf32, #tpu.memory_space<vmem>>, vector<1x16x16x4xf32>
    %28 = vector.shape_cast %27 : vector<1x16x16x4xf32> to vector<16x16x4xf32>
    %c4 = arith.constant 4 : index
    %c0_24 = arith.constant 0 : index
    %29 = vector.load %arg3[%c4, %c0_24] : memref<9x4xf32, #tpu.memory_space<vmem>>, vector<1x4xf32>
    %30 = vector.shape_cast %29 : vector<1x4xf32> to vector<1x1x4xf32>
    %31 = vector.broadcast %30 : vector<1x1x4xf32> to vector<16x16x4xf32>
    %32 = arith.mulf %28, %31 : vector<16x16x4xf32>
    %33 = arith.addf %26, %32 : vector<16x16x4xf32>
    %c0_25 = arith.constant 0 : index
    %c1_26 = arith.constant 1 : index
    %c2_27 = arith.constant 2 : index
    %c0_28 = arith.constant 0 : index
    %34 = vector.load %arg2[%c0_25, %c1_26, %c2_27, %c0_28] : memref<1x18x18x4xf32, #tpu.memory_space<vmem>>, vector<1x16x16x4xf32>
    %35 = vector.shape_cast %34 : vector<1x16x16x4xf32> to vector<16x16x4xf32>
    %c5 = arith.constant 5 : index
    %c0_29 = arith.constant 0 : index
    %36 = vector.load %arg3[%c5, %c0_29] : memref<9x4xf32, #tpu.memory_space<vmem>>, vector<1x4xf32>
    %37 = vector.shape_cast %36 : vector<1x4xf32> to vector<1x1x4xf32>
    %38 = vector.broadcast %37 : vector<1x1x4xf32> to vector<16x16x4xf32>
    %39 = arith.mulf %35, %38 : vector<16x16x4xf32>
    %40 = arith.addf %33, %39 : vector<16x16x4xf32>
    %c0_30 = arith.constant 0 : index
    %c2_31 = arith.constant 2 : index
    %c0_32 = arith.constant 0 : index
    %c0_33 = arith.constant 0 : index
    %41 = vector.load %arg2[%c0_30, %c2_31, %c0_32, %c0_33] : memref<1x18x18x4xf32, #tpu.memory_space<vmem>>, vector<1x16x16x4xf32>
    %42 = vector.shape_cast %41 : vector<1x16x16x4xf32> to vector<16x16x4xf32>
    %c6 = arith.constant 6 : index
    %c0_34 = arith.constant 0 : index
    %43 = vector.load %arg3[%c6, %c0_34] : memref<9x4xf32, #tpu.memory_space<vmem>>, vector<1x4xf32>
    %44 = vector.shape_cast %43 : vector<1x4xf32> to vector<1x1x4xf32>
    %45 = vector.broadcast %44 : vector<1x1x4xf32> to vector<16x16x4xf32>
    %46 = arith.mulf %42, %45 : vector<16x16x4xf32>
    %47 = arith.addf %40, %46 : vector<16x16x4xf32>
    %c0_35 = arith.constant 0 : index
    %c2_36 = arith.constant 2 : index
    %c1_37 = arith.constant 1 : index
    %c0_38 = arith.constant 0 : index
    %48 = vector.load %arg2[%c0_35, %c2_36, %c1_37, %c0_38] : memref<1x18x18x4xf32, #tpu.memory_space<vmem>>, vector<1x16x16x4xf32>
    %49 = vector.shape_cast %48 : vector<1x16x16x4xf32> to vector<16x16x4xf32>
    %c7 = arith.constant 7 : index
    %c0_39 = arith.constant 0 : index
    %50 = vector.load %arg3[%c7, %c0_39] : memref<9x4xf32, #tpu.memory_space<vmem>>, vector<1x4xf32>
    %51 = vector.shape_cast %50 : vector<1x4xf32> to vector<1x1x4xf32>
    %52 = vector.broadcast %51 : vector<1x1x4xf32> to vector<16x16x4xf32>
    %53 = arith.mulf %49, %52 : vector<16x16x4xf32>
    %54 = arith.addf %47, %53 : vector<16x16x4xf32>
    %c0_40 = arith.constant 0 : index
    %c2_41 = arith.constant 2 : index
    %c2_42 = arith.constant 2 : index
    %c0_43 = arith.constant 0 : index
    %55 = vector.load %arg2[%c0_40, %c2_41, %c2_42, %c0_43] : memref<1x18x18x4xf32, #tpu.memory_space<vmem>>, vector<1x16x16x4xf32>
    %56 = vector.shape_cast %55 : vector<1x16x16x4xf32> to vector<16x16x4xf32>
    %c8 = arith.constant 8 : index
    %c0_44 = arith.constant 0 : index
    %57 = vector.load %arg3[%c8, %c0_44] : memref<9x4xf32, #tpu.memory_space<vmem>>, vector<1x4xf32>
    %58 = vector.shape_cast %57 : vector<1x4xf32> to vector<1x1x4xf32>
    %59 = vector.broadcast %58 : vector<1x1x4xf32> to vector<16x16x4xf32>
    %60 = arith.mulf %56, %59 : vector<16x16x4xf32>
    %61 = arith.addf %54, %60 : vector<16x16x4xf32>
    %c0_45 = arith.constant 0 : index
    %c0_46 = arith.constant 0 : index
    %62 = vector.load %arg4[%c0_45, %c0_46] : memref<1x4xf32, #tpu.memory_space<vmem>>, vector<1x4xf32>
    %63 = vector.shape_cast %62 : vector<1x4xf32> to vector<1x1x4xf32>
    %64 = vector.broadcast %63 : vector<1x1x4xf32> to vector<16x16x4xf32>
    %65 = arith.addf %61, %64 : vector<16x16x4xf32>
    %cst = arith.constant dense<0.000000e+00> : vector<4xf32>
    %66 = vector.multi_reduction <add>, %65, %cst [0, 1] : vector<16x16x4xf32> to vector<4xf32>
    %67 = vector.shape_cast %66 : vector<4xf32> to vector<1x1x4xf32>
    %68 = arith.mulf %65, %65 : vector<16x16x4xf32>
    %cst_47 = arith.constant dense<0.000000e+00> : vector<4xf32>
    %69 = vector.multi_reduction <add>, %68, %cst_47 [0, 1] : vector<16x16x4xf32> to vector<4xf32>
    %70 = vector.shape_cast %69 : vector<4xf32> to vector<1x1x4xf32>
    %71 = vector.shape_cast %67 : vector<1x1x4xf32> to vector<1x4xf32>
    %c0_48 = arith.constant 0 : index
    %c0_49 = arith.constant 0 : index
    %c0_50 = arith.constant 0 : index
    %72 = vector.load %arg5[%c0_48, %c0_49, %c0_50] : memref<1x2x4xf32, #tpu.memory_space<vmem>>, vector<1x1x4xf32>
    %73 = vector.shape_cast %72 : vector<1x1x4xf32> to vector<1x4xf32>
    %74 = vector.shape_cast %71 : vector<1x4xf32> to vector<1x1x4xf32>
    tpu.vector_store %arg5[%c0_48, %c0_49, %c0_50], %74 {strides = array<i32>} : memref<1x2x4xf32, #tpu.memory_space<vmem>>, vector<1x1x4xf32>,
    %75 = vector.shape_cast %70 : vector<1x1x4xf32> to vector<1x4xf32>
    %c0_51 = arith.constant 0 : index
    %c1_52 = arith.constant 1 : index
    %c0_53 = arith.constant 0 : index
    %76 = vector.load %arg5[%c0_51, %c1_52, %c0_53] : memref<1x2x4xf32, #tpu.memory_space<vmem>>, vector<1x1x4xf32>
    %77 = vector.shape_cast %76 : vector<1x1x4xf32> to vector<1x4xf32>
    %78 = vector.shape_cast %75 : vector<1x4xf32> to vector<1x1x4xf32>
    tpu.vector_store %arg5[%c0_51, %c1_52, %c0_53], %78 {strides = array<i32>} : memref<1x2x4xf32, #tpu.memory_space<vmem>>, vector<1x1x4xf32>,
    return
  }
  func.func @transform_0(%arg0: i32, %arg1: i32) -> (i32, i32, i32, i32) {
    %c0_i32 = arith.constant 0 : i32
    %c0_i32_0 = arith.constant 0 : i32
    %c0_i32_1 = arith.constant 0 : i32
    return %arg0, %c0_i32, %c0_i32_0, %arg1 : i32, i32, i32, i32
  }
  func.func @transform_1(%arg0: i32, %arg1: i32) -> (i32, i32) {
    %c0_i32 = arith.constant 0 : i32
    %c0_i32_0 = arith.constant 0 : i32
    return %c0_i32, %arg1 : i32, i32
  }
  func.func @transform_2(%arg0: i32, %arg1: i32) -> (i32, i32) {
    %c0_i32 = arith.constant 0 : i32
    %c0_i32_0 = arith.constant 0 : i32
    return %c0_i32, %arg1 : i32, i32
  }
  func.func @transform_3(%arg0: i32, %arg1: i32) -> (i32, i32, i32) {
    %c0_i32 = arith.constant 0 : i32
    %c0_i32_0 = arith.constant 0 : i32
    return %arg0, %c0_i32, %arg1 : i32, i32, i32
  }
}

</mosaic_0001>

<bundles_post_ra>
// kernel: depthwise_conv2d_bn.3
= control target key start
LH: loop header
LB: loop body
LE: loop exit
PB: predicated region body
PF: predicated region fallthrough
CT: control target
= control target key end

     0   :  { %s1789_s18 = smov 0   ;;  %s1791_s19 = smov 0   ;;  %s2696_s0 = inlined_call_operand.vmem [shape: f32[2,18,18,4], index: 0, kind: input, shape index: {}]   ;;  %s2697_s1 = inlined_call_operand.vmem [shape: f32[9,4], index: 1, kind: input, shape index: {}]   ;;  %s2698_s2 = inlined_call_operand.vmem [shape: f32[1,4], index: 2, kind: input, shape index: {}]   ;;  %s2699_s3 = inlined_call_operand.vmem [shape: f32[1,4], index: 3, kind: input, shape index: {}]   ;;  %s2700_s4 = inlined_call_operand.vmem [shape: f32[1,4], index: 4, kind: input, shape index: {}]   ;;  %s2701_s5 = inlined_call_operand.vmem [shape: f32[2,16,16,4], index: 5, kind: output, shape index: {}]  }
   0x1   :  { %s1793_s20 = smov 0  }
   0x2 LB: > { %s27_s21 = sadd.s32 1, %s1753_s19  ;;  %p1487_p0 = scmp.ge.s32.totalorder %s1757_s20, 1  ;;  %s1757_s20 = sphi %s1793_s20, %s15_s20   ;;  %s1753_s19 = sphi %s1791_s19, %s2703_s19   ;;  %s1749_s18 = sphi %s1789_s18, %s2702_s18  }
   0x3   : > { %p29_p1 = scmp.ge.s32.totalorder %s27_s21, 2  ;;  %p239_p2 = scmp.lt.s32.totalorder %s1757_s20, 3 }
   0x5   : > { %s2705_s21 = smov (%p29_p1, %s27_s21), 0  ;;  %p240_p3 = pnand %p1487_p0, %p239_p2 }
   0x6   : > { %p286_p4 = scmp.lt.s32.totalorder (!%p240_p3), %s1749_s18, 1 }
   0x7   : > { %243 = sbr.rel (%p240_p3) target bundleno = 190 (0xbe), region = 40 }
   0xc   : > { %s2707_s18 = smov (!%p286_p4, %s1749_s18), 1  ;;  %v1813_v0 = vld [vmem:[%s2697_s1] ss:$0 sm:$0xff]  ;;  %v1818_v1 = vld [vmem:[%s2697_s1 + $0x1] ss:$0 sm:$0xff]  ;;  %vm1311_vm0 = vcmask 31744  }
   0xd   : > { %s1698_s22 = smul.u32 432, %s2707_s18  ;;  %v1823_v2 = vld [vmem:[%s2697_s1 + $0x2] ss:$0 sm:$0xff]  ;;  %v1828_v3 = vld [vmem:[%s2697_s1 + $0x3] ss:$0 sm:$0xff]  ;;  %s1697_s27 = sshll.u32 %s2707_s18, 8 }
   0xe   : > { %v1838_v4 = vld [vmem:[%s2697_s1 + $0x4] ss:$0 sm:$0xff]  ;;  %v1843_v5 = vld [vmem:[%s2697_s1 + $0x5] ss:$0 sm:$0xff]  ;;  %v1848_v6 = vld [vmem:[%s2697_s1 + $0x6] ss:$0 sm:$0xff]  ;;  %s1998_s6 = scalar_lea.vmem %s2701_s5, %s1697_s27 }
   0xf   : > { %s1833_s8 = scalar_lea.vmem %s2696_s0, %s1698_s22  ;;  %v1861_v15 = vld [vmem:[%s2697_s1 + $0x7] ss:$0 sm:$0xff]  ;;  %v1872_v20 = vld [vmem:[%s2697_s1 + $0x8] ss:$0 sm:$0xff] }
  0x10   : > { %v315_v7 = vld [vmem:[%s1833_s8] sm:$0xff]  ;;  %v1494_v13 = vld [vmem:[%s1833_s8 + $0x18] sm:$0xff]  ;;  %v1867_v19 = vld [vmem:[%s1833_s8 + $0x30] sm:$0xff] }
  0x11   : > { %v384_v8 = vld [vmem:[%s1833_s8 + $0x1] sm:$0xff]  ;;  %v352_v10 = vmul.f32 %v1813_v0, %v315_v7  ;;  %v1527_v14 = vld [vmem:[%s1833_s8 + $0x19] sm:$0xff]  ;;  %v624_v16 = vmul.f32 %v1828_v3, %v1494_v13  ;;  %v928_v23 = vmul.f32 %v1848_v6, %v1867_v19  ;;  %v385_v25 = vld [vmem:[%s1833_s8 + $0x9] sm:$0xff]  ;;  %v354_v27 = vmul.f32 %v1494_v13, %v1813_v0 }
  0x12   : > { %v485_v9 = vld [vmem:[%s1833_s8 + $0x2] sm:$0xff]  ;;  %v421_v11 = vmul.f32 %v1818_v1, %v384_v8  ;;  %v725_v17 = vmul.f32 %v1838_v4, %v1527_v14  ;;  %v1560_v18 = vld [vmem:[%s1833_s8 + $0x1a] sm:$0xff]  ;;  %v486_v26 = vld [vmem:[%s1833_s8 + $0xa] sm:$0xff]  ;;  %v422_v31 = vmul.f32 %v1818_v1, %v385_v25  ;;  %v423_v34 = vmul.f32 %v1527_v14, %v1818_v1 }
  0x13   : > { %v522_v12 = vmul.f32 %v1823_v2, %v485_v9  ;;  %v826_v22 = vmul.f32 %v1843_v5, %v1560_v18  ;;  %v316_v24 = vld [vmem:[%s1833_s8 + $0x8] sm:$0xff]  ;;  %v1626_v28 = vld [vmem:[%s1833_s8 + $0x31] sm:$0xff]  ;;  %v523_v32 = vmul.f32 %v1823_v2, %v486_v26  ;;  %v1495_v33 = vld [vmem:[%s1833_s8 + $0x20] sm:$0xff]  ;;  %v524_v50 = vmul.f32 %v1560_v18, %v1823_v2 }
  0x14   : > { %v453_v21 = vadd.f32 %v421_v11, %v352_v10  ;;  %v1659_v29 = vld [vmem:[%s1833_s8 + $0x32] sm:$0xff]  ;;  %v353_v30 = vmul.f32 %v1813_v0, %v316_v24  ;;  %v1029_v36 = vmul.f32 %v1861_v15, %v1626_v28  ;;  %v625_v38 = vmul.f32 %v1828_v3, %v1495_v33  ;;  %v1528_v39 = vld [vmem:[%s1833_s8 + $0x21] sm:$0xff]  ;;  %v1921_v62 = vld [vmem:[%s1833_s8 + $0x49] sm:$0xff] }
  0x15   : > { %v1130_v37 = vmul.f32 %v1872_v20, %v1659_v29  ;;  %v1561_v40 = vld [vmem:[%s1833_s8 + $0x22] sm:$0xff]  ;;  %v1894_v41 = vld [vmem:[%s1833_s8 + $0x38] sm:$0xff]  ;;  %v726_v43 = vmul.f32 %v1838_v4, %v1528_v39  ;;  %v455_v49 = vadd.f32 %v423_v34, %v354_v27  ;;  %v626_v51 = vmul.f32 %v1867_v19, %v1828_v3  ;;  %v1924_v63 = vld [vmem:[%s1833_s8 + $0x4a] sm:$0xff] }
  0x16   : > { %v554_v35 = vadd.f32 %v522_v12, %v453_v21  ;;  %v454_v42 = vadd.f32 %v422_v31, %v353_v30  ;;  %v827_v44 = vmul.f32 %v1843_v5, %v1561_v40  ;;  %v929_v45 = vmul.f32 %v1848_v6, %v1894_v41  ;;  %v1901_v47 = vld [vmem:[%s1833_s8 + $0x39] sm:$0xff]  ;;  %v1915_v56 = vld [vmem:[%s1833_s8 + $0x48] sm:$0xff]  ;;  %v1938_v21 = vld [vmem:[%s1833_s8 + $0x50] sm:$0xff] }
  0x17   : > { %v1904_v48 = vld [vmem:[%s1833_s8 + $0x3a] sm:$0xff]  ;;  %v1030_v53 = vmul.f32 %v1861_v15, %v1901_v47  ;;  %v727_v55 = vmul.f32 %v1626_v28, %v1838_v4  ;;  %v556_v58 = vadd.f32 %v524_v50, %v455_v49  ;;  %v828_v59 = vmul.f32 %v1659_v29, %v1843_v5  ;;  %v1945_v31 = vld [vmem:[%s1833_s8 + $0x51] sm:$0xff] }
  0x18   : > { %v656_v46 = vadd.f32 %v624_v16, %v554_v35  ;;  %v555_v52 = vadd.f32 %v523_v32, %v454_v42  ;;  %v1131_v54 = vmul.f32 %v1872_v20, %v1904_v48  ;;  %v930_v60 = vmul.f32 %v1848_v6, %v1915_v56  ;;  %v1970_v49 = vld [vmem:[%s2699_s3] ss:$0 sm:$0xff] }
  0x19   : > { %v355_v7 = vmul.f32 %v1495_v33, %v1813_v0  ;;  %v424_v8 = vmul.f32 %v1528_v39, %v1818_v1  ;;  %v525_v9 = vmul.f32 %v1561_v40, %v1823_v2  ;;  %v658_v11 = vadd.f32 %v626_v51, %v556_v58  ;;  %v1956_v39 = vld [vmem:[%s2698_s2] ss:$0 sm:$0xff] }
  0x1a   : > { %v757_v57 = vadd.f32 %v725_v17, %v656_v46  ;;  %v657_v61 = vadd.f32 %v625_v38, %v555_v52  ;;  %v1031_v12 = vmul.f32 %v1861_v15, %v1921_v62  ;;  %v1132_v13 = vmul.f32 %v1872_v20, %v1924_v63 }
  0x1b   : > { %v456_v16 = vadd.f32 %v424_v8, %v355_v7  ;;  %v627_v17 = vmul.f32 %v1894_v41, %v1828_v3  ;;  %v728_v18 = vmul.f32 %v1901_v47, %v1838_v4  ;;  %v829_v25 = vmul.f32 %v1904_v48, %v1843_v5 }
  0x1c   : > { %v858_v10 = vadd.f32 %v826_v22, %v757_v57  ;;  %v758_v14 = vadd.f32 %v726_v43, %v657_v61  ;;  %v759_v22 = vadd.f32 %v727_v55, %v658_v11  ;;  %v931_v26 = vmul.f32 %v1848_v6, %v1938_v21  ;;  %v1959_v43 = vld [vmem:[%s1833_s8 + $0x52] sm:$0xff]  ;;  %v1975_v55 = vld [vmem:[%s1833_s8 + $0x60] sm:$0xff] }
  0x1d   : > { %v557_v30 = vadd.f32 %v525_v9, %v456_v16  ;;  %v356_v32 = vmul.f32 %v1867_v19, %v1813_v0  ;;  %v425_v33 = vmul.f32 %v1626_v28, %v1818_v1  ;;  %v1032_v35 = vmul.f32 %v1861_v15, %v1945_v31 }
  0x1e   : > { %v960_v24 = vadd.f32 %v928_v23, %v858_v10  ;;  %v859_v27 = vadd.f32 %v827_v44, %v758_v14  ;;  %v860_v23 = vadd.f32 %v828_v59, %v759_v22  ;;  %v526_v38 = vmul.f32 %v1659_v29, %v1823_v2  ;;  %v2002_v14 = vld [vmem:[%s1833_s8 + $0x61] sm:$0xff] }
  0x1f   : > { %v659_v42 = vadd.f32 %v627_v17, %v557_v30  ;;  %v457_v19 = vadd.f32 %v425_v33, %v356_v32  ;;  %v628_v28 = vmul.f32 %v1915_v56, %v1828_v3  ;;  %v1133_v29 = vmul.f32 %v1872_v20, %v1959_v43 }
  0x20   : > { %v1061_v34 = vadd.f32 %v1029_v36, %v960_v24  ;;  %v961_v40 = vadd.f32 %v929_v45, %v859_v27  ;;  %v962_v44 = vadd.f32 %v930_v60, %v860_v23  ;;  %v729_v46 = vmul.f32 %v1921_v62, %v1838_v4 }
  0x21   : > { %v760_v50 = vadd.f32 %v728_v18, %v659_v42  ;;  %v558_v51 = vadd.f32 %v526_v38, %v457_v19  ;;  %v830_v52 = vmul.f32 %v1924_v63, %v1843_v5  ;;  %v932_v58 = vmul.f32 %v1848_v6, %v1975_v55  ;;  %v2021_v42 = vld [vmem:[%s1833_s8 + $0x68] sm:$0xff] }
  0x22   : > { %v1162_v36 = vadd.f32 %v1130_v37, %v1061_v34  ;;  %v1062_v45 = vadd.f32 %v1030_v53, %v961_v40  ;;  %v1063_v57 = vadd.f32 %v1031_v12, %v962_v44  ;;  %v357_v59 = vmul.f32 %v1894_v41, %v1813_v0  ;;  %v1986_v53 = vld [vmem:[%s2700_s4] ss:$0 sm:$0xff] }
  0x23   : > { %v861_v61 = vadd.f32 %v829_v25, %v760_v50  ;;  %v660_v7 = vadd.f32 %v628_v28, %v558_v51  ;;  %v426_v8 = vmul.f32 %v1901_v47, %v1818_v1  ;;  %v527_v11 = vmul.f32 %v1904_v48, %v1823_v2  ;;  %v1631_v50 = vld [vmem:[%s1833_s8 + $0x69] sm:$0xff] }
  0x24   : > { %v1201_v37 = vadd.f32 %v1956_v39, %v1162_v36  ;;  %v1163_v60 = vadd.f32 %v1131_v54, %v1062_v45  ;;  %v1164_v10 = vadd.f32 %v1132_v13, %v1063_v57  ;;  %v629_v41 = vmul.f32 %v1938_v21, %v1828_v3  ;;  %v1664_v51 = vld [vmem:[%s1833_s8 + $0x6a] sm:$0xff] }
  0x25   : > { %v963_v12 = vadd.f32 %v931_v26, %v861_v61  ;;  %v761_v47 = vadd.f32 %v729_v46, %v660_v7  ;;  %v458_v13 = vadd.f32 %v426_v8, %v357_v59  ;;  %v1033_v17 = vmul.f32 %v1861_v15, %v2002_v14  ;;  %v1663_v26 = vld [vmem:[%s1833_s8 + $0x62] sm:$0xff] }
  0x26   : > { %v1240_v9 = vmul.f32 %v1970_v49, %v1201_v37  ;;  %v1202_v54 = vadd.f32 %v1956_v39, %v1163_v60  ;;  %v1203_v48 = vadd.f32 %v1956_v39, %v1164_v10  ;;  %v730_v18 = vmul.f32 %v1945_v31, %v1838_v4 }
  0x27   : > { %v1064_v22 = vadd.f32 %v1032_v35, %v963_v12  ;;  %v862_v25 = vadd.f32 %v830_v52, %v761_v47  ;;  %v559_v27 = vadd.f32 %v527_v11, %v458_v13  ;;  %v1134_v32 = vmul.f32 %v1872_v20, %v1663_v26  ;;  %v1599_v12 = vld [vmem:[%s1833_s8 + $0x78] sm:$0xff] }
  0x28   : > { %v1279_v16 = vadd.f32 %v1986_v53, %v1240_v9  ;;  %v1241_v24 = vmul.f32 %v1970_v49, %v1202_v54  ;;  %v1242_v30 = vmul.f32 %v1970_v49, %v1203_v48  ;;  %v831_v33 = vmul.f32 %v1959_v43, %v1843_v5  ;;  %v1632_v48 = vld [vmem:[%s1833_s8 + $0x79] sm:$0xff] }
  0x29   : > { %v1165_v23 = vadd.f32 %v1133_v29, %v1064_v22  ;;  %v964_v35 = vadd.f32 %v932_v58, %v862_v25  ;;  %v661_v38 = vadd.f32 %v629_v41, %v559_v27  ;;  %v358_v19 = vmul.f32 %v1915_v56, %v1813_v0 }
  0x2a   : > { %1312 = vst.msk [vmem:[%s1998_s6] sm:$0xff] %vm1311_vm0, %v1279_v16  ;;  %v1280_v34 = vadd.f32 %v1986_v53, %v1241_v24  ;;  %v1281_v40 = vadd.f32 %v1986_v53, %v1242_v30  ;;  %v427_v28 = vmul.f32 %v1921_v62, %v1818_v1  ;;  %v528_v36 = vmul.f32 %v1924_v63, %v1823_v2 }
  0x2b   : > { %v1204_v44 = vadd.f32 %v1956_v39, %v1165_v23  ;;  %v1065_v29 = vadd.f32 %v1033_v17, %v964_v35  ;;  %v762_v46 = vadd.f32 %v730_v18, %v661_v38  ;;  %v933_v45 = vmul.f32 %v1848_v6, %v2021_v42 }
  0x2c   : > { %1313 = vst.msk [vmem:[%s1998_s6 + $0x8] sm:$0xff] %vm1311_vm0, %v1280_v34  ;;  %1314 = vst.msk [vmem:[%s1998_s6 + $0x10] sm:$0xff] %vm1311_vm0, %v1281_v40  ;;  %v1034_v56 = vmul.f32 %v1861_v15, %v1631_v50  ;;  %v459_v52 = vadd.f32 %v427_v28, %v358_v19  ;;  %v630_v62 = vmul.f32 %v1975_v55, %v1828_v3  ;;  %v1600_v19 = vld [vmem:[%s1833_s8 + $0x80] sm:$0xff] }
  0x2d   : > { %v1243_v63 = vmul.f32 %v1970_v49, %v1204_v44  ;;  %v1166_v37 = vadd.f32 %v1134_v32, %v1065_v29  ;;  %v863_v57 = vadd.f32 %v831_v33, %v762_v46  ;;  %v1135_v58 = vmul.f32 %v1872_v20, %v1664_v51  ;;  %v1665_v33 = vld [vmem:[%s1833_s8 + $0x7a] sm:$0xff] }
  0x2e   : > { %v560_v59 = vadd.f32 %v528_v36, %v459_v52  ;;  %v731_v60 = vmul.f32 %v2002_v14, %v1838_v4  ;;  %v359_v61 = vmul.f32 %v1938_v21, %v1813_v0  ;;  %v428_v7 = vmul.f32 %v1945_v31, %v1818_v1  ;;  %v1633_v28 = vld [vmem:[%s1833_s8 + $0x81] sm:$0xff] }
  0x2f   : > { %v1282_v8 = vadd.f32 %v1986_v53, %v1243_v63  ;;  %v1205_v9 = vadd.f32 %v1956_v39, %v1166_v37  ;;  %v965_v10 = vadd.f32 %v933_v45, %v863_v57  ;;  %v529_v11 = vmul.f32 %v1959_v43, %v1823_v2  ;;  %v1666_v37 = vld [vmem:[%s1833_s8 + $0x82] sm:$0xff] }
  0x30   : > { %v662_v41 = vadd.f32 %v630_v62, %v560_v59  ;;  %v832_v54 = vmul.f32 %v1663_v26, %v1843_v5  ;;  %v460_v47 = vadd.f32 %v428_v7, %v359_v61  ;;  %v631_v21 = vmul.f32 %v2021_v42, %v1828_v3 }
  0x31   : > { %1315 = vst.msk [vmem:[%s1998_s6 + $0x18] sm:$0xff] %vm1311_vm0, %v1282_v8  ;;  %v1244_v31 = vmul.f32 %v1970_v49, %v1205_v9  ;;  %v1066_v13 = vadd.f32 %v1034_v56, %v965_v10  ;;  %v934_v16 = vmul.f32 %v1848_v6, %v1599_v12  ;;  %v1035_v43 = vmul.f32 %v1861_v15, %v1632_v48  ;;  %v1601_v10 = vld [vmem:[%s1833_s8 + $0x90] sm:$0xff] }
  0x32   : > { %v763_v17 = vadd.f32 %v731_v60, %v662_v41  ;;  %v561_v18 = vadd.f32 %v529_v11, %v460_v47  ;;  %v732_v24 = vmul.f32 %v1631_v50, %v1838_v4  ;;  %v360_v27 = vmul.f32 %v1975_v55, %v1813_v0 }
  0x33   : > { %v1283_v22 = vadd.f32 %v1986_v53, %v1244_v31  ;;  %v1167_v25 = vadd.f32 %v1135_v58, %v1066_v13  ;;  %v429_v30 = vmul.f32 %v2002_v14, %v1818_v1  ;;  %v833_v23 = vmul.f32 %v1664_v51, %v1843_v5  ;;  %v1667_v13 = vld [vmem:[%s1833_s8 + $0x92] sm:$0xff] }
  0x34   : > { %v864_v32 = vadd.f32 %v832_v54, %v763_v17  ;;  %v663_v34 = vadd.f32 %v631_v21, %v561_v18  ;;  %v530_v35 = vmul.f32 %v1663_v26, %v1823_v2  ;;  %v1136_v40 = vmul.f32 %v1872_v20, %v1665_v33 }
  0x35   : > { %1316 = vst.msk [vmem:[%s1998_s6 + $0x20] sm:$0xff] %vm1311_vm0, %v1283_v22  ;;  %v1206_v38 = vadd.f32 %v1956_v39, %v1167_v25  ;;  %v461_v55 = vadd.f32 %v429_v30, %v360_v27  ;;  %v632_v36 = vmul.f32 %v1599_v12, %v1828_v3  ;;  %v935_v29 = vmul.f32 %v1848_v6, %v1600_v19 }
  0x36   : > { %v966_v14 = vadd.f32 %v934_v16, %v864_v32  ;;  %v764_v44 = vadd.f32 %v732_v24, %v663_v34  ;;  %v1036_v46 = vmul.f32 %v1861_v15, %v1633_v28  ;;  %v733_v56 = vmul.f32 %v1632_v48, %v1838_v4  ;;  %v1602_v34 = vld [vmem:[%s1833_s8 + $0x98] sm:$0xff] }
  0x37   : > { %v1245_v26 = vmul.f32 %v1970_v49, %v1206_v38  ;;  %v562_v45 = vadd.f32 %v530_v35, %v461_v55  ;;  %v361_v52 = vmul.f32 %v2021_v42, %v1813_v0  ;;  %v430_v57 = vmul.f32 %v1631_v50, %v1818_v1  ;;  %v2093_v42 = vld [vmem:[%s1833_s8 + $0x91] sm:$0xff] }
  0x38   : > { %v1067_v62 = vadd.f32 %v1035_v43, %v966_v14  ;;  %v865_v63 = vadd.f32 %v833_v23, %v764_v44  ;;  %v531_v58 = vmul.f32 %v1664_v51, %v1823_v2  ;;  %v1137_v60 = vmul.f32 %v1872_v20, %v1666_v37 }
  0x39   : > { %v1284_v59 = vadd.f32 %v1986_v53, %v1245_v26  ;;  %v664_v61 = vadd.f32 %v632_v36, %v562_v45  ;;  %v834_v7 = vmul.f32 %v1665_v33, %v1843_v5  ;;  %v462_v11 = vadd.f32 %v430_v57, %v361_v52 }
  0x3a   : > { %v1168_v8 = vadd.f32 %v1136_v40, %v1067_v62  ;;  %v967_v9 = vadd.f32 %v935_v29, %v865_v63  ;;  %v633_v41 = vmul.f32 %v1600_v19, %v1828_v3  ;;  %v936_v51 = vmul.f32 %v1848_v6, %v1601_v10 }
  0x3b   : > { %1317 = vst.msk [vmem:[%s1998_s6 + $0x28] sm:$0xff] %vm1311_vm0, %v1284_v59  ;;  %v765_v50 = vadd.f32 %v733_v56, %v664_v61  ;;  %v1037_v54 = vmul.f32 %v1861_v15, %v2093_v42  ;;  %v734_v47 = vmul.f32 %v1633_v28, %v1838_v4  ;;  %v563_v16 = vadd.f32 %v531_v58, %v462_v11  ;;  %v1668_v56 = vld [vmem:[%s1833_s8 + $0x9a] sm:$0xff]  ;;  %v1603_v61 = vld [vmem:[%s1833_s8 + $0xa8] sm:$0xff] }
  0x3c   : > { %v1207_v21 = vadd.f32 %v1956_v39, %v1168_v8  ;;  %v1068_v31 = vadd.f32 %v1036_v46, %v967_v9  ;;  %v362_v17 = vmul.f32 %v1599_v12, %v1813_v0  ;;  %v1138_v18 = vmul.f32 %v1872_v20, %v1667_v13  ;;  %v2113_v12 = vld [vmem:[%s1833_s8 + $0x99] sm:$0xff] }
  0x3d   : > { %v866_v43 = vadd.f32 %v834_v7, %v765_v50  ;;  %v431_v24 = vmul.f32 %v1632_v48, %v1818_v1  ;;  %v532_v22 = vmul.f32 %v1665_v33, %v1823_v2  ;;  %v665_v30 = vadd.f32 %v633_v41, %v563_v16  ;;  %v2134_v7 = vld [vmem:[%s1833_s8 + $0xa9] sm:$0xff] }
  0x3e   : > { %v1246_v25 = vmul.f32 %v1970_v49, %v1207_v21  ;;  %v1169_v27 = vadd.f32 %v1137_v60, %v1068_v31  ;;  %v835_v32 = vmul.f32 %v1666_v37, %v1843_v5  ;;  %v937_v35 = vmul.f32 %v1848_v6, %v1602_v34  ;;  %v1669_v16 = vld [vmem:[%s1833_s8 + $0xaa] sm:$0xff] }
  0x3f   : > { %v968_v23 = vadd.f32 %v936_v51, %v866_v43  ;;  %v463_v38 = vadd.f32 %v431_v24, %v362_v17  ;;  %v634_v40 = vmul.f32 %v1601_v10, %v1828_v3  ;;  %v766_v55 = vadd.f32 %v734_v47, %v665_v30 }
  0x40   : > { %v1285_v48 = vadd.f32 %v1986_v53, %v1246_v25  ;;  %v1208_v33 = vadd.f32 %v1956_v39, %v1169_v27  ;;  %v1038_v36 = vmul.f32 %v1861_v15, %v2113_v12  ;;  %v735_v29 = vmul.f32 %v2093_v42, %v1838_v4 }
  0x41   : > { %v1069_v14 = vadd.f32 %v1037_v54, %v968_v23  ;;  %v564_v44 = vadd.f32 %v532_v22, %v463_v38  ;;  %v363_v46 = vmul.f32 %v1600_v19, %v1813_v0  ;;  %v867_v45 = vadd.f32 %v835_v32, %v766_v55  ;;  %v2156_v32 = vld [vmem:[%s1833_s8 + $0xb1] sm:$0xff] }
  0x42   : > { %1318 = vst.msk [vmem:[%s1998_s6 + $0x30] sm:$0xff] %vm1311_vm0, %v1285_v48  ;;  %v1247_v26 = vmul.f32 %v1970_v49, %v1208_v33  ;;  %v432_v52 = vmul.f32 %v1633_v28, %v1818_v1  ;;  %v533_v62 = vmul.f32 %v1666_v37, %v1823_v2  ;;  %v1139_v57 = vmul.f32 %v1872_v20, %v1668_v56 }
  0x43   : > { %v1170_v63 = vadd.f32 %v1138_v18, %v1069_v14  ;;  %v666_v58 = vadd.f32 %v634_v40, %v564_v44  ;;  %v836_v59 = vmul.f32 %v1667_v13, %v1843_v5  ;;  %v969_v19 = vadd.f32 %v937_v35, %v867_v45 }
  0x44   : > { %v1286_v60 = vadd.f32 %v1986_v53, %v1247_v26  ;;  %v464_v8 = vadd.f32 %v432_v52, %v363_v46  ;;  %v635_v9 = vmul.f32 %v1602_v34, %v1828_v3  ;;  %v938_v37 = vmul.f32 %v1848_v6, %v1603_v61 }
  0x45   : > { %v1209_v28 = vadd.f32 %v1956_v39, %v1170_v63  ;;  %v767_v11 = vadd.f32 %v735_v29, %v666_v58  ;;  %v1039_v41 = vmul.f32 %v1861_v15, %v2134_v7  ;;  %v1070_v50 = vadd.f32 %v1038_v36, %v969_v19  ;;  %v1670_v29 = vld [vmem:[%s1833_s8 + $0xb2] sm:$0xff] }
  0x46   : > { %1319 = vst.msk [vmem:[%s1998_s6 + $0x38] sm:$0xff] %vm1311_vm0, %v1286_v60  ;;  %v565_v51 = vadd.f32 %v533_v62, %v464_v8  ;;  %v736_v54 = vmul.f32 %v2113_v12, %v1838_v4  ;;  %v364_v47 = vmul.f32 %v1601_v10, %v1813_v0  ;;  %v433_v17 = vmul.f32 %v2093_v42, %v1818_v1  ;;  %v1604_v10 = vld [vmem:[%s1833_s8 + $0xb0] sm:$0xff] }
  0x47   : > { %v1248_v21 = vmul.f32 %v1970_v49, %v1209_v28  ;;  %v868_v31 = vadd.f32 %v836_v59, %v767_v11  ;;  %v534_v43 = vmul.f32 %v1667_v13, %v1823_v2  ;;  %v1171_v18 = vadd.f32 %v1139_v57, %v1070_v50  ;;  %v2178_v59 = vld [vmem:[%s1833_s8 + $0xc1] sm:$0xff] }
  0x48   : > { %v1140_v24 = vmul.f32 %v1872_v20, %v1669_v16  ;;  %v667_v22 = vadd.f32 %v635_v9, %v565_v51  ;;  %v837_v25 = vmul.f32 %v1668_v56, %v1843_v5  ;;  %v465_v23 = vadd.f32 %v433_v17, %v364_v47 }
  0x49   : > { %v1287_v27 = vadd.f32 %v1986_v53, %v1248_v21  ;;  %v970_v30 = vadd.f32 %v938_v37, %v868_v31  ;;  %v636_v35 = vmul.f32 %v1603_v61, %v1828_v3  ;;  %v1210_v42 = vadd.f32 %v1956_v39, %v1171_v18 }
  0x4a   : > { %v768_v38 = vadd.f32 %v736_v54, %v667_v22  ;;  %v939_v13 = vmul.f32 %v1848_v6, %v1604_v10  ;;  %v1040_v40 = vmul.f32 %v1861_v15, %v2156_v32  ;;  %v566_v33 = vadd.f32 %v534_v43, %v465_v23  ;;  %v1671_v54 = vld [vmem:[%s1833_s8 + $0xc2] sm:$0xff] }
  0x4b   : > { %1320 = vst.msk [vmem:[%s1998_s6 + $0x40] sm:$0xff] %vm1311_vm0, %v1287_v27  ;;  %v1071_v48 = vadd.f32 %v1039_v41, %v970_v30  ;;  %v737_v55 = vmul.f32 %v2134_v7, %v1838_v4  ;;  %v365_v36 = vmul.f32 %v1602_v34, %v1813_v0  ;;  %v1249_v14 = vmul.f32 %v1970_v49, %v1210_v42  ;;  %v1605_v34 = vld [vmem:[%s1833_s8 + $0xc0] sm:$0xff] }
  0x4c   : > { %v869_v44 = vadd.f32 %v837_v25, %v768_v38  ;;  %v434_v46 = vmul.f32 %v2113_v12, %v1818_v1  ;;  %v535_v26 = vmul.f32 %v1668_v56, %v1823_v2  ;;  %v1141_v52 = vmul.f32 %v1872_v20, %v1670_v29  ;;  %v2200_v25 = vld [vmem:[%s1833_s8 + $0xc9] sm:$0xff] }
  0x4d   : > { %v1172_v45 = vadd.f32 %v1140_v24, %v1071_v48  ;;  %v668_v62 = vadd.f32 %v636_v35, %v566_v33  ;;  %v838_v63 = vmul.f32 %v1669_v16, %v1843_v5  ;;  %v1288_v57 = vadd.f32 %v1986_v53, %v1249_v14 }
  0x4e   : > { %v971_v58 = vadd.f32 %v939_v13, %v869_v44  ;;  %v466_v60 = vadd.f32 %v434_v46, %v365_v36  ;;  %v637_v19 = vmul.f32 %v1604_v10, %v1828_v3  ;;  %v940_v56 = vmul.f32 %v1848_v6, %v1605_v34 }
  0x4f   : > { %v1211_v12 = vadd.f32 %v1956_v39, %v1172_v45  ;;  %v769_v8 = vadd.f32 %v737_v55, %v668_v62  ;;  %v1041_v9 = vmul.f32 %v1861_v15, %v2178_v59  ;;  %1321 = vst.msk [vmem:[%s1998_s6 + $0x48] sm:$0xff] %vm1311_vm0, %v1288_v57  ;;  %v738_v37 = vmul.f32 %v2156_v32, %v1838_v4  ;;  %v1672_v55 = vld [vmem:[%s1833_s8 + $0xca] sm:$0xff] }
  0x50   : > { %v1072_v28 = vadd.f32 %v1040_v40, %v971_v58  ;;  %v567_v11 = vadd.f32 %v535_v26, %v466_v60  ;;  %v366_v41 = vmul.f32 %v1603_v61, %v1813_v0  ;;  %v435_v47 = vmul.f32 %v2134_v7, %v1818_v1  ;;  %v1606_v61 = vld [vmem:[%s1833_s8 + $0xc8] sm:$0xff] }
  0x51   : > { %v1250_v50 = vmul.f32 %v1970_v49, %v1211_v12  ;;  %v870_v51 = vadd.f32 %v838_v63, %v769_v8  ;;  %v536_v21 = vmul.f32 %v1669_v16, %v1823_v2  ;;  %v1142_v17 = vmul.f32 %v1872_v20, %v1671_v54  ;;  %v2222_v63 = vld [vmem:[%s1833_s8 + $0xd9] sm:$0xff] }
  0x52   : > { %v1173_v31 = vadd.f32 %v1141_v52, %v1072_v28  ;;  %v669_v43 = vadd.f32 %v637_v19, %v567_v11  ;;  %v839_v18 = vmul.f32 %v1670_v29, %v1843_v5  ;;  %v467_v27 = vadd.f32 %v435_v47, %v366_v41 }
  0x53   : > { %v1289_v24 = vadd.f32 %v1986_v53, %v1250_v50  ;;  %v972_v22 = vadd.f32 %v940_v56, %v870_v51  ;;  %v638_v30 = vmul.f32 %v1605_v34, %v1828_v3  ;;  %v941_v16 = vmul.f32 %v1848_v6, %v1606_v61 }
  0x54   : > { %v1212_v7 = vadd.f32 %v1956_v39, %v1173_v31  ;;  %v770_v23 = vadd.f32 %v738_v37, %v669_v43  ;;  %v1042_v35 = vmul.f32 %v1861_v15, %v2200_v25  ;;  %v568_v38 = vadd.f32 %v536_v21, %v467_v27  ;;  %v1673_v37 = vld [vmem:[%s1833_s8 + $0xda] sm:$0xff] }
  0x55   : > { %1322 = vst.msk [vmem:[%s1998_s6 + $0x50] sm:$0xff] %vm1311_vm0, %v1289_v24  ;;  %v1073_v42 = vadd.f32 %v1041_v9, %v972_v22  ;;  %v739_v13 = vmul.f32 %v2178_v59, %v1838_v4  ;;  %v367_v40 = vmul.f32 %v1604_v10, %v1813_v0  ;;  %v436_v36 = vmul.f32 %v2156_v32, %v1818_v1  ;;  %v1607_v10 = vld [vmem:[%s1833_s8 + $0xd8] sm:$0xff] }
  0x56   : > { %v1251_v48 = vmul.f32 %v1970_v49, %v1212_v7  ;;  %v871_v33 = vadd.f32 %v839_v18, %v770_v23  ;;  %v537_v14 = vmul.f32 %v1670_v29, %v1823_v2  ;;  %v1143_v46 = vmul.f32 %v1872_v20, %v1672_v55  ;;  %v2244_v18 = vld [vmem:[%s1833_s8 + $0xe1] sm:$0xff] }
  0x57   : > { %v1174_v44 = vadd.f32 %v1142_v17, %v1073_v42  ;;  %v670_v26 = vadd.f32 %v638_v30, %v568_v38  ;;  %v840_v45 = vmul.f32 %v1671_v54, %v1843_v5  ;;  %v468_v57 = vadd.f32 %v436_v36, %v367_v40 }
  0x58   : > { %v1290_v52 = vadd.f32 %v1986_v53, %v1251_v48  ;;  %v973_v62 = vadd.f32 %v941_v16, %v871_v33  ;;  %v639_v58 = vmul.f32 %v1606_v61, %v1828_v3  ;;  %v942_v29 = vmul.f32 %v1848_v6, %v1607_v10 }
  0x59   : > { %v1213_v32 = vadd.f32 %v1956_v39, %v1174_v44  ;;  %v771_v60 = vadd.f32 %v739_v13, %v670_v26  ;;  %v1043_v19 = vmul.f32 %v1861_v15, %v2222_v63  ;;  %v569_v8 = vadd.f32 %v537_v14, %v468_v57  ;;  %v1674_v13 = vld [vmem:[%s1833_s8 + $0xe2] sm:$0xff] }
  0x5a   : > { %1323 = vst.msk [vmem:[%s1998_s6 + $0x58] sm:$0xff] %vm1311_vm0, %v1290_v52  ;;  %v1074_v12 = vadd.f32 %v1042_v35, %v973_v62  ;;  %v740_v56 = vmul.f32 %v2200_v25, %v1838_v4  ;;  %v368_v9 = vmul.f32 %v1605_v34, %v1813_v0  ;;  %v437_v41 = vmul.f32 %v2178_v59, %v1818_v1  ;;  %v1608_v34 = vld [vmem:[%s1833_s8 + $0xe0] sm:$0xff] }
  0x5b   : > { %v1252_v28 = vmul.f32 %v1970_v49, %v1213_v32  ;;  %v872_v11 = vadd.f32 %v840_v45, %v771_v60  ;;  %v538_v50 = vmul.f32 %v1671_v54, %v1823_v2  ;;  %v1144_v47 = vmul.f32 %v1872_v20, %v1673_v37  ;;  %v2266_v45 = vld [vmem:[%s1833_s8 + $0xf1] sm:$0xff] }
  0x5c   : > { %v1175_v51 = vadd.f32 %v1143_v46, %v1074_v12  ;;  %v671_v21 = vadd.f32 %v639_v58, %v569_v8  ;;  %v841_v31 = vmul.f32 %v1672_v55, %v1843_v5  ;;  %v469_v24 = vadd.f32 %v437_v41, %v368_v9 }
  0x5d   : > { %v1291_v17 = vadd.f32 %v1986_v53, %v1252_v28  ;;  %v974_v43 = vadd.f32 %v942_v29, %v872_v11  ;;  %v640_v22 = vmul.f32 %v1607_v10, %v1828_v3  ;;  %v943_v54 = vmul.f32 %v1848_v6, %v1608_v34 }
  0x5e   : > { %v1214_v59 = vadd.f32 %v1956_v39, %v1175_v51  ;;  %v772_v27 = vadd.f32 %v740_v56, %v671_v21  ;;  %v1044_v30 = vmul.f32 %v1861_v15, %v2244_v18  ;;  %v570_v23 = vadd.f32 %v538_v50, %v469_v24  ;;  %v1675_v56 = vld [vmem:[%s1833_s8 + $0xf2] sm:$0xff] }
  0x5f   : > { %1324 = vst.msk [vmem:[%s1998_s6 + $0x60] sm:$0xff] %vm1311_vm0, %v1291_v17  ;;  %v1075_v7 = vadd.f32 %v1043_v19, %v974_v43  ;;  %v741_v16 = vmul.f32 %v2222_v63, %v1838_v4  ;;  %v369_v35 = vmul.f32 %v1606_v61, %v1813_v0  ;;  %v438_v40 = vmul.f32 %v2200_v25, %v1818_v1  ;;  %v1609_v61 = vld [vmem:[%s1833_s8 + $0xf0] sm:$0xff] }
  0x60   : > { %v1253_v42 = vmul.f32 %v1970_v49, %v1214_v59  ;;  %v873_v38 = vadd.f32 %v841_v31, %v772_v27  ;;  %v539_v48 = vmul.f32 %v1672_v55, %v1823_v2  ;;  %v1145_v36 = vmul.f32 %v1872_v20, %v1674_v13  ;;  %v2288_v31 = vld [vmem:[%s1833_s8 + $0xf9] sm:$0xff] }
  0x61   : > { %v1176_v33 = vadd.f32 %v1144_v47, %v1075_v7  ;;  %v672_v14 = vadd.f32 %v640_v22, %v570_v23  ;;  %v842_v44 = vmul.f32 %v1673_v37, %v1843_v5  ;;  %v470_v52 = vadd.f32 %v438_v40, %v369_v35 }
  0x62   : > { %v1292_v46 = vadd.f32 %v1986_v53, %v1253_v42  ;;  %v975_v26 = vadd.f32 %v943_v54, %v873_v38  ;;  %v641_v62 = vmul.f32 %v1608_v34, %v1828_v3  ;;  %v944_v55 = vmul.f32 %v1848_v6, %v1609_v61 }
  0x63   : > { %v1215_v25 = vadd.f32 %v1956_v39, %v1176_v33  ;;  %v773_v57 = vadd.f32 %v741_v16, %v672_v14  ;;  %v1045_v58 = vmul.f32 %v1861_v15, %v2266_v45  ;;  %v571_v60 = vadd.f32 %v539_v48, %v470_v52  ;;  %v1676_v16 = vld [vmem:[%s1833_s8 + $0xfa] sm:$0xff] }
  0x64   : > { %1325 = vst.msk [vmem:[%s1998_s6 + $0x68] sm:$0xff] %vm1311_vm0, %v1292_v46  ;;  %v1076_v32 = vadd.f32 %v1044_v30, %v975_v26  ;;  %v742_v29 = vmul.f32 %v2244_v18, %v1838_v4  ;;  %v370_v19 = vmul.f32 %v1607_v10, %v1813_v0  ;;  %v439_v9 = vmul.f32 %v2222_v63, %v1818_v1  ;;  %v1610_v10 = vld [vmem:[%s1833_s8 + $0xf8] sm:$0xff] }
  0x65   : > { %v1254_v12 = vmul.f32 %v1970_v49, %v1215_v25  ;;  %v874_v8 = vadd.f32 %v842_v44, %v773_v57  ;;  %v540_v28 = vmul.f32 %v1673_v37, %v1823_v2  ;;  %v1146_v41 = vmul.f32 %v1872_v20, %v1675_v56  ;;  %v2310_v44 = vld [vmem:[%s1833_s8 + $0x109] sm:$0xff] }
  0x66   : > { %v1177_v11 = vadd.f32 %v1145_v36, %v1076_v32  ;;  %v673_v50 = vadd.f32 %v641_v62, %v571_v60  ;;  %v843_v51 = vmul.f32 %v1674_v13, %v1843_v5  ;;  %v471_v17 = vadd.f32 %v439_v9, %v370_v19 }
  0x67   : > { %v1293_v47 = vadd.f32 %v1986_v53, %v1254_v12  ;;  %v976_v21 = vadd.f32 %v944_v55, %v874_v8  ;;  %v642_v43 = vmul.f32 %v1609_v61, %v1828_v3  ;;  %v945_v37 = vmul.f32 %v1848_v6, %v1610_v10 }
  0x68   : > { %v1216_v63 = vadd.f32 %v1956_v39, %v1177_v11  ;;  %v774_v24 = vadd.f32 %v742_v29, %v673_v50  ;;  %v1046_v22 = vmul.f32 %v1861_v15, %v2288_v31  ;;  %v572_v27 = vadd.f32 %v540_v28, %v471_v17  ;;  %v1677_v29 = vld [vmem:[%s1833_s8 + $0x10a] sm:$0xff] }
  0x69   : > { %1326 = vst.msk [vmem:[%s1998_s6 + $0x70] sm:$0xff] %vm1311_vm0, %v1293_v47  ;;  %v1077_v59 = vadd.f32 %v1045_v58, %v976_v21  ;;  %v743_v54 = vmul.f32 %v2266_v45, %v1838_v4  ;;  %v371_v30 = vmul.f32 %v1608_v34, %v1813_v0  ;;  %v440_v35 = vmul.f32 %v2244_v18, %v1818_v1  ;;  %v1611_v34 = vld [vmem:[%s1833_s8 + $0x108] sm:$0xff] }
  0x6a   : > { %v1255_v7 = vmul.f32 %v1970_v49, %v1216_v63  ;;  %v875_v23 = vadd.f32 %v843_v51, %v774_v24  ;;  %v541_v42 = vmul.f32 %v1674_v13, %v1823_v2  ;;  %v1147_v40 = vmul.f32 %v1872_v20, %v1676_v16  ;;  %v2334_v51 = vld [vmem:[%s1833_s8 + $0x111] sm:$0xff] }
  0x6b   : > { %v1178_v38 = vadd.f32 %v1146_v41, %v1077_v59  ;;  %v674_v48 = vadd.f32 %v642_v43, %v572_v27  ;;  %v844_v33 = vmul.f32 %v1675_v56, %v1843_v5  ;;  %v472_v46 = vadd.f32 %v440_v35, %v371_v30 }
  0x6c   : > { %v1294_v36 = vadd.f32 %v1986_v53, %v1255_v7  ;;  %v977_v14 = vadd.f32 %v945_v37, %v875_v23  ;;  %v643_v26 = vmul.f32 %v1610_v10, %v1828_v3  ;;  %v946_v13 = vmul.f32 %v1848_v6, %v1611_v34 }
  0x6d   : > { %v1217_v18 = vadd.f32 %v1956_v39, %v1178_v38  ;;  %v775_v52 = vadd.f32 %v743_v54, %v674_v48  ;;  %v1047_v62 = vmul.f32 %v1861_v15, %v2310_v44  ;;  %v573_v57 = vadd.f32 %v541_v42, %v472_v46  ;;  %v1678_v54 = vld [vmem:[%s1833_s8 + $0x112] sm:$0xff]  ;;  %v2380_v46 = vld [vmem:[%s2697_s1] ss:$0 sm:$0xff] }
  0x6e   : > { %1327 = vst.msk [vmem:[%s1998_s6 + $0x78] sm:$0xff] %vm1311_vm0, %v1294_v36  ;;  %v1078_v25 = vadd.f32 %v1046_v22, %v977_v14  ;;  %v744_v55 = vmul.f32 %v2288_v31, %v1838_v4  ;;  %v372_v58 = vmul.f32 %v1609_v61, %v1813_v0  ;;  %v441_v19 = vmul.f32 %v2266_v45, %v1818_v1  ;;  %v2331_v61 = vld [vmem:[%s1833_s8 + $0x110] sm:$0xff]  ;;  %v2373_v14 = vld [vmem:[%s2697_s1 + $0x4] ss:$0 sm:$0xff] }
  0x6f   : > { %v1256_v32 = vmul.f32 %v1970_v49, %v1217_v18  ;;  %v876_v60 = vadd.f32 %v844_v33, %v775_v52  ;;  %v542_v12 = vmul.f32 %v1675_v56, %v1823_v2  ;;  %v1148_v9 = vmul.f32 %v1872_v20, %v1677_v29  ;;  %v1679_v18 = vld [vmem:[%s1833_s8 + $0x122] sm:$0xff]  ;;  %v2388_v52 = vld [vmem:[%s2697_s1 + $0x1] ss:$0 sm:$0xff] }
  0x70   : > { %v1179_v8 = vadd.f32 %v1147_v40, %v1078_v25  ;;  %v675_v28 = vadd.f32 %v643_v26, %v573_v57  ;;  %v845_v11 = vmul.f32 %v1676_v16, %v1843_v5  ;;  %v473_v47 = vadd.f32 %v441_v19, %v372_v58  ;;  %v2402_v58 = vld [vmem:[%s2697_s1 + $0x5] ss:$0 sm:$0xff]  ;;  %v2407_v19 = vld [vmem:[%s1833_s8 + $0x128] sm:$0xff] }
  0x71   : > { %v1295_v41 = vadd.f32 %v1986_v53, %v1256_v32  ;;  %v978_v50 = vadd.f32 %v946_v13, %v876_v60  ;;  %v644_v45 = vmul.f32 %v1611_v34, %v1828_v3  ;;  %v947_v17 = vmul.f32 %v1848_v6, %v2331_v61 }
  0x72   : > { %v1218_v21 = vadd.f32 %v1956_v39, %v1179_v8  ;;  %v776_v56 = vadd.f32 %v744_v55, %v675_v28  ;;  %v1048_v43 = vmul.f32 %v1861_v15, %v2334_v51  ;;  %v574_v24 = vadd.f32 %v542_v12, %v473_v47  ;;  %v2410_v12 = vld [vmem:[%s1833_s8 + $0x129] sm:$0xff] }
  0x73   : > { %1328 = vst.msk [vmem:[%s1998_s6 + $0x80] sm:$0xff] %vm1311_vm0, %v1295_v41  ;;  %v1079_v63 = vadd.f32 %v1047_v62, %v978_v50  ;;  %v745_v37 = vmul.f32 %v2310_v44, %v1838_v4  ;;  %v373_v22 = vmul.f32 %v1610_v10, %v1813_v0  ;;  %v442_v30 = vmul.f32 %v2288_v31, %v1818_v1  ;;  %v2356_v0 = vld [vmem:[%s1833_s8 + $0x120] sm:$0xff] }
  0x74   : > { %v1257_v59 = vmul.f32 %v1970_v49, %v1218_v21  ;;  %v877_v27 = vadd.f32 %v845_v11, %v776_v56  ;;  %v543_v7 = vmul.f32 %v1676_v16, %v1823_v2  ;;  %v1149_v35 = vmul.f32 %v1872_v20, %v1678_v54  ;;  %v2359_v10 = vld [vmem:[%s1833_s8 + $0x121] sm:$0xff] }
  0x75   : > { %v1180_v23 = vadd.f32 %v1148_v9, %v1079_v63  ;;  %v676_v42 = vadd.f32 %v644_v45, %v574_v24  ;;  %v846_v38 = vmul.f32 %v1677_v29, %v1843_v5  ;;  %v474_v48 = vadd.f32 %v442_v30, %v373_v22  ;;  %v2395_v62 = vld [vmem:[%s2697_s1 + $0x2] ss:$0 sm:$0xff]  ;;  %v2423_v11 = vld [vmem:[%s2697_s1 + $0x6] ss:$0 sm:$0xff]  ;;  %v2430_v50 = vld [vmem:[%s2697_s1 + $0x7] ss:$0 sm:$0xff] }
  0x76   : > { %v1296_v4 = vadd.f32 %v1986_v53, %v1257_v59  ;;  %v979_v40 = vadd.f32 %v947_v17, %v877_v27  ;;  %v645_v1 = vmul.f32 %v2331_v61, %v1828_v3  ;;  %v948_v16 = vmul.f32 %v1848_v6, %v2356_v0  ;;  %v1680_v24 = vld [vmem:[%s1833_s8 + $0x12a] sm:$0xff]  ;;  %v2448_v27 = vld [vmem:[%s2697_s1 + $0x8] ss:$0 sm:$0xff] }
  0x77   : > { %v1219_v2 = vadd.f32 %v1956_v39, %v1180_v23  ;;  %v777_v31 = vadd.f32 %v745_v37, %v676_v42  ;;  %v1049_v5 = vmul.f32 %v1861_v15, %v2359_v10  ;;  %v575_v36 = vadd.f32 %v543_v7, %v474_v48  ;;  %v1615_v42 = vld [vmem:[%s1833_s8 + $0x138] sm:$0xff] }
  0x78   : > { %1329 = vst.msk [vmem:[%s1998_s6 + $0x88] sm:$0xff] %vm1311_vm0, %v1296_v4  ;;  %v1080_v33 = vadd.f32 %v1048_v43, %v979_v40  ;;  %v746_v3 = vmul.f32 %v2373_v14, %v2334_v51  ;;  %v374_v6 = vmul.f32 %v2380_v46, %v1611_v34  ;;  %v443_v13 = vmul.f32 %v2388_v52, %v2310_v44 }
  0x79   : > { %v1258_v15 = vmul.f32 %v1970_v49, %v1219_v2  ;;  %v878_v26 = vadd.f32 %v846_v38, %v777_v31  ;;  %v544_v34 = vmul.f32 %v2395_v62, %v1677_v29  ;;  %v1150_v57 = vmul.f32 %v1872_v20, %v1679_v18  ;;  %v2415_v20 = vld [vmem:[%s2697_s1 + $0x3] ss:$0 sm:$0xff] }
  0x7a   : > { %v1181_v25 = vadd.f32 %v1149_v35, %v1080_v33  ;;  %v677_v55 = vadd.f32 %v645_v1, %v575_v36  ;;  %v847_v32 = vmul.f32 %v2402_v58, %v1678_v54  ;;  %v475_v29 = vadd.f32 %v443_v13, %v374_v6 }
  0x7b   : > { %v1297_v44 = vadd.f32 %v1986_v53, %v1258_v15  ;;  %v980_v60 = vadd.f32 %v948_v16, %v878_v26  ;;  %v646_v8 = vmul.f32 %v2415_v20, %v2356_v0  ;;  %v949_v41 = vmul.f32 %v2423_v11, %v2407_v19 }
  0x7c   : > { %v1220_v9 = vadd.f32 %v1956_v39, %v1181_v25  ;;  %v778_v28 = vadd.f32 %v746_v3, %v677_v55  ;;  %v1050_v47 = vmul.f32 %v2430_v50, %v2410_v12  ;;  %v576_v21 = vadd.f32 %v544_v34, %v475_v29  ;;  %v1681_v3 = vld [vmem:[%s1833_s8 + $0x13a] sm:$0xff] }
  0x7d   : > { %1330 = vst.msk [vmem:[%s1998_s6 + $0x90] sm:$0xff] %vm1311_vm0, %v1297_v44  ;;  %v1081_v45 = vadd.f32 %v1049_v5, %v980_v60  ;;  %v747_v56 = vmul.f32 %v2373_v14, %v2359_v10  ;;  %v375_v17 = vmul.f32 %v2380_v46, %v2331_v61  ;;  %v444_v37 = vmul.f32 %v2388_v52, %v2334_v51  ;;  %v2455_v51 = vld [vmem:[%s1833_s8 + $0x139] sm:$0xff] }
  0x7e   : > { %v1259_v43 = vmul.f32 %v1970_v49, %v1220_v9  ;;  %v879_v63 = vadd.f32 %v847_v32, %v778_v28  ;;  %v545_v22 = vmul.f32 %v2395_v62, %v1678_v54  ;;  %v1151_v30 = vmul.f32 %v2448_v27, %v1680_v24  ;;  %v2481_v32 = vld [vmem:[%s1833_s8 + $0x141] sm:$0xff] }
  0x7f   : > { %v1182_v59 = vadd.f32 %v1150_v57, %v1081_v45  ;;  %v678_v7 = vadd.f32 %v646_v8, %v576_v21  ;;  %v848_v61 = vmul.f32 %v2402_v58, %v1679_v18  ;;  %v476_v54 = vadd.f32 %v444_v37, %v375_v17  ;;  %v1682_v21 = vld [vmem:[%s1833_s8 + $0x142] sm:$0xff] }
  0x80   : > { %v1298_v23 = vadd.f32 %v1986_v53, %v1259_v43  ;;  %v981_v35 = vadd.f32 %v949_v41, %v879_v63  ;;  %v647_v38 = vmul.f32 %v2415_v20, %v2407_v19  ;;  %v950_v48 = vmul.f32 %v2423_v11, %v1615_v42 }
  0x81   : > { %v1221_v4 = vadd.f32 %v1956_v39, %v1182_v59  ;;  %v779_v40 = vadd.f32 %v747_v56, %v678_v7  ;;  %v1051_v1 = vmul.f32 %v2430_v50, %v2455_v51  ;;  %v577_v31 = vadd.f32 %v545_v22, %v476_v54 }
  0x82   : > { %1331 = vst.msk [vmem:[%s1998_s6 + $0x98] sm:$0xff] %vm1311_vm0, %v1298_v23  ;;  %v1082_v2 = vadd.f32 %v1050_v47, %v981_v35  ;;  %v748_v16 = vmul.f32 %v2373_v14, %v2410_v12  ;;  %v376_v5 = vmul.f32 %v2380_v46, %v2356_v0  ;;  %v445_v6 = vmul.f32 %v2388_v52, %v2359_v10  ;;  %v2478_v0 = vld [vmem:[%s1833_s8 + $0x140] sm:$0xff] }
  0x83   : > { %v1260_v33 = vmul.f32 %v1970_v49, %v1221_v4  ;;  %v880_v36 = vadd.f32 %v848_v61, %v779_v40  ;;  %v546_v15 = vmul.f32 %v2395_v62, %v1679_v18  ;;  %v1152_v13 = vmul.f32 %v2448_v27, %v1681_v3 }
  0x84   : > { %v1183_v26 = vadd.f32 %v1151_v30, %v1082_v2  ;;  %v679_v34 = vadd.f32 %v647_v38, %v577_v31  ;;  %v849_v25 = vmul.f32 %v2402_v58, %v1680_v24  ;;  %v477_v44 = vadd.f32 %v445_v6, %v376_v5  ;;  %v1683_v31 = vld [vmem:[%s1833_s8 + $0x152] sm:$0xff] }
  0x85   : > { %v1299_v57 = vadd.f32 %v1986_v53, %v1260_v33  ;;  %v982_v55 = vadd.f32 %v950_v48, %v880_v36  ;;  %v648_v10 = vmul.f32 %v2415_v20, %v1615_v42  ;;  %v951_v29 = vmul.f32 %v2423_v11, %v2478_v0  ;;  %v2529_v48 = vld [vmem:[%s2699_s3] ss:$0 sm:$0xff] }
  0x86   : > { %v1222_v60 = vadd.f32 %v1956_v39, %v1183_v26  ;;  %v780_v18 = vadd.f32 %v748_v16, %v679_v34  ;;  %v1052_v8 = vmul.f32 %v2430_v50, %v2481_v32  ;;  %v578_v28 = vadd.f32 %v546_v15, %v477_v44  ;;  %v2541_v15 = vld [vmem:[%s2700_s4] ss:$0 sm:$0xff]  ;;  %v1618_v34 = vld [vmem:[%s1833_s8 + $0x158] sm:$0xff] }
  0x87   : > { %1332 = vst.msk [vmem:[%s1998_s6 + $0xa0] sm:$0xff] %vm1311_vm0, %v1299_v57  ;;  %v1083_v9 = vadd.f32 %v1051_v1, %v982_v55  ;;  %v749_v41 = vmul.f32 %v2373_v14, %v2455_v51  ;;  %v377_v47 = vmul.f32 %v2380_v46, %v2407_v19  ;;  %v446_v56 = vmul.f32 %v2388_v52, %v2410_v12  ;;  %v2504_v19 = vld [vmem:[%s1833_s8 + $0x150] sm:$0xff] }
  0x88   : > { %v1261_v39 = vmul.f32 %v1970_v49, %v1222_v60  ;;  %v881_v45 = vadd.f32 %v849_v25, %v780_v18  ;;  %v547_v17 = vmul.f32 %v2395_v62, %v1680_v24  ;;  %v1153_v63 = vmul.f32 %v2448_v27, %v1682_v21  ;;  %v2507_v49 = vld [vmem:[%s1833_s8 + $0x151] sm:$0xff]  ;;  %v2514_v24 = vld [vmem:[%s2698_s2] ss:$0 sm:$0xff] }
  0x89   : > { %v1184_v43 = vadd.f32 %v1152_v13, %v1083_v9  ;;  %v680_v37 = vadd.f32 %v648_v10, %v578_v28  ;;  %v850_v22 = vmul.f32 %v2402_v58, %v1681_v3  ;;  %v478_v7 = vadd.f32 %v446_v56, %v377_v47 }
  0x8a   : > { %v1300_v59 = vadd.f32 %v1986_v53, %v1261_v39  ;;  %v983_v30 = vadd.f32 %v951_v29, %v881_v45  ;;  %v649_v12 = vmul.f32 %v2415_v20, %v2478_v0  ;;  %v952_v53 = vmul.f32 %v2423_v11, %v2504_v19 }
  0x8b   : > { %v1223_v61 = vadd.f32 %v2514_v24, %v1184_v43  ;;  %v781_v23 = vadd.f32 %v749_v41, %v680_v37  ;;  %v1053_v35 = vmul.f32 %v2430_v50, %v2507_v49  ;;  %v579_v38 = vadd.f32 %v547_v17, %v478_v7  ;;  %v1684_v41 = vld [vmem:[%s1833_s8 + $0x15a] sm:$0xff] }
  0x8c   : > { %1333 = vst.msk [vmem:[%s1998_s6 + $0xa8] sm:$0xff] %vm1311_vm0, %v1300_v59  ;;  %v1084_v54 = vadd.f32 %v1052_v8, %v983_v30  ;;  %v750_v4 = vmul.f32 %v2373_v14, %v2481_v32  ;;  %v378_v40 = vmul.f32 %v2380_v46, %v1615_v42  ;;  %v447_v16 = vmul.f32 %v2388_v52, %v2455_v51  ;;  %v2546_v51 = vld [vmem:[%s1833_s8 + $0x159] sm:$0xff] }
  0x8d   : > { %v1262_v1 = vmul.f32 %v2529_v48, %v1223_v61  ;;  %v882_v2 = vadd.f32 %v850_v22, %v781_v23  ;;  %v548_v5 = vmul.f32 %v2395_v62, %v1681_v3  ;;  %v1154_v36 = vmul.f32 %v2448_v27, %v1683_v31  ;;  %v2570_v22 = vld [vmem:[%s1833_s8 + $0x169] sm:$0xff] }
  0x8e   : > { %v1185_v33 = vadd.f32 %v1153_v63, %v1084_v54  ;;  %v681_v6 = vadd.f32 %v649_v12, %v579_v38  ;;  %v851_v42 = vmul.f32 %v2402_v58, %v1682_v21  ;;  %v479_v3 = vadd.f32 %v447_v16, %v378_v40 }
  0x8f   : > { %v1301_v26 = vadd.f32 %v2541_v15, %v1262_v1  ;;  %v984_v13 = vadd.f32 %v952_v53, %v882_v2  ;;  %v650_v25 = vmul.f32 %v2415_v20, %v2504_v19  ;;  %v953_v44 = vmul.f32 %v2423_v11, %v1618_v34 }
  0x90   : > { %v1224_v57 = vadd.f32 %v2514_v24, %v1185_v33  ;;  %v782_v55 = vadd.f32 %v750_v4, %v681_v6  ;;  %v1054_v10 = vmul.f32 %v2430_v50, %v2546_v51  ;;  %v580_v18 = vadd.f32 %v548_v5, %v479_v3  ;;  %v1685_v4 = vld [vmem:[%s1833_s8 + $0x16a] sm:$0xff] }
  0x91   : > { %1334 = vst.msk [vmem:[%s1998_s6 + $0xb0] sm:$0xff] %vm1311_vm0, %v1301_v26  ;;  %v1085_v60 = vadd.f32 %v1053_v35, %v984_v13  ;;  %v751_v29 = vmul.f32 %v2373_v14, %v2507_v49  ;;  %v379_v8 = vmul.f32 %v2380_v46, %v2478_v0  ;;  %v448_v47 = vmul.f32 %v2388_v52, %v2481_v32  ;;  %v1619_v0 = vld [vmem:[%s1833_s8 + $0x168] sm:$0xff] }
  0x92   : > { %v1263_v9 = vmul.f32 %v2529_v48, %v1224_v57  ;;  %v883_v28 = vadd.f32 %v851_v42, %v782_v55  ;;  %v549_v39 = vmul.f32 %v2395_v62, %v1682_v21  ;;  %v1155_v56 = vmul.f32 %v2448_v27, %v1684_v41  ;;  %v2593_v42 = vld [vmem:[%s1833_s8 + $0x171] sm:$0xff] }
  0x93   : > { %v1186_v45 = vadd.f32 %v1154_v36, %v1085_v60  ;;  %v682_v17 = vadd.f32 %v650_v25, %v580_v18  ;;  %v852_v43 = vmul.f32 %v2402_v58, %v1683_v31  ;;  %v480_v59 = vadd.f32 %v448_v47, %v379_v8 }
  0x94   : > { %v1302_v63 = vadd.f32 %v2541_v15, %v1263_v9  ;;  %v985_v37 = vadd.f32 %v953_v44, %v883_v28  ;;  %v651_v30 = vmul.f32 %v2415_v20, %v1618_v34  ;;  %v954_v21 = vmul.f32 %v2423_v11, %v1619_v0 }
  0x95   : > { %v1225_v32 = vadd.f32 %v2514_v24, %v1186_v45  ;;  %v783_v7 = vadd.f32 %v751_v29, %v682_v17  ;;  %v1055_v12 = vmul.f32 %v2430_v50, %v2570_v22  ;;  %v581_v23 = vadd.f32 %v549_v39, %v480_v59  ;;  %v1686_v29 = vld [vmem:[%s1833_s8 + $0x172] sm:$0xff] }
  0x96   : > { %1335 = vst.msk [vmem:[%s1998_s6 + $0xb8] sm:$0xff] %vm1311_vm0, %v1302_v63  ;;  %v1086_v61 = vadd.f32 %v1054_v10, %v985_v37  ;;  %v752_v53 = vmul.f32 %v2373_v14, %v2546_v51  ;;  %v380_v35 = vmul.f32 %v2380_v46, %v2504_v19  ;;  %v449_v40 = vmul.f32 %v2388_v52, %v2507_v49  ;;  %v1620_v19 = vld [vmem:[%s1833_s8 + $0x170] sm:$0xff] }
  0x97   : > { %v1264_v54 = vmul.f32 %v2529_v48, %v1225_v32  ;;  %v884_v38 = vadd.f32 %v852_v43, %v783_v7  ;;  %v550_v1 = vmul.f32 %v2395_v62, %v1683_v31  ;;  %v1156_v16 = vmul.f32 %v2448_v27, %v1685_v4  ;;  %v1654_v43 = vld [vmem:[%s1833_s8 + $0x181] sm:$0xff] }
  0x98   : > { %v1187_v2 = vadd.f32 %v1155_v56, %v1086_v61  ;;  %v683_v5 = vadd.f32 %v651_v30, %v581_v23  ;;  %v853_v33 = vmul.f32 %v2402_v58, %v1684_v41  ;;  %v481_v26 = vadd.f32 %v449_v40, %v380_v35 }
  0x99   : > { %v1303_v36 = vadd.f32 %v2541_v15, %v1264_v54  ;;  %v986_v6 = vadd.f32 %v954_v21, %v884_v38  ;;  %v652_v13 = vmul.f32 %v2415_v20, %v1619_v0  ;;  %v955_v31 = vmul.f32 %v2423_v11, %v1620_v19 }
  0x9a   : > { %v1226_v49 = vadd.f32 %v2514_v24, %v1187_v2  ;;  %v784_v3 = vadd.f32 %v752_v53, %v683_v5  ;;  %v1056_v25 = vmul.f32 %v2430_v50, %v2593_v42  ;;  %v582_v55 = vadd.f32 %v550_v1, %v481_v26  ;;  %v1687_v53 = vld [vmem:[%s1833_s8 + $0x182] sm:$0xff] }
  0x9b   : > { %1336 = vst.msk [vmem:[%s1998_s6 + $0xc0] sm:$0xff] %vm1311_vm0, %v1303_v36  ;;  %v1087_v57 = vadd.f32 %v1055_v12, %v986_v6  ;;  %v753_v44 = vmul.f32 %v2373_v14, %v2570_v22  ;;  %v381_v10 = vmul.f32 %v2380_v46, %v1618_v34  ;;  %v450_v8 = vmul.f32 %v2388_v52, %v2546_v51  ;;  %v1621_v34 = vld [vmem:[%s1833_s8 + $0x180] sm:$0xff] }
  0x9c   : > { %v1265_v60 = vmul.f32 %v2529_v48, %v1226_v49  ;;  %v885_v18 = vadd.f32 %v853_v33, %v784_v3  ;;  %v551_v9 = vmul.f32 %v2395_v62, %v1684_v41  ;;  %v1157_v47 = vmul.f32 %v2448_v27, %v1686_v29  ;;  %v1655_v33 = vld [vmem:[%s1833_s8 + $0x189] sm:$0xff] }
  0x9d   : > { %v1188_v28 = vadd.f32 %v1156_v16, %v1087_v57  ;;  %v684_v39 = vadd.f32 %v652_v13, %v582_v55  ;;  %v854_v45 = vmul.f32 %v2402_v58, %v1685_v4  ;;  %v482_v63 = vadd.f32 %v450_v8, %v381_v10  ;;  %v1623_v10 = vld [vmem:[%s1833_s8 + $0x198] sm:$0xff] }
  0x9e   : > { %v1304_v56 = vadd.f32 %v2541_v15, %v1265_v60  ;;  %v987_v17 = vadd.f32 %v955_v31, %v885_v18  ;;  %v653_v37 = vmul.f32 %v2415_v20, %v1620_v19  ;;  %v956_v41 = vmul.f32 %v2423_v11, %v1621_v34 }
  0x9f   : > { %v1227_v51 = vadd.f32 %v2514_v24, %v1188_v28  ;;  %v785_v59 = vadd.f32 %v753_v44, %v684_v39  ;;  %v1057_v30 = vmul.f32 %v2430_v50, %v1654_v43  ;;  %v583_v7 = vadd.f32 %v551_v9, %v482_v63  ;;  %v1688_v44 = vld [vmem:[%s1833_s8 + $0x18a] sm:$0xff]  ;;  %v1656_v39 = vld [vmem:[%s1833_s8 + $0x199] sm:$0xff] }
  0xa0   : > { %1337 = vst.msk [vmem:[%s1998_s6 + $0xc8] sm:$0xff] %vm1311_vm0, %v1304_v56  ;;  %v1088_v32 = vadd.f32 %v1056_v25, %v987_v17  ;;  %v754_v21 = vmul.f32 %v2373_v14, %v2593_v42  ;;  %v382_v12 = vmul.f32 %v2380_v46, %v1619_v0  ;;  %v451_v35 = vmul.f32 %v2388_v52, %v2570_v22  ;;  %v1622_v0 = vld [vmem:[%s1833_s8 + $0x188] sm:$0xff] }
  0xa1   : > { %v1266_v61 = vmul.f32 %v2529_v48, %v1227_v51  ;;  %v886_v23 = vadd.f32 %v854_v45, %v785_v59  ;;  %v552_v54 = vmul.f32 %v2395_v62, %v1685_v4  ;;  %v1158_v40 = vmul.f32 %v2448_v27, %v1687_v53  ;;  %v1624_v51 = vld [vmem:[%s1833_s8 + $0x1a0] sm:$0xff] }
  0xa2   : > { %v1189_v38 = vadd.f32 %v1157_v47, %v1088_v32  ;;  %v685_v1 = vadd.f32 %v653_v37, %v583_v7  ;;  %v855_v2 = vmul.f32 %v2402_v58, %v1686_v29  ;;  %v483_v36 = vadd.f32 %v451_v35, %v382_v12  ;;  %v1657_v12 = vld [vmem:[%s1833_s8 + $0x1a1] sm:$0xff] }
  0xa3   : > { %v1305_v16 = vadd.f32 %v2541_v15, %v1266_v61  ;;  %v988_v5 = vadd.f32 %v956_v41, %v886_v23  ;;  %v654_v6 = vmul.f32 %v2415_v20, %v1621_v34  ;;  %v957_v4 = vmul.f32 %v2423_v11, %v1622_v0  ;;  %v1690_v35 = vld [vmem:[%s1833_s8 + $0x1a2] sm:$0xff] }
  0xa4   : > { %v1228_v22 = vadd.f32 %v2514_v24, %v1189_v38  ;;  %v786_v26 = vadd.f32 %v754_v21, %v685_v1  ;;  %v1058_v13 = vmul.f32 %v2430_v50, %v1655_v33  ;;  %v584_v3 = vadd.f32 %v552_v54, %v483_v36 }
  0xa5   : > { %1338 = vst.msk [vmem:[%s1998_s6 + $0xd0] sm:$0xff] %vm1311_vm0, %v1305_v16  ;;  %v1089_v49 = vadd.f32 %v1057_v30, %v988_v5  ;;  %v755_v31 = vmul.f32 %v2373_v14, %v1654_v43  ;;  %v383_v25 = vmul.f32 %v2380_v46, %v1620_v19  ;;  %v452_v60 = vmul.f32 %v2388_v52, %v2593_v42 }
  0xa6   : > { %v1267_v57 = vmul.f32 %v2529_v48, %v1228_v22  ;;  %v887_v55 = vadd.f32 %v855_v2, %v786_v26  ;;  %v553_v18 = vmul.f32 %v2395_v62, %v1686_v29  ;;  %v1159_v9 = vmul.f32 %v2448_v27, %v1688_v44  ;;  %v1689_v29 = vld [vmem:[%s1833_s8 + $0x19a] sm:$0xff] }
  0xa7   : > { %v1190_v8 = vadd.f32 %v1158_v40, %v1089_v49  ;;  %v686_v28 = vadd.f32 %v654_v6, %v584_v3  ;;  %v856_v47 = vmul.f32 %v2402_v58, %v1687_v53  ;;  %v484_v45 = vadd.f32 %v452_v60, %v383_v25 }
  0xa8   : > { %v1306_v46 = vadd.f32 %v2541_v15, %v1267_v57  ;;  %v989_v19 = vadd.f32 %v957_v4, %v887_v55  ;;  %v655_v56 = vmul.f32 %v2415_v20, %v1622_v0  ;;  %v958_v42 = vmul.f32 %v2423_v11, %v1623_v10 }
  0xa9   : > { %v1229_v17 = vadd.f32 %v2514_v24, %v1190_v8  ;;  %v787_v52 = vadd.f32 %v755_v31, %v686_v28  ;;  %v585_v34 = vadd.f32 %v553_v18, %v484_v45  ;;  %v756_v43 = vmul.f32 %v2373_v14, %v1655_v33 }
  0xaa   : > { %1339 = vst.msk [vmem:[%s1998_s6 + $0xd8] sm:$0xff] %vm1311_vm0, %v1306_v46  ;;  %v1090_v62 = vadd.f32 %v1058_v13, %v989_v19  ;;  %v1059_v20 = vmul.f32 %v2430_v50, %v1656_v39  ;;  %v857_v30 = vmul.f32 %v2402_v58, %v1688_v44  ;;  %v1160_v21 = vmul.f32 %v2448_v27, %v1689_v29 }
  0xab   : > { %v1268_v63 = vmul.f32 %v2529_v48, %v1229_v17  ;;  %v888_v37 = vadd.f32 %v856_v47, %v787_v52  ;;  %v687_v41 = vadd.f32 %v655_v56, %v585_v34  ;;  %v959_v23 = vmul.f32 %v2423_v11, %v1624_v51 }
  0xac   : > { %v1191_v59 = vadd.f32 %v1159_v9, %v1090_v62  ;;  %v1060_v38 = vmul.f32 %v2430_v50, %v1657_v12  ;;  %v1161_v16 = vmul.f32 %v2448_v27, %v1690_v35 }
  0xad   : > { %v1307_v32 = vadd.f32 %v2541_v15, %v1268_v63  ;;  %v990_v7 = vadd.f32 %v958_v42, %v888_v37  ;;  %v788_v61 = vadd.f32 %v756_v43, %v687_v41 }
  0xae   : > { %v1230_v14 = vadd.f32 %v2514_v24, %v1191_v59 }
  0xaf   : > { %1340 = vst.msk [vmem:[%s1998_s6 + $0xe0] sm:$0xff] %vm1311_vm0, %v1307_v32  ;;  %v1091_v53 = vadd.f32 %v1059_v20, %v990_v7  ;;  %v889_v58 = vadd.f32 %v857_v30, %v788_v61 }
  0xb0   : > { %v1269_v54 = vmul.f32 %v2529_v48, %v1230_v14 }
  0xb1   : > { %v1192_v40 = vadd.f32 %v1160_v21, %v1091_v53  ;;  %v991_v2 = vadd.f32 %v959_v23, %v889_v58 }
  0xb2   : > { %v1308_v1 = vadd.f32 %v2541_v15, %v1269_v54 }
  0xb3   : > { %v1231_v5 = vadd.f32 %v2514_v24, %v1192_v40  ;;  %v1092_v11 = vadd.f32 %v1060_v38, %v991_v2 }
  0xb4   : > { %1341 = vst.msk [vmem:[%s1998_s6 + $0xe8] sm:$0xff] %vm1311_vm0, %v1308_v1 }
  0xb5   : > { %v1270_v0 = vmul.f32 %v2529_v48, %v1231_v5  ;;  %v1193_v33 = vadd.f32 %v1161_v16, %v1092_v11 }
  0xb7   : > { %v1309_v36 = vadd.f32 %v2541_v15, %v1270_v0  ;;  %v1232_v6 = vadd.f32 %v2514_v24, %v1193_v33 }
  0xb9   : > { %1342 = vst.msk [vmem:[%s1998_s6 + $0xf0] sm:$0xff] %vm1311_vm0, %v1309_v36  ;;  %v1271_v50 = vmul.f32 %v2529_v48, %v1232_v6 }
  0xbb   : > { %v1310_v22 = vadd.f32 %v2541_v15, %v1271_v50 }
  0xbd   : > { %1343 = vst.msk [vmem:[%s1998_s6 + $0xf8] sm:$0xff] %vm1311_vm0, %v1310_v22 }
  0xbe PF: > { %s15_s20 = sadd.s32 1, %s1757_s20   ;;  %s2702_s18 = smov %s1753_s19 }
  0xbf   : > { %p12_p5 = scmp.ge.s32.totalorder %s15_s20, 4   ;;  %s2703_s19 = smov %s2705_s21 }
  0xc1   :  { %14 = sbr.rel (!%p12_p5) target bundleno = 2 (0x2), region = 84 }

// kernel: depthwise_conv2d_bn.2
= control target key start
LH: loop header
LB: loop body
LE: loop exit
PB: predicated region body
PF: predicated region fallthrough
CT: control target
= control target key end

     0   :  { %s1710_s12 = smov 0   ;;  %s1712_s13 = smov 0   ;;  %s3476_s0 = inlined_call_operand.vmem [shape: f32[2,18,18,4], index: 0, kind: input, shape index: {}]   ;;  %s3477_s1 = inlined_call_operand.vmem [shape: f32[9,4], index: 1, kind: input, shape index: {}]   ;;  %s3478_s2 = inlined_call_operand.vmem [shape: f32[1,4], index: 2, kind: input, shape index: {}]   ;;  %s3479_s3 = inlined_call_operand.vmem [shape: f32[2,2,4], index: 3, kind: output, shape index: {}]  }
   0x1   :  { %s1714_s14 = smov 0  }
   0x2 LB: > { %s25_s15 = sadd.s32 1, %s1684_s13  ;;  %p1434_p0 = scmp.ge.s32.totalorder %s1688_s14, 1  ;;  %s1688_s14 = sphi %s1714_s14, %s13_s14   ;;  %s1684_s13 = sphi %s1712_s13, %s3887_s13   ;;  %s1680_s12 = sphi %s1710_s12, %s3886_s12  }
   0x3   : > { %p27_p1 = scmp.ge.s32.totalorder %s25_s15, 2  ;;  %p173_p2 = scmp.lt.s32.totalorder %s1688_s14, 3 }
   0x5   : > { %s3889_s15 = smov (%p27_p1, %s25_s15), 0  ;;  %p174_p3 = pnand %p1434_p0, %p173_p2 }
   0x7   : > { %177 = sbr.rel (%p174_p3) target bundleno = 261 (0x105), region = 32 }
   0xc   : > { %p209_p4 = scmp.lt.s32.totalorder %s1680_s12, 1  ;;  %v1739_v0 = vld [vmem:[%s3477_s1] ss:$0 sm:$0xff]  ;;  %v1746_v3 = vld [vmem:[%s3477_s1 + $0x3] ss:$0 sm:$0xff]  ;;  %vm1149_vm0 = vcmask 31744  }
   0xd   : > { %3566 = vst [vmem:[#allocation2_spill] sm:$0xff] %v1746_v3  ;;  %v1853_v42 = vld [vmem:[%s3477_s1 + $0x1] ss:$0 sm:$0xff]  ;;  %vm1320_vm1 = vcmask 24576  }
   0xe   : > { %s3891_s12 = smov (!%p209_p4, %s1680_s12), 1 }
   0xf   : > { %s1641_s16 = smul.u32 432, %s3891_s12  ;;  %s1436_s17 = sshll.u32 %s3891_s12, 1 }
  0x10   : > { %s230_s20 = scalar_lea.vmem %s3479_s3, %s1436_s17 }
  0x11   : > { %s1734_s19 = scalar_lea.vmem %s3476_s0, %s1641_s16 }
  0x12   : > { %v231_v1 = vld [vmem:[%s1734_s19] sm:$0xff]  ;;  %v232_v2 = vld [vmem:[%s1734_s19 + $0x8] sm:$0xff]  ;;  %v233_v4 = vld [vmem:[%s1734_s19 + $0x18] sm:$0xff] }
  0x13   : > { %v234_v5 = vld [vmem:[%s1734_s19 + $0x20] sm:$0xff]  ;;  %v235_v6 = vld [vmem:[%s1734_s19 + $0x30] sm:$0xff]  ;;  %v236_v7 = vld [vmem:[%s1734_s19 + $0x38] sm:$0xff]  ;;  %v1760_v13 = vmul.f32 %v1739_v0, %v231_v1  ;;  %v1763_v14 = vmul.f32 %v1739_v0, %v232_v2  ;;  %v1775_v18 = vmul.f32 %v1739_v0, %v233_v4  ;;  %v1784_v21 = vmul.f32 %v1746_v3, %v233_v4 }
  0x14   : > { %v237_v8 = vld [vmem:[%s1734_s19 + $0x48] sm:$0xff]  ;;  %v238_v9 = vld [vmem:[%s1734_s19 + $0x50] sm:$0xff]  ;;  %v239_v10 = vld [vmem:[%s1734_s19 + $0x60] sm:$0xff]  ;;  %v1778_v19 = vmul.f32 %v1739_v0, %v234_v5  ;;  %v1781_v20 = vmul.f32 %v1739_v0, %v235_v6  ;;  %v1796_v25 = vmul.f32 %v1739_v0, %v236_v7  ;;  %v1805_v28 = vmul.f32 %v1746_v3, %v234_v5 }
  0x15   : > { %v240_v11 = vld [vmem:[%s1734_s19 + $0x68] sm:$0xff]  ;;  %v1757_v12 = vld [vmem:[%s1734_s19 + $0x78] sm:$0xff]  ;;  %v1766_v15 = vld [vmem:[%s1734_s19 + $0x80] sm:$0xff]  ;;  %3567 = vst [vmem:[#allocation3_spill] sm:$0xff] %v1784_v21  ;;  %v1799_v26 = vmul.f32 %v1739_v0, %v237_v8  ;;  %v1802_v27 = vmul.f32 %v1739_v0, %v238_v9  ;;  %v1817_v32 = vmul.f32 %v1739_v0, %v239_v10  ;;  %v1827_v35 = vmul.f32 %v1746_v3, %v235_v6 }
  0x16   : > { %v1769_v16 = vld [vmem:[%s1734_s19 + $0x90] sm:$0xff]  ;;  %v1772_v17 = vld [vmem:[%s1734_s19 + $0x98] sm:$0xff]  ;;  %v1787_v22 = vld [vmem:[%s1734_s19 + $0xa8] sm:$0xff]  ;;  %3571 = vst [vmem:[#allocation7_spill] sm:$0xff] %v1805_v28  ;;  %v1820_v33 = vmul.f32 %v1739_v0, %v240_v11  ;;  %v1824_v34 = vmul.f32 %v1739_v0, %v1757_v12  ;;  %v1840_v39 = vmul.f32 %v1739_v0, %v1766_v15  ;;  %v1856_v43 = vmul.f32 %v1746_v3, %v236_v7 }
  0x17   : > { %3568 = vst [vmem:[#allocation4_spill] sm:$0xff] %v1787_v22  ;;  %v1790_v23 = vld [vmem:[%s1734_s19 + $0xb0] sm:$0xff]  ;;  %v1793_v24 = vld [vmem:[%s1734_s19 + $0xc0] sm:$0xff]  ;;  %v1808_v29 = vld [vmem:[%s1734_s19 + $0xc8] sm:$0xff]  ;;  %v1844_v40 = vmul.f32 %v1739_v0, %v1769_v16  ;;  %v1848_v41 = vmul.f32 %v1739_v0, %v1772_v17  ;;  %v1869_v47 = vmul.f32 %v1739_v0, %v1787_v22  ;;  %v1880_v50 = vmul.f32 %v1746_v3, %v237_v8 }
  0x18   : > { %3569 = vst [vmem:[#allocation5_spill] sm:$0xff] %v1790_v23  ;;  %3570 = vst [vmem:[#allocation6_spill] sm:$0xff] %v1793_v24  ;;  %v1811_v30 = vld [vmem:[%s1734_s19 + $0xd8] sm:$0xff]  ;;  %v1814_v31 = vld [vmem:[%s1734_s19 + $0xe0] sm:$0xff]  ;;  %v1873_v48 = vmul.f32 %v1739_v0, %v1790_v23  ;;  %v1877_v49 = vmul.f32 %v1739_v0, %v1793_v24  ;;  %v1890_v53 = vmul.f32 %v1739_v0, %v1808_v29 }
  0x19   : > { %3572 = vst [vmem:[#allocation8_spill] sm:$0xff] %v1808_v29  ;;  %3573 = vst [vmem:[#allocation9_spill] sm:$0xff] %v1811_v30  ;;  %v1830_v36 = vld [vmem:[%s1734_s19 + $0xf0] sm:$0xff]  ;;  %v1833_v37 = vld [vmem:[%s1734_s19 + $0xf8] sm:$0xff]  ;;  %v1894_v54 = vmul.f32 %v1739_v0, %v1811_v30  ;;  %v1898_v55 = vmul.f32 %v1739_v0, %v1814_v31  ;;  %v1902_v57 = vmul.f32 %v1746_v3, %v238_v9 }
  0x1a   : > { %3574 = vst [vmem:[#allocation10_spill] sm:$0xff] %v1814_v31  ;;  %3575 = vst [vmem:[#allocation11_spill] sm:$0xff] %v1827_v35  ;;  %v1836_v38 = vld [vmem:[%s1734_s19 + $0x108] sm:$0xff]  ;;  %v1859_v44 = vld [vmem:[%s1734_s19 + $0x110] sm:$0xff]  ;;  %v1912_v60 = vmul.f32 %v1739_v0, %v1830_v36  ;;  %v1916_v61 = vmul.f32 %v1739_v0, %v1833_v37  ;;  %v1924_v1 = vmul.f32 %v1746_v3, %v239_v10 }
  0x1b   : > { %3576 = vst [vmem:[#allocation12_spill] sm:$0xff] %v1830_v36  ;;  %3577 = vst [vmem:[#allocation13_spill] sm:$0xff] %v1833_v37  ;;  %v1862_v45 = vld [vmem:[%s1734_s19 + $0x120] sm:$0xff]  ;;  %v1865_v46 = vld [vmem:[%s1734_s19 + $0x128] sm:$0xff]  ;;  %v1920_v62 = vmul.f32 %v1739_v0, %v1836_v38  ;;  %v1934_v5 = vmul.f32 %v1739_v0, %v1859_v44  ;;  %v1948_v9 = vmul.f32 %v1746_v3, %v240_v11 }
  0x1c   : > { %3578 = vst [vmem:[#allocation14_spill] sm:$0xff] %v1836_v38  ;;  %3579 = vst [vmem:[#allocation15_spill] sm:$0xff] %v1856_v43  ;;  %v1883_v51 = vld [vmem:[%s1734_s19 + $0x138] sm:$0xff]  ;;  %v1886_v52 = vld [vmem:[%s1734_s19 + $0x140] sm:$0xff]  ;;  %v1938_v6 = vmul.f32 %v1739_v0, %v1862_v45  ;;  %v1942_v7 = vmul.f32 %v1739_v0, %v1865_v46 }
  0x1d   : > { %3580 = vst [vmem:[#allocation16_spill] sm:$0xff] %v1859_v44  ;;  %3581 = vst [vmem:[#allocation17_spill] sm:$0xff] %v1862_v45  ;;  %v300_v56 = vld [vmem:[%s1734_s19 + $0x1] sm:$0xff]  ;;  %v1905_v58 = vld [vmem:[%s1734_s19 + $0x150] sm:$0xff]  ;;  %v1952_v10 = vmul.f32 %v1739_v0, %v1883_v51 }
  0x1e   : > { %3582 = vst [vmem:[#allocation18_spill] sm:$0xff] %v1865_v46  ;;  %3583 = vst [vmem:[#allocation19_spill] sm:$0xff] %v1880_v50  ;;  %v1908_v59 = vld [vmem:[%s1734_s19 + $0x158] sm:$0xff]  ;;  %v301_v63 = vld [vmem:[%s1734_s19 + $0x9] sm:$0xff]  ;;  %v337_v11 = vmul.f32 %v1853_v42, %v300_v56  ;;  %v1974_v35 = vmul.f32 %v1739_v0, %v1905_v58 }
  0x1f   : > { %3584 = vst [vmem:[#allocation20_spill] sm:$0xff] %v1883_v51  ;;  %3585 = vst [vmem:[#allocation21_spill] sm:$0xff] %v1886_v52  ;;  %v1927_v2 = vld [vmem:[%s1734_s19 + $0x168] sm:$0xff]  ;;  %v1930_v4 = vld [vmem:[%s1734_s19 + $0x170] sm:$0xff]  ;;  %v1978_v28 = vmul.f32 %v1739_v0, %v1908_v59  ;;  %v338_v51 = vmul.f32 %v1853_v42, %v301_v63 }
  0x20   : > { %3586 = vst [vmem:[#allocation22_spill] sm:$0xff] %v1902_v57  ;;  %3587 = vst [vmem:[#allocation23_spill] sm:$0xff] %v1905_v58  ;;  %v1945_v8 = vld [vmem:[%s1734_s19 + $0x19] sm:$0xff]  ;;  %v1959_v57 = vld [vmem:[%s1734_s19 + $0x21] sm:$0xff] }
  0x21   : > { %3588 = vst [vmem:[#allocation24_spill] sm:$0xff] %v1908_v59  ;;  %3589 = vst [vmem:[#allocation25_spill] sm:$0xff] %v1924_v1  ;;  %v1956_v1 = vmul.f32 %v1739_v0, %v1886_v52  ;;  %v1962_v50 = vld [vmem:[%s1734_s19 + $0x31] sm:$0xff]  ;;  %v1965_v43 = vld [vmem:[%s1734_s19 + $0x39] sm:$0xff]  ;;  %v2000_v59 = vmul.f32 %v1739_v0, %v1930_v4  ;;  %v340_v45 = vmul.f32 %v1853_v42, %v1959_v57 }
  0x22   : > { %3590 = vst [vmem:[#allocation26_spill] sm:$0xff] %v1927_v2  ;;  %3591 = vst [vmem:[#allocation27_spill] sm:$0xff] %v1930_v4  ;;  %v1981_v21 = vld [vmem:[%s1734_s19 + $0x49] sm:$0xff]  ;;  %v1984_v52 = vld [vmem:[%s1734_s19 + $0x51] sm:$0xff]  ;;  %v341_v44 = vmul.f32 %v1853_v42, %v1962_v50 }
  0x23   : > { %3592 = vst [vmem:[#allocation28_spill] sm:$0xff] %v1945_v8  ;;  %3593 = vst [vmem:[#allocation29_spill] sm:$0xff] %v1948_v9  ;;  %v1970_v9 = vmul.f32 %v1746_v3, %v1757_v12  ;;  %v1987_v56 = vld [vmem:[%s1734_s19 + $0x61] sm:$0xff]  ;;  %v1992_v12 = vmul.f32 %v1746_v3, %v1766_v15  ;;  %v2003_v58 = vld [vmem:[%s1734_s19 + $0x69] sm:$0xff]  ;;  %v339_v15 = vmul.f32 %v1853_v42, %v1945_v8 }
  0x24   : > { %3594 = vst [vmem:[#allocation30_spill] sm:$0xff] %v1959_v57  ;;  %3595 = vst [vmem:[#allocation31_spill] sm:$0xff] %v1962_v50  ;;  %v2006_v46 = vld [vmem:[%s1734_s19 + $0x79] sm:$0xff]  ;;  %v2009_v63 = vld [vmem:[%s1734_s19 + $0x81] sm:$0xff]  ;;  %v342_v8 = vmul.f32 %v1853_v42, %v1965_v43  ;;  %v343_v57 = vmul.f32 %v1853_v42, %v1981_v21  ;;  %v344_v50 = vmul.f32 %v1853_v42, %v1984_v52 }
  0x25   : > { %3596 = vst [vmem:[#allocation32_spill] sm:$0xff] %v1965_v43  ;;  %3597 = vst [vmem:[#allocation33_spill] sm:$0xff] %v1970_v9  ;;  %v1996_v9 = vmul.f32 %v1739_v0, %v1927_v2  ;;  %v2018_v2 = vld [vmem:[%s1734_s19 + $0x91] sm:$0xff]  ;;  %v2021_v0 = vld [vmem:[%s1734_s19 + $0x99] sm:$0xff]  ;;  %v345_v43 = vmul.f32 %v1853_v42, %v1987_v56 }
  0x26   : > { %3598 = vst [vmem:[#allocation34_spill] sm:$0xff] %v1981_v21  ;;  %3599 = vst [vmem:[#allocation35_spill] sm:$0xff] %v1984_v52  ;;  %v2024_v4 = vld [vmem:[%s1734_s19 + $0xa9] sm:$0xff]  ;;  %v2040_v38 = vld [vmem:[%s1734_s19 + $0xc1] sm:$0xff]  ;;  %v346_v21 = vmul.f32 %v1853_v42, %v2003_v58  ;;  %v347_v52 = vmul.f32 %v1853_v42, %v2006_v46 }
  0x27   : > { %3600 = vst [vmem:[#allocation36_spill] sm:$0xff] %v1987_v56  ;;  %3601 = vst [vmem:[#allocation37_spill] sm:$0xff] %v1992_v12  ;;  %v2015_v12 = vmul.f32 %v1746_v3, %v1769_v16  ;;  %v2034_v16 = vmul.f32 %v1746_v3, %v1772_v17  ;;  %v2043_v37 = vld [vmem:[%s1734_s19 + $0xc9] sm:$0xff]  ;;  %v2052_v17 = vadd.f32 %v337_v11, %v1760_v13  ;;  %v2058_v36 = vld [vmem:[%s1734_s19 + $0xe1] sm:$0xff] }
  0x28   : > { %3602 = vst [vmem:[#allocation38_spill] sm:$0xff] %v2003_v58  ;;  %3603 = vst [vmem:[#allocation39_spill] sm:$0xff] %v2006_v46  ;;  %v2061_v31 = vld [vmem:[%s1734_s19 + $0xf1] sm:$0xff]  ;;  %v348_v56 = vmul.f32 %v1853_v42, %v2009_v63  ;;  %v2070_v13 = vadd.f32 %v338_v51, %v1763_v14  ;;  %v2073_v11 = vld [vmem:[%s1734_s19 + $0xf9] sm:$0xff]  ;;  %v349_v58 = vmul.f32 %v1853_v42, %v2018_v2 }
  0x29   : > { %3604 = vst [vmem:[#allocation40_spill] sm:$0xff] %v2009_v63  ;;  %3605 = vst [vmem:[#allocation41_spill] sm:$0xff] %v2015_v12  ;;  %v2037_v12 = vld [vmem:[%s1734_s19 + $0xb1] sm:$0xff]  ;;  %v2076_v30 = vld [vmem:[%s1734_s19 + $0x109] sm:$0xff]  ;;  %v350_v46 = vmul.f32 %v1853_v42, %v2021_v0  ;;  %v351_v63 = vmul.f32 %v1853_v42, %v2024_v4  ;;  %v2088_v14 = vadd.f32 %v339_v15, %v1775_v18 }
  0x2a   : > { %3606 = vst [vmem:[#allocation42_spill] sm:$0xff] %v2018_v2  ;;  %3607 = vst [vmem:[#allocation43_spill] sm:$0xff] %v2021_v0  ;;  %v2079_v29 = vld [vmem:[%s1734_s19 + $0x111] sm:$0xff]  ;;  %v2091_v51 = vld [vmem:[%s1734_s19 + $0x121] sm:$0xff]  ;;  %v352_v2 = vmul.f32 %v1853_v42, %v2037_v12  ;;  %v353_v0 = vmul.f32 %v1853_v42, %v2040_v38  ;;  %v2106_v3 = vadd.f32 %v340_v45, %v1778_v19 }
  0x2b   : > { %3608 = vst [vmem:[#allocation44_spill] sm:$0xff] %v2024_v4  ;;  %3609 = vst [vmem:[#allocation45_spill] sm:$0xff] %v2034_v16  ;;  %v2055_v16 = vld [vmem:[%s1734_s19 + $0xd9] sm:$0xff]  ;;  %v2094_v24 = vld [vmem:[%s1734_s19 + $0x129] sm:$0xff]  ;;  %v354_v4 = vmul.f32 %v1853_v42, %v2043_v37 }
  0x2c   : > { %3610 = vst [vmem:[#allocation46_spill] sm:$0xff] %v2037_v12  ;;  %3611 = vst [vmem:[#allocation47_spill] sm:$0xff] %v2040_v38  ;;  %v2097_v23 = vld [vmem:[%s1734_s19 + $0x139] sm:$0xff]  ;;  %v2109_v18 = vld [vmem:[%s1734_s19 + $0x141] sm:$0xff]  ;;  %v356_v12 = vmul.f32 %v1853_v42, %v2058_v36  ;;  %v357_v38 = vmul.f32 %v1853_v42, %v2061_v31 }
  0x2d   : > { %3612 = vst [vmem:[#allocation48_spill] sm:$0xff] %v2043_v37  ;;  %3613 = vst [vmem:[#allocation49_spill] sm:$0xff] %v2055_v16  ;;  %v2112_v15 = vld [vmem:[%s1734_s19 + $0x151] sm:$0xff]  ;;  %v2115_v22 = vld [vmem:[%s1734_s19 + $0x159] sm:$0xff]  ;;  %v2124_v37 = vadd.f32 %v341_v44, %v1781_v20  ;;  %v361_v20 = vmul.f32 %v1853_v42, %v2091_v51  ;;  %v362_v44 = vmul.f32 %v1853_v42, %v2094_v24 }
  0x2e   : > { %3614 = vst [vmem:[#allocation50_spill] sm:$0xff] %v2058_v36  ;;  %3615 = vst [vmem:[#allocation51_spill] sm:$0xff] %v2061_v31  ;;  %v2127_v19 = vld [vmem:[%s1734_s19 + $0x169] sm:$0xff]  ;;  %v2130_v45 = vld [vmem:[%s1734_s19 + $0x171] sm:$0xff]  ;;  %v2139_v36 = vadd.f32 %v342_v8, %v1796_v25  ;;  %v2148_v31 = vadd.f32 %v343_v57, %v1799_v26  ;;  %v365_v25 = vmul.f32 %v1853_v42, %v2112_v15 }
  0x2f   : > { %3616 = vst [vmem:[#allocation52_spill] sm:$0xff] %v2070_v13  ;;  %3617 = vst [vmem:[#allocation53_spill] sm:$0xff] %v2073_v11  ;;  %v359_v13 = vmul.f32 %v1853_v42, %v2076_v30  ;;  %v366_v8 = vmul.f32 %v1853_v42, %v2115_v22  ;;  %v368_v26 = vmul.f32 %v1853_v42, %v2130_v45 }
  0x30   : > { %3618 = vst [vmem:[#allocation54_spill] sm:$0xff] %v2076_v30  ;;  %3619 = vst [vmem:[#allocation55_spill] sm:$0xff] %v2079_v29  ;;  %v2164_v57 = vadd.f32 %v345_v43, %v1817_v32  ;;  %v402_v32 = vld [vmem:[%s1734_s19 + $0xa] sm:$0xff]  ;;  %v2204_v43 = vld [vmem:[%s1734_s19 + $0x22] sm:$0xff] }
  0x31   : > { %3620 = vst [vmem:[#allocation56_spill] sm:$0xff] %v2088_v14  ;;  %3621 = vst [vmem:[#allocation57_spill] sm:$0xff] %v2091_v51  ;;  %v355_v14 = vmul.f32 %v1853_v42, %v2055_v16  ;;  %v360_v16 = vmul.f32 %v1853_v42, %v2079_v29  ;;  %v364_v29 = vmul.f32 %v1853_v42, %v2109_v18  ;;  %v2350_v30 = vld [vmem:[%s1734_s19 + $0x15a] sm:$0xff] }
  0x32   : > { %3622 = vst [vmem:[#allocation58_spill] sm:$0xff] %v2094_v24  ;;  %3623 = vst [vmem:[#allocation59_spill] sm:$0xff] %v2097_v23  ;;  %v2157_v51 = vadd.f32 %v344_v50, %v1802_v27  ;;  %v367_v24 = vmul.f32 %v1853_v42, %v2127_v19  ;;  %v2173_v27 = vadd.f32 %v348_v56, %v1840_v39  ;;  %v2252_v56 = vld [vmem:[%s1734_s19 + $0x82] sm:$0xff] }
  0x33   : > { %3624 = vst [vmem:[#allocation60_spill] sm:$0xff] %v2106_v3  ;;  %3625 = vst [vmem:[#allocation61_spill] sm:$0xff] %v2109_v18  ;;  %v358_v3 = vmul.f32 %v1853_v42, %v2073_v11  ;;  %v363_v11 = vmul.f32 %v1853_v42, %v2097_v23  ;;  %v2176_v50 = vadd.f32 %v349_v58, %v1844_v40  ;;  %v401_v42 = vld [vmem:[%s1734_s19 + $0x2] sm:$0xff]  ;;  %v2225_v58 = vld [vmem:[%s1734_s19 + $0x4a] sm:$0xff] }
  0x34   : > { %3626 = vst [vmem:[#allocation62_spill] sm:$0xff] %v2112_v15  ;;  %3627 = vst [vmem:[#allocation63_spill] sm:$0xff] %v2115_v22  ;;  %v2167_v15 = vadd.f32 %v346_v21, %v1820_v33  ;;  %v2170_v22 = vadd.f32 %v347_v52, %v1824_v34  ;;  %v2186_v21 = vld [vmem:[%s3477_s1 + $0x2] ss:$0 sm:$0xff]  ;;  %v2189_v33 = vadd.f32 %v351_v63, %v1869_v47  ;;  %v2210_v47 = vld [vmem:[%s1734_s19 + $0x3a] sm:$0xff] }
  0x35   : > { %3628 = vst [vmem:[#allocation64_spill] sm:$0xff] %v2127_v19  ;;  %3629 = vst [vmem:[#allocation65_spill] sm:$0xff] %v2130_v45  ;;  %v2179_v19 = vadd.f32 %v350_v46, %v1848_v41  ;;  %v2192_v34 = vadd.f32 %v352_v2, %v1873_v48  ;;  %v2195_v39 = vadd.f32 %v353_v0, %v1877_v49  ;;  %v2201_v41 = vld [vmem:[%s1734_s19 + $0x1a] sm:$0xff]  ;;  %v2207_v46 = vld [vmem:[%s1734_s19 + $0x32] sm:$0xff] }
  0x36   : > { %v2198_v40 = vadd.f32 %v354_v4, %v1890_v53  ;;  %3630 = vst [vmem:[#allocation66_spill] sm:$0xff] %v2201_v41  ;;  %3631 = vst [vmem:[#allocation67_spill] sm:$0xff] %v2204_v43  ;;  %v2213_v48 = vadd.f32 %v355_v14, %v1894_v54  ;;  %v2216_v49 = vadd.f32 %v356_v12, %v1898_v55  ;;  %v2228_v2 = vld [vmem:[%s1734_s19 + $0x52] sm:$0xff]  ;;  %v2231_v4 = vld [vmem:[%s1734_s19 + $0x62] sm:$0xff] }
  0x37   : > { %3632 = vst [vmem:[#allocation68_spill] sm:$0xff] %v2207_v46  ;;  %3633 = vst [vmem:[#allocation69_spill] sm:$0xff] %v2210_v47  ;;  %v2219_v52 = vadd.f32 %v357_v38, %v1912_v60  ;;  %v2222_v53 = vadd.f32 %v358_v3, %v1916_v61  ;;  %v2234_v54 = vadd.f32 %v359_v13, %v1920_v62  ;;  %v2246_v60 = vld [vmem:[%s1734_s19 + $0x6a] sm:$0xff]  ;;  %v2249_v61 = vld [vmem:[%s1734_s19 + $0x7a] sm:$0xff] }
  0x38   : > { %3635 = vst [vmem:[#allocation71_spill] sm:$0xff] %v2225_v58  ;;  %3636 = vst [vmem:[#allocation72_spill] sm:$0xff] %v2228_v2  ;;  %v2237_v55 = vadd.f32 %v360_v16, %v1934_v5  ;;  %v2240_v38 = vadd.f32 %v361_v20, %v1938_v6  ;;  %v2243_v3 = vadd.f32 %v362_v44, %v1942_v7  ;;  %v2267_v12 = vld [vmem:[%s1734_s19 + $0x92] sm:$0xff]  ;;  %v2270_v63 = vld [vmem:[%s1734_s19 + $0x9a] sm:$0xff] }
  0x39   : > { %3634 = vst [vmem:[#allocation70_spill] sm:$0xff] %v2222_v53  ;;  %3637 = vst [vmem:[#allocation73_spill] sm:$0xff] %v2231_v4  ;;  %v2255_v62 = vadd.f32 %v363_v11, %v1952_v10  ;;  %v2258_v5 = vadd.f32 %v364_v29, %v1956_v1  ;;  %v2261_v6 = vadd.f32 %v365_v25, %v1974_v35  ;;  %v2273_v0 = vld [vmem:[%s1734_s19 + $0xaa] sm:$0xff]  ;;  %v2282_v35 = vld [vmem:[%s1734_s19 + $0xb2] sm:$0xff] }
  0x3a   : > { %3638 = vst [vmem:[#allocation74_spill] sm:$0xff] %v2234_v54  ;;  %3639 = vst [vmem:[#allocation75_spill] sm:$0xff] %v2237_v55  ;;  %v2264_v7 = vadd.f32 %v366_v8, %v1978_v28  ;;  %v2276_v10 = vadd.f32 %v367_v24, %v1996_v9  ;;  %v2279_v29 = vadd.f32 %v368_v26, %v2000_v59  ;;  %v2285_v1 = vld [vmem:[%s1734_s19 + $0xc2] sm:$0xff]  ;;  %v2288_v28 = vld [vmem:[%s1734_s19 + $0xca] sm:$0xff] }
  0x3b   : > { %3640 = vst [vmem:[#allocation76_spill] sm:$0xff] %v2240_v38  ;;  %3641 = vst [vmem:[#allocation77_spill] sm:$0xff] %v2243_v3  ;;  %v438_v16 = vmul.f32 %v2186_v21, %v401_v42  ;;  %v439_v13 = vmul.f32 %v2186_v21, %v402_v32  ;;  %v2293_v11 = vld [vmem:[%s1734_s19 + $0xda] sm:$0xff]  ;;  %v2296_v24 = vld [vmem:[%s1734_s19 + $0xe2] sm:$0xff]  ;;  %v440_v59 = vmul.f32 %v2186_v21, %v2201_v41 }
  0x3c   : > { %3642 = vst [vmem:[#allocation78_spill] sm:$0xff] %v2246_v60  ;;  %3643 = vst [vmem:[#allocation79_spill] sm:$0xff] %v2249_v61  ;;  %v2299_v9 = vld [vmem:[%s1734_s19 + $0xf2] sm:$0xff]  ;;  %v441_v14 = vmul.f32 %v2186_v21, %v2204_v43  ;;  %v442_v20 = vmul.f32 %v2186_v21, %v2207_v46  ;;  %v443_v44 = vmul.f32 %v2186_v21, %v2210_v47  ;;  %v2310_v25 = vld [vmem:[%s1734_s19 + $0xfa] sm:$0xff] }
  0x3d   : > { %3644 = vst [vmem:[#allocation80_spill] sm:$0xff] %v2252_v56  ;;  %3645 = vst [vmem:[#allocation81_spill] sm:$0xff] %v2255_v62  ;;  %v2313_v8 = vld [vmem:[%s1734_s19 + $0x10a] sm:$0xff]  ;;  %v2316_v26 = vld [vmem:[%s1734_s19 + $0x112] sm:$0xff]  ;;  %v444_v42 = vmul.f32 %v2186_v21, %v2225_v58  ;;  %v445_v32 = vmul.f32 %v2186_v21, %v2228_v2  ;;  %v446_v46 = vmul.f32 %v2186_v21, %v2231_v4 }
  0x3e   : > { %3646 = vst [vmem:[#allocation82_spill] sm:$0xff] %v2258_v5  ;;  %3647 = vst [vmem:[#allocation83_spill] sm:$0xff] %v2261_v6  ;;  %v447_v47 = vmul.f32 %v2186_v21, %v2246_v60  ;;  %v2327_v43 = vld [vmem:[%s1734_s19 + $0x122] sm:$0xff]  ;;  %v2330_v41 = vld [vmem:[%s1734_s19 + $0x12a] sm:$0xff]  ;;  %v448_v58 = vmul.f32 %v2186_v21, %v2249_v61  ;;  %v449_v2 = vmul.f32 %v2186_v21, %v2252_v56 }
  0x3f   : > { %3648 = vst [vmem:[#allocation84_spill] sm:$0xff] %v2264_v7  ;;  %3649 = vst [vmem:[#allocation85_spill] sm:$0xff] %v2267_v12  ;;  %v2333_v45 = vld [vmem:[%s1734_s19 + $0x13a] sm:$0xff]  ;;  %v450_v4 = vmul.f32 %v2186_v21, %v2267_v12  ;;  %v451_v18 = vmul.f32 %v2186_v21, %v2270_v63  ;;  %v2344_v60 = vld [vmem:[%s1734_s19 + $0x142] sm:$0xff]  ;;  %v453_v61 = vmul.f32 %v2186_v21, %v2282_v35 }
  0x40   : > { %3650 = vst [vmem:[#allocation86_spill] sm:$0xff] %v2270_v63  ;;  %3651 = vst [vmem:[#allocation87_spill] sm:$0xff] %v2273_v0  ;;  %v2347_v23 = vld [vmem:[%s1734_s19 + $0x152] sm:$0xff]  ;;  %v454_v56 = vmul.f32 %v2186_v21, %v2285_v1  ;;  %v455_v12 = vmul.f32 %v2186_v21, %v2288_v28  ;;  %v456_v7 = vmul.f32 %v2186_v21, %v2293_v11 }
  0x41   : > { %3652 = vst [vmem:[#allocation88_spill] sm:$0xff] %v2276_v10  ;;  %3653 = vst [vmem:[#allocation89_spill] sm:$0xff] %v2279_v29  ;;  %v452_v29 = vmul.f32 %v2186_v21, %v2273_v0  ;;  %v2361_v10 = vld [vmem:[%s1734_s19 + $0x16a] sm:$0xff]  ;;  %v2364_v63 = vld [vmem:[%s1734_s19 + $0x172] sm:$0xff]  ;;  %v457_v6 = vmul.f32 %v2186_v21, %v2296_v24  ;;  %v458_v0 = vmul.f32 %v2186_v21, %v2299_v9 }
  0x42   : > { %3654 = vst [vmem:[#allocation90_spill] sm:$0xff] %v2282_v35  ;;  %3655 = vst [vmem:[#allocation91_spill] sm:$0xff] %v2285_v1  ;;  %v459_v35 = vmul.f32 %v2186_v21, %v2310_v25  ;;  %v460_v1 = vmul.f32 %v2186_v21, %v2313_v8  ;;  %v462_v5 = vmul.f32 %v2186_v21, %v2327_v43  ;;  %v3671_v62 = vld [vmem:[#allocation52_spill] sm:$0xff] }
  0x43   : > { %3656 = vst [vmem:[#allocation92_spill] sm:$0xff] %v2288_v28  ;;  %3657 = vst [vmem:[#allocation93_spill] sm:$0xff] %v2293_v11  ;;  %v461_v28 = vmul.f32 %v2186_v21, %v2316_v26  ;;  %v463_v11 = vmul.f32 %v2186_v21, %v2330_v41  ;;  %v471_v3 = vadd.f32 %v439_v13, %v3671_v62  ;;  %v3673_v55 = vld [vmem:[#allocation60_spill] sm:$0xff] }
  0x44   : > { %3658 = vst [vmem:[#allocation94_spill] sm:$0xff] %v2296_v24  ;;  %3659 = vst [vmem:[#allocation95_spill] sm:$0xff] %v2299_v9  ;;  %v464_v24 = vmul.f32 %v2186_v21, %v2333_v45  ;;  %v465_v9 = vmul.f32 %v2186_v21, %v2344_v60  ;;  %v474_v54 = vadd.f32 %v442_v20, %v2124_v37 }
  0x45   : > { %3660 = vst [vmem:[#allocation96_spill] sm:$0xff] %v2310_v25  ;;  %3661 = vst [vmem:[#allocation97_spill] sm:$0xff] %v2313_v8  ;;  %v466_v25 = vmul.f32 %v2186_v21, %v2347_v23  ;;  %v467_v8 = vmul.f32 %v2186_v21, %v2350_v30  ;;  %v477_v53 = vadd.f32 %v445_v32, %v2157_v51  ;;  %v3696_v32 = vld [vmem:[#allocation14_spill] sm:$0xff] }
  0x46   : > { %3662 = vst [vmem:[#allocation98_spill] sm:$0xff] %v2316_v26  ;;  %3663 = vst [vmem:[#allocation99_spill] sm:$0xff] %v2327_v43  ;;  %v468_v26 = vmul.f32 %v2186_v21, %v2361_v10  ;;  %v469_v43 = vmul.f32 %v2186_v21, %v2364_v63  ;;  %v479_v21 = vadd.f32 %v447_v47, %v2167_v15  ;;  %v3675_v47 = vld [vmem:[#allocation74_spill] sm:$0xff] }
  0x47   : > { %3664 = vst [vmem:[#allocation100_spill] sm:$0xff] %v2330_v41  ;;  %3665 = vst [vmem:[#allocation101_spill] sm:$0xff] %v2333_v45  ;;  %v470_v41 = vadd.f32 %v438_v16, %v2052_v17  ;;  %v3672_v45 = vld [vmem:[#allocation56_spill] sm:$0xff]  ;;  %v480_v17 = vadd.f32 %v448_v58, %v2170_v22  ;;  %v481_v62 = vadd.f32 %v449_v2, %v2173_v27  ;;  %v3676_v58 = vld [vmem:[#allocation75_spill] sm:$0xff] }
  0x48   : > { %3666 = vst [vmem:[#allocation102_spill] sm:$0xff] %v2344_v60  ;;  %3667 = vst [vmem:[#allocation103_spill] sm:$0xff] %v2347_v23  ;;  %v472_v38 = vadd.f32 %v440_v59, %v3672_v45  ;;  %v473_v60 = vadd.f32 %v441_v14, %v3673_v55  ;;  %v475_v23 = vadd.f32 %v443_v44, %v2139_v36  ;;  %v3679_v2 = vld [vmem:[#allocation81_spill] sm:$0xff]  ;;  %v3688_v16 = vld [vmem:[#allocation6_spill] sm:$0xff] }
  0x49   : > { %3668 = vst [vmem:[#allocation104_spill] sm:$0xff] %v2350_v30  ;;  %3669 = vst [vmem:[#allocation105_spill] sm:$0xff] %v2361_v10  ;;  %v476_v30 = vadd.f32 %v444_v42, %v2148_v31  ;;  %v478_v10 = vadd.f32 %v446_v46, %v2164_v57  ;;  %v482_v45 = vadd.f32 %v450_v4, %v2176_v50  ;;  %v3674_v46 = vld [vmem:[#allocation70_spill] sm:$0xff] }
  0x4a   : > { %3670 = vst [vmem:[#allocation106_spill] sm:$0xff] %v2364_v63  ;;  %v483_v55 = vadd.f32 %v451_v18, %v2179_v19  ;;  %v484_v37 = vadd.f32 %v452_v29, %v2189_v33  ;;  %v485_v36 = vadd.f32 %v453_v61, %v2192_v34  ;;  %v486_v31 = vadd.f32 %v454_v56, %v2195_v39  ;;  %v3677_v19 = vld [vmem:[#allocation76_spill] sm:$0xff]  ;;  %v3678_v34 = vld [vmem:[#allocation77_spill] sm:$0xff]  ;;  %v3680_v4 = vld [vmem:[#allocation82_spill] sm:$0xff] }
  0x4b   : > { %v487_v51 = vadd.f32 %v455_v12, %v2198_v40  ;;  %v488_v57 = vadd.f32 %v456_v7, %v2213_v48  ;;  %v489_v15 = vadd.f32 %v457_v6, %v2216_v49  ;;  %v490_v22 = vadd.f32 %v458_v0, %v2219_v52  ;;  %v3681_v61 = vld [vmem:[#allocation83_spill] sm:$0xff]  ;;  %v3682_v56 = vld [vmem:[#allocation84_spill] sm:$0xff]  ;;  %v3684_v12 = vld [vmem:[#allocation89_spill] sm:$0xff] }
  0x4c   : > { %v491_v27 = vadd.f32 %v459_v35, %v3674_v46  ;;  %v492_v50 = vadd.f32 %v460_v1, %v3675_v47  ;;  %v493_v18 = vadd.f32 %v461_v28, %v3676_v58  ;;  %v494_v33 = vadd.f32 %v462_v5, %v3677_v19  ;;  %v3683_v6 = vld [vmem:[#allocation88_spill] sm:$0xff]  ;;  %v3686_v35 = vld [vmem:[#allocation2_spill] sm:$0xff]  ;;  %v3687_v28 = vld [vmem:[#allocation5_spill] sm:$0xff] }
  0x4d   : > { %v495_v39 = vadd.f32 %v463_v11, %v3678_v34  ;;  %v496_v40 = vadd.f32 %v464_v24, %v3679_v2  ;;  %v497_v48 = vadd.f32 %v465_v9, %v3680_v4  ;;  %v498_v49 = vadd.f32 %v466_v25, %v3681_v61  ;;  %v3685_v29 = vld [vmem:[#allocation4_spill] sm:$0xff]  ;;  %v3690_v9 = vld [vmem:[#allocation9_spill] sm:$0xff]  ;;  %v3691_v14 = vld [vmem:[#allocation10_spill] sm:$0xff] }
  0x4e   : > { %v499_v52 = vadd.f32 %v467_v8, %v3682_v56  ;;  %v500_v7 = vadd.f32 %v468_v26, %v3683_v6  ;;  %v501_v0 = vadd.f32 %v469_v43, %v3684_v12  ;;  %v552_v1 = vmul.f32 %v3686_v35, %v3685_v29  ;;  %v3689_v11 = vld [vmem:[#allocation8_spill] sm:$0xff]  ;;  %v2439_v44 = vld [vmem:[%s1734_s19 + $0x180] sm:$0xff]  ;;  %v2442_v43 = vld [vmem:[%s1734_s19 + $0x188] sm:$0xff] }
  0x4f   : > { %v553_v5 = vmul.f32 %v3686_v35, %v3687_v28  ;;  %v554_v13 = vmul.f32 %v3686_v35, %v3688_v16  ;;  %v555_v24 = vmul.f32 %v3686_v35, %v3689_v11  ;;  %v556_v59 = vmul.f32 %v3686_v35, %v3690_v9  ;;  %3692 = vst [vmem:[#allocation52_spill] sm:$0xff] %v2439_v44  ;;  %v3694_v25 = vld [vmem:[#allocation12_spill] sm:$0xff]  ;;  %v3695_v26 = vld [vmem:[#allocation13_spill] sm:$0xff]  ;;  %v3699_v2 = vld [vmem:[#allocation18_spill] sm:$0xff] }
  0x50   : > { %v557_v20 = vmul.f32 %v3686_v35, %v3691_v14  ;;  %3693 = vst [vmem:[#allocation56_spill] sm:$0xff] %v2442_v43  ;;  %v558_v8 = vmul.f32 %v3686_v35, %v3694_v25  ;;  %v559_v42 = vmul.f32 %v3686_v35, %v3695_v26  ;;  %v560_v46 = vmul.f32 %v3686_v35, %v3696_v32  ;;  %v3697_v47 = vld [vmem:[#allocation16_spill] sm:$0xff]  ;;  %v3698_v19 = vld [vmem:[#allocation17_spill] sm:$0xff]  ;;  %v3702_v29 = vld [vmem:[#allocation23_spill] sm:$0xff] }
  0x51   : > { %v561_v58 = vmul.f32 %v3686_v35, %v3697_v47  ;;  %v562_v34 = vmul.f32 %v3686_v35, %v3698_v19  ;;  %v563_v4 = vmul.f32 %v3686_v35, %v3699_v2  ;;  %v3700_v61 = vld [vmem:[#allocation20_spill] sm:$0xff]  ;;  %v3701_v6 = vld [vmem:[#allocation21_spill] sm:$0xff]  ;;  %v566_v28 = vmul.f32 %v3686_v35, %v3702_v29  ;;  %v3704_v9 = vld [vmem:[#allocation26_spill] sm:$0xff] }
  0x52   : > { %v564_v56 = vmul.f32 %v3686_v35, %v3700_v61  ;;  %v565_v12 = vmul.f32 %v3686_v35, %v3701_v6  ;;  %v3703_v16 = vld [vmem:[#allocation24_spill] sm:$0xff]  ;;  %v568_v14 = vmul.f32 %v3686_v35, %v3704_v9  ;;  %v3705_v25 = vld [vmem:[#allocation27_spill] sm:$0xff]  ;;  %v570_v32 = vmul.f32 %v3686_v35, %v2439_v44 }
  0x53   : > { %v567_v11 = vmul.f32 %v3686_v35, %v3703_v16  ;;  %v569_v26 = vmul.f32 %v3686_v35, %v3705_v25  ;;  %v571_v47 = vmul.f32 %v3686_v35, %v2442_v43  ;;  %v3706_v19 = vld [vmem:[#allocation3_spill] sm:$0xff]  ;;  %v3713_v35 = vld [vmem:[#allocation22_spill] sm:$0xff] }
  0x54   : > { %v2473_v2 = vadd.f32 %v3706_v19, %v470_v41  ;;  %v3708_v61 = vld [vmem:[#allocation7_spill] sm:$0xff]  ;;  %v2488_v43 = vadd.f32 %v3713_v35, %v475_v23  ;;  %v3714_v19 = vld [vmem:[#allocation25_spill] sm:$0xff]  ;;  %v2508_v23 = vadd.f32 %v552_v1, %v482_v45  ;;  %v2510_v35 = vadd.f32 %v553_v5, %v483_v55  ;;  %v1505_v45 = vld [vmem:[%s3477_s1 + $0x4] ss:$0 sm:$0xff] }
  0x55   : > { %v2476_v6 = vadd.f32 %v3708_v61, %v471_v3  ;;  %v3710_v29 = vld [vmem:[#allocation11_spill] sm:$0xff]  ;;  %v2491_v41 = vadd.f32 %v3714_v19, %v476_v30  ;;  %v3716_v61 = vld [vmem:[#allocation33_spill] sm:$0xff]  ;;  %v2512_v30 = vadd.f32 %v554_v13, %v484_v37  ;;  %v2522_v19 = vadd.f32 %v559_v42, %v489_v15 }
  0x56   : > { %3707 = vst [vmem:[#allocation60_spill] sm:$0xff] %v2473_v2  ;;  %v2479_v16 = vadd.f32 %v3710_v29, %v472_v38  ;;  %v3711_v63 = vld [vmem:[#allocation15_spill] sm:$0xff]  ;;  %v3715_v2 = vld [vmem:[#allocation29_spill] sm:$0xff]  ;;  %v2531_v55 = vadd.f32 %v562_v34, %v492_v50  ;;  %v2533_v37 = vadd.f32 %v563_v4, %v493_v18  ;;  %v2543_v15 = vadd.f32 %v568_v14, %v498_v49  ;;  %v3731_v50 = vld [vmem:[#allocation28_spill] sm:$0xff] }
  0x57   : > { %3709 = vst [vmem:[#allocation70_spill] sm:$0xff] %v2476_v6  ;;  %v2482_v9 = vadd.f32 %v3711_v63, %v473_v60  ;;  %v3712_v25 = vld [vmem:[#allocation19_spill] sm:$0xff]  ;;  %v2494_v3 = vadd.f32 %v3715_v2, %v477_v53  ;;  %v2497_v6 = vadd.f32 %v3716_v61, %v478_v10  ;;  %v3717_v38 = vld [vmem:[#allocation37_spill] sm:$0xff]  ;;  %v2514_v53 = vadd.f32 %v555_v24, %v485_v36  ;;  %v3732_v18 = vld [vmem:[#allocation30_spill] sm:$0xff] }
  0x58   : > { %v2485_v44 = vadd.f32 %v3712_v25, %v474_v54  ;;  %v2500_v29 = vadd.f32 %v3717_v38, %v479_v21  ;;  %v3718_v60 = vld [vmem:[#allocation41_spill] sm:$0xff]  ;;  %v2516_v2 = vadd.f32 %v556_v59, %v486_v31  ;;  %v2518_v10 = vadd.f32 %v557_v20, %v487_v51  ;;  %3721 = vst [vmem:[#allocation75_spill] sm:$0xff] %v2531_v55  ;;  %v3735_v59 = vld [vmem:[#allocation34_spill] sm:$0xff]  ;;  %v3736_v49 = vld [vmem:[#allocation35_spill] sm:$0xff] }
  0x59   : > { %v2503_v63 = vadd.f32 %v3718_v60, %v480_v17  ;;  %v3719_v54 = vld [vmem:[#allocation45_spill] sm:$0xff]  ;;  %v2520_v21 = vadd.f32 %v558_v8, %v488_v57  ;;  %v2524_v17 = vadd.f32 %v560_v46, %v490_v22  ;;  %3722 = vst [vmem:[#allocation76_spill] sm:$0xff] %v2533_v37  ;;  %v2535_v36 = vadd.f32 %v564_v56, %v494_v33  ;;  %v3733_v33 = vld [vmem:[#allocation31_spill] sm:$0xff]  ;;  %v3741_v4 = vld [vmem:[#allocation42_spill] sm:$0xff] }
  0x5a   : > { %v2506_v25 = vadd.f32 %v3719_v54, %v481_v62  ;;  %v2526_v62 = vadd.f32 %v561_v58, %v491_v27  ;;  %v2537_v31 = vadd.f32 %v565_v12, %v495_v39  ;;  %v2539_v51 = vadd.f32 %v566_v28, %v496_v40  ;;  %3727 = vst [vmem:[#allocation84_spill] sm:$0xff] %v2543_v15  ;;  %v3734_v39 = vld [vmem:[#allocation32_spill] sm:$0xff]  ;;  %v3742_v12 = vld [vmem:[#allocation43_spill] sm:$0xff]  ;;  %v3747_v54 = vld [vmem:[#allocation49_spill] sm:$0xff] }
  0x5b   : > { %3723 = vst [vmem:[#allocation77_spill] sm:$0xff] %v2535_v36  ;;  %v2541_v57 = vadd.f32 %v567_v11, %v497_v48  ;;  %v2545_v22 = vadd.f32 %v569_v26, %v499_v52  ;;  %v2547_v27 = vadd.f32 %v570_v32, %v500_v7  ;;  %v2549_v1 = vadd.f32 %v571_v47, %v501_v0  ;;  %v3737_v52 = vld [vmem:[#allocation36_spill] sm:$0xff]  ;;  %v3738_v7 = vld [vmem:[#allocation38_spill] sm:$0xff]  ;;  %v3739_v0 = vld [vmem:[#allocation39_spill] sm:$0xff] }
  0x5c   : > { %3720 = vst [vmem:[#allocation74_spill] sm:$0xff] %v2526_v62  ;;  %3724 = vst [vmem:[#allocation81_spill] sm:$0xff] %v2537_v31  ;;  %v641_v5 = vmul.f32 %v1505_v45, %v3731_v50  ;;  %v642_v13 = vmul.f32 %v1505_v45, %v3732_v18  ;;  %v643_v24 = vmul.f32 %v1505_v45, %v3733_v33  ;;  %v3740_v58 = vld [vmem:[#allocation40_spill] sm:$0xff]  ;;  %v3744_v26 = vld [vmem:[#allocation46_spill] sm:$0xff] }
  0x5d   : > { %3725 = vst [vmem:[#allocation82_spill] sm:$0xff] %v2539_v51  ;;  %3726 = vst [vmem:[#allocation83_spill] sm:$0xff] %v2541_v57  ;;  %v644_v40 = vmul.f32 %v1505_v45, %v3734_v39  ;;  %v645_v48 = vmul.f32 %v1505_v45, %v3735_v59  ;;  %v646_v20 = vmul.f32 %v1505_v45, %v3736_v49  ;;  %v3743_v11 = vld [vmem:[#allocation44_spill] sm:$0xff]  ;;  %v3745_v47 = vld [vmem:[#allocation47_spill] sm:$0xff] }
  0x5e   : > { %3728 = vst [vmem:[#allocation88_spill] sm:$0xff] %v2545_v22  ;;  %3729 = vst [vmem:[#allocation89_spill] sm:$0xff] %v2547_v27  ;;  %v647_v8 = vmul.f32 %v1505_v45, %v3737_v52  ;;  %v648_v42 = vmul.f32 %v1505_v45, %v3738_v7  ;;  %v649_v46 = vmul.f32 %v1505_v45, %v3739_v0  ;;  %v3746_v38 = vld [vmem:[#allocation48_spill] sm:$0xff]  ;;  %v3748_v18 = vld [vmem:[#allocation50_spill] sm:$0xff] }
  0x5f   : > { %3730 = vst [vmem:[#allocation4_spill] sm:$0xff] %v2549_v1  ;;  %v650_v34 = vmul.f32 %v1505_v45, %v3740_v58  ;;  %v651_v56 = vmul.f32 %v1505_v45, %v3741_v4  ;;  %v652_v28 = vmul.f32 %v1505_v45, %v3742_v12  ;;  %v653_v14 = vmul.f32 %v1505_v45, %v3743_v11  ;;  %v2570_v39 = vld [vmem:[%s1734_s19 + $0x181] sm:$0xff]  ;;  %v2573_v59 = vld [vmem:[%s1734_s19 + $0x189] sm:$0xff]  ;;  %v3752_v7 = vld [vmem:[#allocation53_spill] sm:$0xff] }
  0x60   : > { %v654_v32 = vmul.f32 %v1505_v45, %v3744_v26  ;;  %v655_v61 = vmul.f32 %v1505_v45, %v3745_v47  ;;  %v656_v60 = vmul.f32 %v1505_v45, %v3746_v38  ;;  %v657_v50 = vmul.f32 %v1505_v45, %v3747_v54  ;;  %3749 = vst [vmem:[#allocation2_spill] sm:$0xff] %v2570_v39  ;;  %v3751_v49 = vld [vmem:[#allocation51_spill] sm:$0xff]  ;;  %v3753_v58 = vld [vmem:[#allocation54_spill] sm:$0xff]  ;;  %v3755_v26 = vld [vmem:[#allocation57_spill] sm:$0xff] }
  0x61   : > { %v658_v33 = vmul.f32 %v1505_v45, %v3748_v18  ;;  %3750 = vst [vmem:[#allocation5_spill] sm:$0xff] %v2573_v59  ;;  %v659_v52 = vmul.f32 %v1505_v45, %v3751_v49  ;;  %v660_v0 = vmul.f32 %v1505_v45, %v3752_v7  ;;  %v661_v4 = vmul.f32 %v1505_v45, %v3753_v58  ;;  %v3754_v12 = vld [vmem:[#allocation55_spill] sm:$0xff]  ;;  %v3756_v1 = vld [vmem:[#allocation58_spill] sm:$0xff]  ;;  %v3758_v22 = vld [vmem:[#allocation61_spill] sm:$0xff] }
  0x62   : > { %v662_v11 = vmul.f32 %v1505_v45, %v3754_v12  ;;  %v663_v47 = vmul.f32 %v1505_v45, %v3755_v26  ;;  %v664_v38 = vmul.f32 %v1505_v45, %v3756_v1  ;;  %v3757_v27 = vld [vmem:[#allocation59_spill] sm:$0xff]  ;;  %v666_v18 = vmul.f32 %v1505_v45, %v3758_v22  ;;  %v3759_v15 = vld [vmem:[#allocation62_spill] sm:$0xff]  ;;  %v3761_v36 = vld [vmem:[#allocation64_spill] sm:$0xff] }
  0x63   : > { %v665_v54 = vmul.f32 %v1505_v45, %v3757_v27  ;;  %v667_v57 = vmul.f32 %v1505_v45, %v3759_v15  ;;  %v3760_v51 = vld [vmem:[#allocation63_spill] sm:$0xff]  ;;  %v669_v49 = vmul.f32 %v1505_v45, %v3761_v36  ;;  %v3762_v37 = vld [vmem:[#allocation65_spill] sm:$0xff]  ;;  %v671_v58 = vmul.f32 %v1505_v45, %v2570_v39  ;;  %v3763_v55 = vld [vmem:[#allocation60_spill] sm:$0xff] }
  0x64   : > { %v668_v31 = vmul.f32 %v1505_v45, %v3760_v51  ;;  %v670_v7 = vmul.f32 %v1505_v45, %v3762_v37  ;;  %v672_v12 = vmul.f32 %v1505_v45, %v2573_v59  ;;  %v2590_v26 = vadd.f32 %v641_v5, %v3763_v55  ;;  %v3764_v1 = vld [vmem:[#allocation70_spill] sm:$0xff]  ;;  %v3808_v59 = vld [vmem:[#allocation96_spill] sm:$0xff]  ;;  %v3809_v39 = vld [vmem:[#allocation97_spill] sm:$0xff] }
  0x65   : > { %v2593_v62 = vadd.f32 %v642_v13, %v3764_v1  ;;  %v2596_v22 = vadd.f32 %v643_v24, %v2479_v16  ;;  %v2599_v15 = vadd.f32 %v644_v40, %v2482_v9  ;;  %v2602_v36 = vadd.f32 %v645_v48, %v2485_v44 }
  0x66   : > { %v2605_v37 = vadd.f32 %v646_v20, %v2488_v43  ;;  %v2608_v45 = vadd.f32 %v647_v8, %v2491_v41  ;;  %v2611_v55 = vadd.f32 %v648_v42, %v2494_v3  ;;  %v2614_v51 = vadd.f32 %v649_v46, %v2497_v6  ;;  %v3777_v20 = vld [vmem:[#allocation83_spill] sm:$0xff]  ;;  %v3779_v42 = vld [vmem:[#allocation84_spill] sm:$0xff] }
  0x67   : > { %v2617_v16 = vadd.f32 %v650_v34, %v2500_v29  ;;  %v2620_v9 = vadd.f32 %v651_v56, %v2503_v63  ;;  %v2623_v44 = vadd.f32 %v652_v28, %v2506_v25  ;;  %v2626_v43 = vadd.f32 %v653_v14, %v2508_v23  ;;  %v3781_v34 = vld [vmem:[#allocation88_spill] sm:$0xff]  ;;  %v3783_v28 = vld [vmem:[#allocation89_spill] sm:$0xff] }
  0x68   : > { %v2629_v41 = vadd.f32 %v654_v32, %v2510_v35  ;;  %v2632_v3 = vadd.f32 %v655_v61, %v2512_v30  ;;  %v2635_v6 = vadd.f32 %v656_v60, %v2514_v53  ;;  %v2638_v29 = vadd.f32 %v657_v50, %v2516_v2  ;;  %v3765_v30 = vld [vmem:[#allocation74_spill] sm:$0xff]  ;;  %v3767_v2 = vld [vmem:[#allocation75_spill] sm:$0xff]  ;;  %v3785_v32 = vld [vmem:[#allocation4_spill] sm:$0xff] }
  0x69   : > { %v2641_v63 = vadd.f32 %v658_v33, %v2518_v10  ;;  %v2644_v25 = vadd.f32 %v659_v52, %v2520_v21  ;;  %v2647_v23 = vadd.f32 %v660_v0, %v2522_v19  ;;  %v2650_v35 = vadd.f32 %v661_v4, %v2524_v17  ;;  %v1538_v53 = vld [vmem:[%s3477_s1 + $0x5] ss:$0 sm:$0xff]  ;;  %v3769_v10 = vld [vmem:[#allocation76_spill] sm:$0xff]  ;;  %v3771_v21 = vld [vmem:[#allocation77_spill] sm:$0xff] }
  0x6a   : > { %v2653_v27 = vadd.f32 %v662_v11, %v3765_v30  ;;  %v2659_v5 = vadd.f32 %v663_v47, %v3767_v2  ;;  %v2662_v13 = vadd.f32 %v664_v38, %v3769_v10  ;;  %v2665_v24 = vadd.f32 %v665_v54, %v3771_v21  ;;  %v3773_v19 = vld [vmem:[#allocation81_spill] sm:$0xff]  ;;  %v3775_v17 = vld [vmem:[#allocation82_spill] sm:$0xff]  ;;  %v3788_v33 = vld [vmem:[#allocation67_spill] sm:$0xff] }
  0x6b   : > { %v2668_v40 = vadd.f32 %v666_v18, %v3773_v19  ;;  %v2671_v48 = vadd.f32 %v667_v57, %v3775_v17  ;;  %v2674_v8 = vadd.f32 %v668_v31, %v3777_v20  ;;  %v2677_v46 = vadd.f32 %v669_v49, %v3779_v42  ;;  %v3787_v60 = vld [vmem:[#allocation66_spill] sm:$0xff]  ;;  %v3789_v52 = vld [vmem:[#allocation68_spill] sm:$0xff]  ;;  %v3790_v31 = vld [vmem:[#allocation69_spill] sm:$0xff] }
  0x6c   : > { %3766 = vst [vmem:[#allocation6_spill] sm:$0xff] %v2653_v27  ;;  %3768 = vst [vmem:[#allocation8_spill] sm:$0xff] %v2659_v5  ;;  %v2680_v56 = vadd.f32 %v670_v7, %v3781_v34  ;;  %v2683_v14 = vadd.f32 %v671_v58, %v3783_v28  ;;  %v2686_v61 = vadd.f32 %v672_v12, %v3785_v32  ;;  %v3791_v11 = vld [vmem:[#allocation71_spill] sm:$0xff]  ;;  %v3792_v38 = vld [vmem:[#allocation72_spill] sm:$0xff] }
  0x6d   : > { %3770 = vst [vmem:[#allocation9_spill] sm:$0xff] %v2662_v13  ;;  %3772 = vst [vmem:[#allocation10_spill] sm:$0xff] %v2665_v24  ;;  %v742_v50 = vmul.f32 %v1538_v53, %v3787_v60  ;;  %v743_v57 = vmul.f32 %v1538_v53, %v3788_v33  ;;  %v744_v0 = vmul.f32 %v1538_v53, %v3789_v52  ;;  %v3793_v18 = vld [vmem:[#allocation73_spill] sm:$0xff]  ;;  %v3794_v7 = vld [vmem:[#allocation78_spill] sm:$0xff] }
  0x6e   : > { %3774 = vst [vmem:[#allocation12_spill] sm:$0xff] %v2668_v40  ;;  %3776 = vst [vmem:[#allocation13_spill] sm:$0xff] %v2671_v48  ;;  %v745_v4 = vmul.f32 %v1538_v53, %v3790_v31  ;;  %v746_v47 = vmul.f32 %v1538_v53, %v3791_v11  ;;  %v747_v54 = vmul.f32 %v1538_v53, %v3792_v38  ;;  %v3795_v12 = vld [vmem:[#allocation79_spill] sm:$0xff]  ;;  %v3796_v30 = vld [vmem:[#allocation80_spill] sm:$0xff] }
  0x6f   : > { %3778 = vst [vmem:[#allocation14_spill] sm:$0xff] %v2674_v8  ;;  %3780 = vst [vmem:[#allocation16_spill] sm:$0xff] %v2677_v46  ;;  %v748_v49 = vmul.f32 %v1538_v53, %v3793_v18  ;;  %v749_v58 = vmul.f32 %v1538_v53, %v3794_v7  ;;  %v750_v1 = vmul.f32 %v1538_v53, %v3795_v12  ;;  %v3797_v10 = vld [vmem:[#allocation85_spill] sm:$0xff]  ;;  %v3798_v19 = vld [vmem:[#allocation86_spill] sm:$0xff] }
  0x70   : > { %3782 = vst [vmem:[#allocation17_spill] sm:$0xff] %v2680_v56  ;;  %3784 = vst [vmem:[#allocation18_spill] sm:$0xff] %v2683_v14  ;;  %v751_v2 = vmul.f32 %v1538_v53, %v3796_v30  ;;  %v752_v21 = vmul.f32 %v1538_v53, %v3797_v10  ;;  %v753_v17 = vmul.f32 %v1538_v53, %v3798_v19  ;;  %v3799_v20 = vld [vmem:[#allocation87_spill] sm:$0xff]  ;;  %v3800_v34 = vld [vmem:[#allocation90_spill] sm:$0xff] }
  0x71   : > { %3786 = vst [vmem:[#allocation20_spill] sm:$0xff] %v2686_v61  ;;  %v754_v42 = vmul.f32 %v1538_v53, %v3799_v20  ;;  %v755_v28 = vmul.f32 %v1538_v53, %v3800_v34  ;;  %v3801_v32 = vld [vmem:[#allocation91_spill] sm:$0xff]  ;;  %v3802_v33 = vld [vmem:[#allocation92_spill] sm:$0xff]  ;;  %v3803_v31 = vld [vmem:[#allocation93_spill] sm:$0xff]  ;;  %v761_v19 = vmul.f32 %v1538_v53, %v3808_v59  ;;  %v762_v20 = vmul.f32 %v1538_v53, %v3809_v39 }
  0x72   : > { %v756_v60 = vmul.f32 %v1538_v53, %v3801_v32  ;;  %v757_v52 = vmul.f32 %v1538_v53, %v3802_v33  ;;  %v758_v11 = vmul.f32 %v1538_v53, %v3803_v31  ;;  %v3804_v38 = vld [vmem:[#allocation94_spill] sm:$0xff]  ;;  %v2710_v12 = vld [vmem:[%s1734_s19 + $0x18a] sm:$0xff]  ;;  %v3813_v46 = vld [vmem:[#allocation101_spill] sm:$0xff] }
  0x73   : > { %v759_v18 = vmul.f32 %v1538_v53, %v3804_v38  ;;  %v2707_v7 = vld [vmem:[%s1734_s19 + $0x182] sm:$0xff]  ;;  %3806 = vst [vmem:[#allocation23_spill] sm:$0xff] %v2710_v12  ;;  %v3812_v56 = vld [vmem:[#allocation100_spill] sm:$0xff]  ;;  %v766_v31 = vmul.f32 %v1538_v53, %v3813_v46  ;;  %v3817_v5 = vld [vmem:[#allocation105_spill] sm:$0xff]  ;;  %v2730_v46 = vadd.f32 %v743_v57, %v2593_v62  ;;  %v2748_v62 = vadd.f32 %v749_v58, %v2611_v55 }
  0x74   : > { %3805 = vst [vmem:[#allocation21_spill] sm:$0xff] %v2707_v7  ;;  %v3807_v30 = vld [vmem:[#allocation95_spill] sm:$0xff]  ;;  %v3810_v61 = vld [vmem:[#allocation98_spill] sm:$0xff]  ;;  %v765_v33 = vmul.f32 %v1538_v53, %v3812_v56  ;;  %v3816_v24 = vld [vmem:[#allocation104_spill] sm:$0xff]  ;;  %v772_v39 = vmul.f32 %v1538_v53, %v2707_v7  ;;  %v2727_v56 = vadd.f32 %v742_v50, %v2590_v26  ;;  %v2751_v26 = vadd.f32 %v750_v1, %v2614_v51 }
  0x75   : > { %v760_v10 = vmul.f32 %v1538_v53, %v3807_v30  ;;  %v763_v34 = vmul.f32 %v1538_v53, %v3810_v61  ;;  %v3811_v14 = vld [vmem:[#allocation99_spill] sm:$0xff]  ;;  %v3814_v8 = vld [vmem:[#allocation102_spill] sm:$0xff]  ;;  %v769_v13 = vmul.f32 %v1538_v53, %v3816_v24  ;;  %v770_v30 = vmul.f32 %v1538_v53, %v3817_v5  ;;  %v1539_v55 = vld [vmem:[%s1734_s19 + $0x30] sm:$0xff] }
  0x76   : > { %v764_v32 = vmul.f32 %v1538_v53, %v3811_v14  ;;  %v767_v38 = vmul.f32 %v1538_v53, %v3814_v8  ;;  %v3815_v48 = vld [vmem:[#allocation103_spill] sm:$0xff]  ;;  %v3818_v27 = vld [vmem:[#allocation106_spill] sm:$0xff]  ;;  %v773_v61 = vmul.f32 %v1538_v53, %v2710_v12  ;;  %v2736_v24 = vadd.f32 %v745_v4, %v2599_v15  ;;  %v1540_v51 = vld [vmem:[%s1734_s19 + $0x38] sm:$0xff] }
  0x77   : > { %v768_v40 = vmul.f32 %v1538_v53, %v3815_v48  ;;  %v771_v59 = vmul.f32 %v1538_v53, %v3818_v27  ;;  %v2733_v48 = vadd.f32 %v744_v0, %v2596_v22  ;;  %v2739_v27 = vadd.f32 %v746_v47, %v2602_v36  ;;  %v1541_v8 = vld [vmem:[%s1734_s19 + $0x48] sm:$0xff]  ;;  %v1542_v14 = vld [vmem:[%s1734_s19 + $0x50] sm:$0xff]  ;;  %v1543_v50 = vld [vmem:[%s1734_s19 + $0x60] sm:$0xff] }
  0x78   : > { %v2742_v5 = vadd.f32 %v747_v54, %v2605_v37  ;;  %v2745_v53 = vadd.f32 %v748_v49, %v2608_v45  ;;  %v2754_v22 = vadd.f32 %v751_v2, %v2617_v16  ;;  %v2757_v15 = vadd.f32 %v752_v21, %v2620_v9  ;;  %v2773_v16 = vld [vmem:[%s3477_s1 + $0x6] ss:$0 sm:$0xff]  ;;  %v1545_v4 = vld [vmem:[%s1734_s19 + $0x78] sm:$0xff]  ;;  %v3820_v54 = vld [vmem:[#allocation8_spill] sm:$0xff] }
  0x79   : > { %v2760_v36 = vadd.f32 %v753_v17, %v2623_v44  ;;  %v2763_v37 = vadd.f32 %v754_v42, %v2626_v43  ;;  %v2766_v45 = vadd.f32 %v755_v28, %v2629_v41  ;;  %v2776_v9 = vadd.f32 %v756_v60, %v2632_v3  ;;  %v1546_v47 = vld [vmem:[%s1734_s19 + $0x80] sm:$0xff]  ;;  %v3826_v1 = vld [vmem:[#allocation12_spill] sm:$0xff]  ;;  %v1548_v17 = vld [vmem:[%s1734_s19 + $0x98] sm:$0xff] }
  0x7a   : > { %v2779_v44 = vadd.f32 %v757_v52, %v2635_v6  ;;  %v2782_v43 = vadd.f32 %v758_v11, %v2638_v29  ;;  %v2785_v41 = vadd.f32 %v759_v18, %v2641_v63  ;;  %v2791_v57 = vadd.f32 %v760_v10, %v2644_v25  ;;  %v3819_v29 = vld [vmem:[#allocation6_spill] sm:$0xff]  ;;  %v1544_v63 = vld [vmem:[%s1734_s19 + $0x68] sm:$0xff]  ;;  %v3822_v25 = vld [vmem:[#allocation9_spill] sm:$0xff] }
  0x7b   : > { %v2794_v3 = vadd.f32 %v761_v19, %v2647_v23  ;;  %v2797_v6 = vadd.f32 %v762_v20, %v2650_v35  ;;  %v2800_v0 = vadd.f32 %v763_v34, %v3819_v29  ;;  %v2806_v49 = vadd.f32 %v764_v32, %v3820_v54  ;;  %v3824_v23 = vld [vmem:[#allocation10_spill] sm:$0xff]  ;;  %v1547_v21 = vld [vmem:[%s1734_s19 + $0x90] sm:$0xff]  ;;  %v1549_v42 = vld [vmem:[%s1734_s19 + $0xa8] sm:$0xff] }
  0x7c   : > { %v2809_v58 = vadd.f32 %v765_v33, %v3822_v25  ;;  %v2812_v35 = vadd.f32 %v766_v31, %v3824_v23  ;;  %v2815_v2 = vadd.f32 %v767_v38, %v3826_v1  ;;  %v3828_v28 = vld [vmem:[#allocation13_spill] sm:$0xff]  ;;  %v3830_v52 = vld [vmem:[#allocation14_spill] sm:$0xff]  ;;  %v3832_v18 = vld [vmem:[#allocation16_spill] sm:$0xff]  ;;  %v852_v12 = vmul.f32 %v2773_v16, %v1547_v21 }
  0x7d   : > { %3821 = vst [vmem:[#allocation24_spill] sm:$0xff] %v2806_v49  ;;  %v2821_v60 = vadd.f32 %v768_v40, %v3828_v28  ;;  %v2824_v11 = vadd.f32 %v769_v13, %v3830_v52  ;;  %v2827_v10 = vadd.f32 %v770_v30, %v3832_v18  ;;  %v3834_v19 = vld [vmem:[#allocation17_spill] sm:$0xff]  ;;  %v1550_v34 = vld [vmem:[%s1734_s19 + $0xb0] sm:$0xff]  ;;  %v1551_v32 = vld [vmem:[%s1734_s19 + $0xc0] sm:$0xff]  ;;  %v844_v30 = vmul.f32 %v2773_v16, %v1539_v55 }
  0x7e   : > { %3823 = vst [vmem:[#allocation26_spill] sm:$0xff] %v2809_v58  ;;  %3825 = vst [vmem:[#allocation27_spill] sm:$0xff] %v2812_v35  ;;  %v2830_v20 = vadd.f32 %v771_v59, %v3834_v19  ;;  %v1552_v33 = vld [vmem:[%s1734_s19 + $0xc8] sm:$0xff]  ;;  %v3836_v31 = vld [vmem:[#allocation18_spill] sm:$0xff]  ;;  %v845_v59 = vmul.f32 %v2773_v16, %v1540_v51  ;;  %v847_v52 = vmul.f32 %v2773_v16, %v1542_v14 }
  0x7f   : > { %3827 = vst [vmem:[#allocation3_spill] sm:$0xff] %v2815_v2  ;;  %3829 = vst [vmem:[#allocation7_spill] sm:$0xff] %v2821_v60  ;;  %v2836_v38 = vadd.f32 %v772_v39, %v3836_v31  ;;  %v3838_v40 = vld [vmem:[#allocation20_spill] sm:$0xff]  ;;  %v1553_v13 = vld [vmem:[%s1734_s19 + $0xd8] sm:$0xff]  ;;  %v846_v39 = vmul.f32 %v2773_v16, %v1541_v8  ;;  %v849_v18 = vmul.f32 %v2773_v16, %v1544_v63 }
  0x80   : > { %3831 = vst [vmem:[#allocation11_spill] sm:$0xff] %v2824_v11  ;;  %3833 = vst [vmem:[#allocation15_spill] sm:$0xff] %v2827_v10  ;;  %v2839_v29 = vadd.f32 %v773_v61, %v3838_v40  ;;  %v1554_v54 = vld [vmem:[%s1734_s19 + $0xe0] sm:$0xff]  ;;  %v1555_v25 = vld [vmem:[%s1734_s19 + $0xf0] sm:$0xff]  ;;  %v848_v61 = vmul.f32 %v2773_v16, %v1543_v50  ;;  %v850_v51 = vmul.f32 %v2773_v16, %v1545_v4 }
  0x81   : > { %3835 = vst [vmem:[#allocation19_spill] sm:$0xff] %v2830_v20  ;;  %3837 = vst [vmem:[#allocation22_spill] sm:$0xff] %v2836_v38  ;;  %v1556_v23 = vld [vmem:[%s1734_s19 + $0xf8] sm:$0xff]  ;;  %v1557_v1 = vld [vmem:[%s1734_s19 + $0x108] sm:$0xff]  ;;  %v851_v40 = vmul.f32 %v2773_v16, %v1546_v47  ;;  %v853_v8 = vmul.f32 %v2773_v16, %v1548_v17  ;;  %v855_v63 = vmul.f32 %v2773_v16, %v1550_v34 }
  0x82   : > { %3839 = vst [vmem:[#allocation25_spill] sm:$0xff] %v2839_v29  ;;  %v1558_v28 = vld [vmem:[%s1734_s19 + $0x110] sm:$0xff]  ;;  %v1559_v19 = vld [vmem:[%s1734_s19 + $0x120] sm:$0xff]  ;;  %v1560_v55 = vld [vmem:[%s1734_s19 + $0x128] sm:$0xff]  ;;  %v854_v29 = vmul.f32 %v2773_v16, %v1549_v42  ;;  %v856_v38 = vmul.f32 %v2773_v16, %v1551_v32  ;;  %v857_v20 = vmul.f32 %v2773_v16, %v1552_v33  ;;  %v858_v47 = vmul.f32 %v2773_v16, %v1553_v13 }
  0x83   : > { %v1561_v31 = vld [vmem:[%s1734_s19 + $0x138] sm:$0xff]  ;;  %v1562_v14 = vld [vmem:[%s1734_s19 + $0x140] sm:$0xff]  ;;  %v1563_v7 = vld [vmem:[%s1734_s19 + $0x150] sm:$0xff]  ;;  %v859_v21 = vmul.f32 %v2773_v16, %v1554_v54  ;;  %v860_v11 = vmul.f32 %v2773_v16, %v1555_v25  ;;  %v861_v17 = vmul.f32 %v2773_v16, %v1556_v23  ;;  %v862_v42 = vmul.f32 %v2773_v16, %v1557_v1 }
  0x84   : > { %v1564_v50 = vld [vmem:[%s1734_s19 + $0x158] sm:$0xff]  ;;  %v1565_v4 = vld [vmem:[%s1734_s19 + $0x168] sm:$0xff]  ;;  %v1566_v10 = vld [vmem:[%s1734_s19 + $0x170] sm:$0xff]  ;;  %v863_v34 = vmul.f32 %v2773_v16, %v1558_v28  ;;  %v864_v32 = vmul.f32 %v2773_v16, %v1559_v19  ;;  %v865_v33 = vmul.f32 %v2773_v16, %v1560_v55  ;;  %v866_v35 = vmul.f32 %v2773_v16, %v1561_v31 }
  0x85   : > { %v1569_v60 = vld [vmem:[%s1734_s19 + $0x198] sm:$0xff]  ;;  %v1570_v2 = vld [vmem:[%s1734_s19 + $0x1a0] sm:$0xff]  ;;  %v867_v13 = vmul.f32 %v2773_v16, %v1562_v14  ;;  %v868_v54 = vmul.f32 %v2773_v16, %v1563_v7  ;;  %v869_v25 = vmul.f32 %v2773_v16, %v1564_v50  ;;  %v870_v23 = vmul.f32 %v2773_v16, %v1565_v4  ;;  %v3840_v49 = vld [vmem:[#allocation52_spill] sm:$0xff] }
  0x86   : > { %v871_v58 = vmul.f32 %v2773_v16, %v1566_v10  ;;  %v872_v1 = vmul.f32 %v2773_v16, %v3840_v49  ;;  %v3841_v28 = vld [vmem:[#allocation56_spill] sm:$0xff]  ;;  %v874_v55 = vmul.f32 %v2773_v16, %v1569_v60  ;;  %v875_v31 = vmul.f32 %v2773_v16, %v1570_v2 }
  0x87   : > { %v873_v19 = vmul.f32 %v2773_v16, %v3841_v28  ;;  %v2892_v7 = vadd.f32 %v844_v30, %v2727_v56  ;;  %v2895_v14 = vadd.f32 %v845_v59, %v2730_v46  ;;  %v2898_v10 = vadd.f32 %v846_v39, %v2733_v48  ;;  %v1575_v2 = vld [vmem:[%s1734_s19 + $0x51] sm:$0xff]  ;;  %v3854_v4 = vld [vmem:[#allocation15_spill] sm:$0xff] }
  0x88   : > { %v2901_v49 = vadd.f32 %v847_v52, %v2736_v24  ;;  %v2904_v50 = vadd.f32 %v848_v61, %v2739_v27  ;;  %v2907_v60 = vadd.f32 %v849_v18, %v2742_v5  ;;  %v2910_v16 = vadd.f32 %v850_v51, %v2745_v53  ;;  %v3842_v30 = vld [vmem:[#allocation24_spill] sm:$0xff]  ;;  %v3848_v52 = vld [vmem:[#allocation3_spill] sm:$0xff]  ;;  %v1581_v18 = vld [vmem:[%s1734_s19 + $0x99] sm:$0xff] }
  0x89   : > { %v2913_v56 = vadd.f32 %v851_v40, %v2748_v62  ;;  %v2916_v46 = vadd.f32 %v852_v12, %v2751_v26  ;;  %v2919_v48 = vadd.f32 %v853_v8, %v2754_v22  ;;  %v2922_v24 = vadd.f32 %v854_v29, %v2757_v15  ;;  %v1572_v62 = vld [vmem:[%s1734_s19 + $0x31] sm:$0xff]  ;;  %v1573_v12 = vld [vmem:[%s1734_s19 + $0x39] sm:$0xff]  ;;  %v2938_v26 = vld [vmem:[%s3477_s1 + $0x7] ss:$0 sm:$0xff] }
  0x8a   : > { %v2925_v27 = vadd.f32 %v855_v63, %v2760_v36  ;;  %v2928_v5 = vadd.f32 %v856_v38, %v2763_v37  ;;  %v2931_v53 = vadd.f32 %v857_v20, %v2766_v45  ;;  %v2941_v22 = vadd.f32 %v858_v47, %v2776_v9  ;;  %v1574_v45 = vld [vmem:[%s1734_s19 + $0x49] sm:$0xff]  ;;  %v1576_v20 = vld [vmem:[%s1734_s19 + $0x61] sm:$0xff]  ;;  %v1580_v61 = vld [vmem:[%s1734_s19 + $0x91] sm:$0xff] }
  0x8b   : > { %v2944_v15 = vadd.f32 %v859_v21, %v2779_v44  ;;  %v2947_v36 = vadd.f32 %v860_v11, %v2782_v43  ;;  %v2950_v37 = vadd.f32 %v861_v17, %v2785_v41  ;;  %v2956_v38 = vadd.f32 %v862_v42, %v2791_v57  ;;  %v1577_v41 = vld [vmem:[%s1734_s19 + $0x69] sm:$0xff]  ;;  %v1578_v11 = vld [vmem:[%s1734_s19 + $0x79] sm:$0xff]  ;;  %v1579_v29 = vld [vmem:[%s1734_s19 + $0x81] sm:$0xff] }
  0x8c   : > { %v2959_v9 = vadd.f32 %v863_v34, %v2794_v3  ;;  %v2962_v44 = vadd.f32 %v864_v32, %v2797_v6  ;;  %v2965_v43 = vadd.f32 %v865_v33, %v2800_v0  ;;  %v2971_v59 = vadd.f32 %v866_v35, %v3842_v30  ;;  %v3844_v57 = vld [vmem:[#allocation26_spill] sm:$0xff]  ;;  %v3846_v3 = vld [vmem:[#allocation27_spill] sm:$0xff]  ;;  %v1583_v42 = vld [vmem:[%s1734_s19 + $0xb1] sm:$0xff] }
  0x8d   : > { %v2974_v39 = vadd.f32 %v867_v13, %v3844_v57  ;;  %v2977_v6 = vadd.f32 %v868_v54, %v3846_v3  ;;  %v2980_v0 = vadd.f32 %v869_v25, %v3848_v52  ;;  %v1582_v51 = vld [vmem:[%s1734_s19 + $0xa9] sm:$0xff]  ;;  %v2992_v47 = vadd.f32 %v872_v1, %v3854_v4  ;;  %v1584_v34 = vld [vmem:[%s1734_s19 + $0xc1] sm:$0xff]  ;;  %v3860_v54 = vld [vmem:[#allocation25_spill] sm:$0xff] }
  0x8e   : > { %3843 = vst [vmem:[#allocation29_spill] sm:$0xff] %v2971_v59  ;;  %v3850_v40 = vld [vmem:[#allocation7_spill] sm:$0xff]  ;;  %v3858_v33 = vld [vmem:[#allocation22_spill] sm:$0xff]  ;;  %v3004_v25 = vadd.f32 %v875_v31, %v3860_v54  ;;  %v1588_v28 = vld [vmem:[%s1734_s19 + $0xf1] sm:$0xff]  ;;  %v945_v1 = vmul.f32 %v2938_v26, %v1572_v62  ;;  %v948_v52 = vmul.f32 %v2938_v26, %v1575_v2  ;;  %v949_v31 = vmul.f32 %v2938_v26, %v1576_v20 }
  0x8f   : > { %3845 = vst [vmem:[#allocation33_spill] sm:$0xff] %v2974_v39  ;;  %3847 = vst [vmem:[#allocation37_spill] sm:$0xff] %v2977_v6  ;;  %v2986_v35 = vadd.f32 %v870_v23, %v3850_v40  ;;  %v3852_v8 = vld [vmem:[#allocation11_spill] sm:$0xff]  ;;  %v3001_v13 = vadd.f32 %v874_v55, %v3858_v33  ;;  %v1589_v30 = vld [vmem:[%s1734_s19 + $0xf9] sm:$0xff]  ;;  %v947_v55 = vmul.f32 %v2938_v26, %v1574_v45 }
  0x90   : > { %3849 = vst [vmem:[#allocation41_spill] sm:$0xff] %v2980_v0  ;;  %v2989_v63 = vadd.f32 %v871_v58, %v3852_v8  ;;  %3855 = vst [vmem:[#allocation30_spill] sm:$0xff] %v2992_v47  ;;  %v3856_v21 = vld [vmem:[#allocation19_spill] sm:$0xff]  ;;  %v1586_v58 = vld [vmem:[%s1734_s19 + $0xd9] sm:$0xff]  ;;  %v950_v40 = vmul.f32 %v2938_v26, %v1577_v41  ;;  %v953_v33 = vmul.f32 %v2938_v26, %v1580_v61 }
  0x91   : > { %3851 = vst [vmem:[#allocation45_spill] sm:$0xff] %v2986_v35  ;;  %v2995_v17 = vadd.f32 %v873_v19, %v3856_v21  ;;  %v1585_v32 = vld [vmem:[%s1734_s19 + $0xc9] sm:$0xff]  ;;  %3859 = vst [vmem:[#allocation32_spill] sm:$0xff] %v3001_v13  ;;  %v1587_v23 = vld [vmem:[%s1734_s19 + $0xe1] sm:$0xff]  ;;  %v946_v19 = vmul.f32 %v2938_v26, %v1573_v12  ;;  %v951_v12 = vmul.f32 %v2938_v26, %v1578_v11 }
  0x92   : > { %3853 = vst [vmem:[#allocation28_spill] sm:$0xff] %v2989_v63  ;;  %3861 = vst [vmem:[#allocation34_spill] sm:$0xff] %v3004_v25  ;;  %v1590_v57 = vld [vmem:[%s1734_s19 + $0x109] sm:$0xff]  ;;  %v1591_v3 = vld [vmem:[%s1734_s19 + $0x111] sm:$0xff]  ;;  %v952_v21 = vmul.f32 %v2938_v26, %v1579_v29  ;;  %v954_v45 = vmul.f32 %v2938_v26, %v1581_v18  ;;  %v955_v25 = vmul.f32 %v2938_v26, %v1582_v51 }
  0x93   : > { %3857 = vst [vmem:[#allocation31_spill] sm:$0xff] %v2995_v17  ;;  %v1592_v8 = vld [vmem:[%s1734_s19 + $0x121] sm:$0xff]  ;;  %v1593_v62 = vld [vmem:[%s1734_s19 + $0x129] sm:$0xff]  ;;  %v1594_v4 = vld [vmem:[%s1734_s19 + $0x139] sm:$0xff]  ;;  %v956_v41 = vmul.f32 %v2938_v26, %v1583_v42  ;;  %v957_v13 = vmul.f32 %v2938_v26, %v1584_v34  ;;  %v958_v17 = vmul.f32 %v2938_v26, %v1585_v32  ;;  %v959_v29 = vmul.f32 %v2938_v26, %v1586_v58 }
  0x94   : > { %v1595_v2 = vld [vmem:[%s1734_s19 + $0x141] sm:$0xff]  ;;  %v1596_v54 = vld [vmem:[%s1734_s19 + $0x151] sm:$0xff]  ;;  %v1597_v20 = vld [vmem:[%s1734_s19 + $0x159] sm:$0xff]  ;;  %v960_v61 = vmul.f32 %v2938_v26, %v1587_v23  ;;  %v961_v63 = vmul.f32 %v2938_v26, %v1588_v28  ;;  %v962_v18 = vmul.f32 %v2938_v26, %v1589_v30  ;;  %v963_v51 = vmul.f32 %v2938_v26, %v1590_v57 }
  0x95   : > { %v1598_v11 = vld [vmem:[%s1734_s19 + $0x169] sm:$0xff]  ;;  %v1599_v47 = vld [vmem:[%s1734_s19 + $0x171] sm:$0xff]  ;;  %v1602_v35 = vld [vmem:[%s1734_s19 + $0x199] sm:$0xff]  ;;  %v964_v42 = vmul.f32 %v2938_v26, %v1591_v3  ;;  %v965_v34 = vmul.f32 %v2938_v26, %v1592_v8  ;;  %v966_v32 = vmul.f32 %v2938_v26, %v1593_v62  ;;  %v967_v6 = vmul.f32 %v2938_v26, %v1594_v4 }
  0x96   : > { %v1603_v0 = vld [vmem:[%s1734_s19 + $0x1a1] sm:$0xff]  ;;  %v968_v58 = vmul.f32 %v2938_v26, %v1595_v2  ;;  %v969_v23 = vmul.f32 %v2938_v26, %v1596_v54  ;;  %v970_v28 = vmul.f32 %v2938_v26, %v1597_v20  ;;  %v971_v30 = vmul.f32 %v2938_v26, %v1598_v11  ;;  %v3863_v3 = vld [vmem:[#allocation5_spill] sm:$0xff] }
  0x97   : > { %v972_v39 = vmul.f32 %v2938_v26, %v1599_v47  ;;  %v3862_v59 = vld [vmem:[#allocation2_spill] sm:$0xff]  ;;  %v974_v8 = vmul.f32 %v2938_v26, %v3863_v3  ;;  %v975_v62 = vmul.f32 %v2938_v26, %v1602_v35  ;;  %v976_v4 = vmul.f32 %v2938_v26, %v1603_v0  ;;  %v1607_v0 = vld [vmem:[%s1734_s19 + $0x4a] sm:$0xff] }
  0x98   : > { %v973_v57 = vmul.f32 %v2938_v26, %v3862_v59  ;;  %v977_v2 = vadd.f32 %v945_v1, %v2892_v7  ;;  %v978_v54 = vadd.f32 %v946_v19, %v2895_v14  ;;  %v979_v20 = vadd.f32 %v947_v55, %v2898_v10 }
  0x99   : > { %v3060_v47 = vadd.f32 %v948_v52, %v2901_v49  ;;  %v3063_v59 = vadd.f32 %v949_v31, %v2904_v50  ;;  %v3066_v11 = vadd.f32 %v950_v40, %v2907_v60  ;;  %v3069_v26 = vadd.f32 %v951_v12, %v2910_v16  ;;  %v3083_v49 = vld [vmem:[%s3477_s1 + $0x8] ss:$0 sm:$0xff]  ;;  %v3872_v31 = vld [vmem:[#allocation45_spill] sm:$0xff] }
  0x9a   : > { %v3072_v7 = vadd.f32 %v952_v21, %v2913_v56  ;;  %v3075_v14 = vadd.f32 %v953_v33, %v2916_v46  ;;  %v3078_v10 = vadd.f32 %v954_v45, %v2919_v48  ;;  %v3086_v50 = vadd.f32 %v955_v25, %v2922_v24  ;;  %v1605_v46 = vld [vmem:[%s1734_s19 + $0x32] sm:$0xff]  ;;  %v1606_v48 = vld [vmem:[%s1734_s19 + $0x3a] sm:$0xff]  ;;  %v1612_v21 = vld [vmem:[%s1734_s19 + $0x82] sm:$0xff] }
  0x9b   : > { %v3089_v60 = vadd.f32 %v956_v41, %v2925_v27  ;;  %v3092_v16 = vadd.f32 %v957_v13, %v2928_v5  ;;  %v3095_v56 = vadd.f32 %v958_v17, %v2931_v53  ;;  %v3101_v35 = vadd.f32 %v959_v29, %v2941_v22  ;;  %v1611_v12 = vld [vmem:[%s1734_s19 + $0x7a] sm:$0xff]  ;;  %v1613_v33 = vld [vmem:[%s1734_s19 + $0x92] sm:$0xff] }
  0x9c   : > { %v3104_v24 = vadd.f32 %v960_v61, %v2944_v15  ;;  %v3107_v27 = vadd.f32 %v961_v63, %v2947_v36  ;;  %v3110_v25 = vadd.f32 %v962_v18, %v2950_v37  ;;  %v3113_v5 = vadd.f32 %v963_v51, %v2956_v38  ;;  %v1608_v36 = vld [vmem:[%s1734_s19 + $0x52] sm:$0xff]  ;;  %v1609_v37 = vld [vmem:[%s1734_s19 + $0x62] sm:$0xff]  ;;  %v1610_v38 = vld [vmem:[%s1734_s19 + $0x6a] sm:$0xff] }
  0x9d   : > { %v3116_v53 = vadd.f32 %v964_v42, %v2959_v9  ;;  %v3119_v22 = vadd.f32 %v965_v34, %v2962_v44  ;;  %v3122_v15 = vadd.f32 %v966_v32, %v2965_v43  ;;  %v3864_v63 = vld [vmem:[#allocation29_spill] sm:$0xff]  ;;  %v1046_v13 = vmul.f32 %v3083_v49, %v1605_v46  ;;  %v3873_v45 = vld [vmem:[#allocation28_spill] sm:$0xff]  ;;  %v3874_v29 = vld [vmem:[#allocation30_spill] sm:$0xff] }
  0x9e   : > { %v3126_v17 = vadd.f32 %v967_v6, %v3864_v63  ;;  %v1047_v9 = vmul.f32 %v3083_v49, %v1606_v48  ;;  %v1048_v1 = vmul.f32 %v3083_v49, %v1607_v0  ;;  %v3866_v44 = vld [vmem:[#allocation33_spill] sm:$0xff]  ;;  %v3143_v40 = vadd.f32 %v971_v30, %v3872_v31  ;;  %v3875_v18 = vld [vmem:[#allocation31_spill] sm:$0xff]  ;;  %v3877_v30 = vld [vmem:[#allocation34_spill] sm:$0xff] }
  0x9f   : > { %v3134_v19 = vadd.f32 %v968_v58, %v3866_v44  ;;  %v3868_v43 = vld [vmem:[#allocation37_spill] sm:$0xff]  ;;  %v3149_v41 = vadd.f32 %v972_v39, %v3873_v45  ;;  %v3152_v61 = vadd.f32 %v973_v57, %v3874_v29  ;;  %v3155_v51 = vadd.f32 %v974_v8, %v3875_v18  ;;  %v1615_v34 = vld [vmem:[%s1734_s19 + $0xaa] sm:$0xff]  ;;  %v1617_v39 = vld [vmem:[%s1734_s19 + $0xc2] sm:$0xff] }
  0xa0   : > { %3865 = vst [vmem:[#allocation35_spill] sm:$0xff] %v3126_v17  ;;  %v3137_v55 = vadd.f32 %v969_v23, %v3868_v43  ;;  %v3870_v6 = vld [vmem:[#allocation41_spill] sm:$0xff]  ;;  %v1049_v58 = vmul.f32 %v3083_v49, %v1608_v36  ;;  %v3876_v23 = vld [vmem:[#allocation32_spill] sm:$0xff]  ;;  %v3165_v3 = vadd.f32 %v976_v4, %v3877_v30  ;;  %v1050_v57 = vmul.f32 %v3083_v49, %v1609_v37  ;;  %v1620_v0 = vld [vmem:[%s1734_s19 + $0xe2] sm:$0xff] }
  0xa1   : > { %3867 = vst [vmem:[#allocation36_spill] sm:$0xff] %v3134_v19  ;;  %v3140_v52 = vadd.f32 %v970_v28, %v3870_v6  ;;  %v1614_v42 = vld [vmem:[%s1734_s19 + $0x9a] sm:$0xff]  ;;  %v1616_v32 = vld [vmem:[%s1734_s19 + $0xb2] sm:$0xff]  ;;  %v3162_v28 = vadd.f32 %v975_v62, %v3876_v23  ;;  %v1618_v46 = vld [vmem:[%s1734_s19 + $0xca] sm:$0xff]  ;;  %v1051_v8 = vmul.f32 %v3083_v49, %v1610_v38  ;;  %v1052_v36 = vmul.f32 %v3083_v49, %v1611_v12 }
  0xa2   : > { %3869 = vst [vmem:[#allocation38_spill] sm:$0xff] %v3137_v55  ;;  %v1619_v48 = vld [vmem:[%s1734_s19 + $0xda] sm:$0xff]  ;;  %v1621_v63 = vld [vmem:[%s1734_s19 + $0xf2] sm:$0xff]  ;;  %v1078_v43 = vadd.f32 %v1046_v13, %v977_v2  ;;  %v1079_v62 = vadd.f32 %v1047_v9, %v978_v54  ;;  %v1080_v6 = vadd.f32 %v1048_v1, %v979_v20  ;;  %v1053_v4 = vmul.f32 %v3083_v49, %v1612_v21  ;;  %v1623_v12 = vld [vmem:[%s1734_s19 + $0x10a] sm:$0xff] }
  0xa3   : > { %3871 = vst [vmem:[#allocation39_spill] sm:$0xff] %v3140_v52  ;;  %v1622_v44 = vld [vmem:[%s1734_s19 + $0xfa] sm:$0xff]  ;;  %v1054_v31 = vmul.f32 %v3083_v49, %v1613_v33  ;;  %v1055_v45 = vmul.f32 %v3083_v49, %v1614_v42  ;;  %v1056_v37 = vmul.f32 %v3083_v49, %v1615_v34  ;;  %v1624_v2 = vld [vmem:[%s1734_s19 + $0x112] sm:$0xff]  ;;  %v1057_v54 = vmul.f32 %v3083_v49, %v1616_v32  ;;  %v1625_v18 = vld [vmem:[%s1734_s19 + $0x122] sm:$0xff] }
  0xa4   : > { %v3183_v38 = vld [vmem:[%s3478_s2] ss:$0 sm:$0xff]  ;;  %v1058_v20 = vmul.f32 %v3083_v49, %v1617_v39  ;;  %v1059_v13 = vmul.f32 %v3083_v49, %v1618_v46  ;;  %v1081_v9 = vadd.f32 %v1049_v58, %v3060_v47  ;;  %v1060_v1 = vmul.f32 %v3083_v49, %v1619_v48  ;;  %v1626_v42 = vld [vmem:[%s1734_s19 + $0x12a] sm:$0xff]  ;;  %v1632_v30 = vld [vmem:[%s1734_s19 + $0x172] sm:$0xff] }
  0xa5   : > { %v1061_v21 = vmul.f32 %v3083_v49, %v1620_v0  ;;  %v1062_v33 = vmul.f32 %v3083_v49, %v1621_v63  ;;  %v1063_v29 = vmul.f32 %v3083_v49, %v1622_v44  ;;  %v1631_v34 = vld [vmem:[%s1734_s19 + $0x16a] sm:$0xff]  ;;  %v1082_v32 = vadd.f32 %v1050_v57, %v3063_v59  ;;  %v1635_v0 = vld [vmem:[%s1734_s19 + $0x19a] sm:$0xff] }
  0xa6   : > { %v3200_v23 = vadd.f32 %v3183_v38, %v1078_v43  ;;  %v3203_v47 = vadd.f32 %v3183_v38, %v1079_v62  ;;  %v3206_v58 = vadd.f32 %v3183_v38, %v1080_v6  ;;  %v1064_v39 = vmul.f32 %v3083_v49, %v1623_v12  ;;  %v1636_v43 = vld [vmem:[%s1734_s19 + $0x1a2] sm:$0xff]  ;;  %v3879_v55 = vld [vmem:[#allocation21_spill] sm:$0xff] }
  0xa7   : > { %v3211_v46 = vmul.f32 %v3083_v49, %v1624_v2  ;;  %v1083_v48 = vadd.f32 %v1051_v8, %v3066_v11  ;;  %v3216_v59 = vadd.f32 %v3183_v38, %v1081_v9  ;;  %v3226_v62 = vmul.f32 %v3083_v49, %v1625_v18  ;;  %v3880_v18 = vld [vmem:[#allocation23_spill] sm:$0xff] }
  0xa8   : > { %v1150_v57 = vsel %vm1149_vm0, %v3200_v23, 0.0  ;;  %v1151_v63 = vsel %vm1149_vm0, %v3203_v47, 0.0  ;;  %v1153_v44 = vsel %vm1149_vm0, %v3206_v58, 0.0  ;;  %v3229_v11 = vmul.f32 %v3083_v49, %v1626_v42 }
  0xa9   : > { %v1072_v8 = vmul.f32 %v3083_v49, %v1631_v34  ;;  %v1152_v6 = vadd.f32 %v1151_v63, %v1150_v57  ;;  %v1073_v12 = vmul.f32 %v3083_v49, %v1632_v30  ;;  %v1084_v2 = vadd.f32 %v1052_v36, %v3069_v26 }
  0xaa   : > { %3878 = vst [vmem:[#allocation40_spill] sm:$0xff] %v3229_v11  ;;  %v1121_v9 = vadd.f32 %v3183_v38, %v1082_v32  ;;  %v1155_v52 = vsel %vm1149_vm0, %v3216_v59, 0.0  ;;  %v1074_v19 = vmul.f32 %v3083_v49, %v3879_v55  ;;  %v1075_v17 = vmul.f32 %v3083_v49, %v3880_v18 }
  0xab   : > { %v1076_v42 = vmul.f32 %v3083_v49, %v1635_v0  ;;  %v1154_v11 = vadd.f32 %v1153_v44, %v1152_v6  ;;  %v1077_v34 = vmul.f32 %v3083_v49, %v1636_v43  ;;  %v1085_v30 = vadd.f32 %v1053_v4, %v3072_v7 }
  0xac   : > { %v1122_v26 = vadd.f32 %v3183_v38, %v1083_v48  ;;  %v1157_v36 = vsel %vm1149_vm0, %v1121_v9, 0.0  ;;  %v1086_v32 = vadd.f32 %v1054_v31, %v3075_v14  ;;  %v1087_v57 = vadd.f32 %v1055_v45, %v3078_v10 }
  0xad   : > { %v1088_v55 = vadd.f32 %v1056_v37, %v3086_v50  ;;  %v1156_v63 = vadd.f32 %v1155_v52, %v1154_v11  ;;  %v1089_v18 = vadd.f32 %v1057_v54, %v3089_v60  ;;  %v1090_v0 = vadd.f32 %v1058_v20, %v3092_v16 }
  0xae   : > { %v1123_v44 = vadd.f32 %v3183_v38, %v1084_v2  ;;  %v1159_v43 = vsel %vm1149_vm0, %v1122_v26, 0.0  ;;  %v1091_v7 = vadd.f32 %v1059_v13, %v3095_v56  ;;  %v1092_v4 = vadd.f32 %v1060_v1, %v3101_v35 }
  0xaf   : > { %v1093_v48 = vadd.f32 %v1061_v21, %v3104_v24  ;;  %v1158_v14 = vadd.f32 %v1157_v36, %v1156_v63  ;;  %v1094_v10 = vadd.f32 %v1062_v33, %v3107_v27  ;;  %v3258_v50 = vadd.f32 %v1063_v29, %v3110_v25 }
  0xb0   : > { %v1124_v60 = vadd.f32 %v3183_v38, %v1085_v30  ;;  %v1161_v16 = vsel %vm1149_vm0, %v1123_v44, 0.0  ;;  %v3263_v52 = vadd.f32 %v1064_v39, %v3113_v5  ;;  %v1104_v31 = vadd.f32 %v1072_v8, %v3143_v40 }
  0xb1   : > { %v1105_v56 = vadd.f32 %v1073_v12, %v3149_v41  ;;  %v1160_v35 = vadd.f32 %v1159_v43, %v1158_v14  ;;  %v1106_v24 = vadd.f32 %v1074_v19, %v3152_v61  ;;  %v1107_v45 = vadd.f32 %v1075_v17, %v3155_v51 }
  0xb2   : > { %v1125_v27 = vadd.f32 %v3183_v38, %v1086_v32  ;;  %v1163_v25 = vsel %vm1149_vm0, %v1124_v60, 0.0  ;;  %v1108_v37 = vadd.f32 %v1076_v42, %v3162_v28  ;;  %v1109_v54 = vadd.f32 %v1077_v34, %v3165_v3 }
  0xb3   : > { %v1126_v5 = vadd.f32 %v3183_v38, %v1087_v57  ;;  %v1162_v20 = vadd.f32 %v1161_v16, %v1160_v35  ;;  %v3275_v40 = vadd.f32 %v3183_v38, %v1088_v55  ;;  %v3278_v41 = vadd.f32 %v3183_v38, %v1089_v18 }
  0xb4   : > { %v3281_v19 = vadd.f32 %v3183_v38, %v1090_v0  ;;  %v1165_v17 = vsel %vm1149_vm0, %v1125_v27, 0.0  ;;  %v3285_v61 = vadd.f32 %v3183_v38, %v1091_v7  ;;  %v1219_v28 = vmul.f32 %v3200_v23, %v3200_v23 }
  0xb5   : > { %v1164_v51 = vadd.f32 %v1163_v25, %v1162_v20  ;;  %v1220_v3 = vmul.f32 %v3203_v47, %v3203_v47  ;;  %v3292_v13 = vadd.f32 %v3183_v38, %v1092_v4  ;;  %v3295_v1 = vadd.f32 %v3183_v38, %v1093_v48 }
  0xb6   : > { %v1167_v21 = vsel %vm1149_vm0, %v1126_v5, 0.0  ;;  %v1221_v33 = vmul.f32 %v3206_v58, %v3206_v58  ;;  %v3301_v29 = vadd.f32 %v3183_v38, %v1094_v10  ;;  %v3304_v39 = vadd.f32 %v3183_v38, %v1104_v31 }
  0xb7   : > { %v1166_v23 = vadd.f32 %v1165_v17, %v1164_v51  ;;  %v1222_v47 = vmul.f32 %v3216_v59, %v3216_v59  ;;  %v3309_v11 = vadd.f32 %v3183_v38, %v1105_v56  ;;  %v3312_v8 = vadd.f32 %v3183_v38, %v1106_v24 }
  0xb8   : > { %v3315_v6 = vadd.f32 %v3183_v38, %v1107_v45  ;;  %v1169_v58 = vsel %vm1149_vm0, %v3275_v40, 0.0  ;;  %v1223_v2 = vmul.f32 %v1121_v9, %v1121_v9  ;;  %v1251_v42 = vsel %vm1149_vm0, %v1219_v28, 0.0 }
  0xb9   : > { %v1168_v12 = vadd.f32 %v1167_v21, %v1166_v23  ;;  %v1252_v34 = vsel %vm1149_vm0, %v1220_v3, 0.0  ;;  %v3322_v59 = vadd.f32 %v3183_v38, %v1108_v37  ;;  %v1171_v30 = vsel %vm1149_vm0, %v3278_v41, 0.0  ;;  %v1627_v3 = vld [vmem:[%s1734_s19 + $0x13a] sm:$0xff] }
  0xba   : > { %v1253_v36 = vadd.f32 %v1252_v34, %v1251_v42  ;;  %v1254_v32 = vsel %vm1149_vm0, %v1221_v33, 0.0  ;;  %v3328_v57 = vadd.f32 %v3183_v38, %v1109_v54  ;;  %v1224_v63 = vmul.f32 %v1122_v26, %v1122_v26 }
  0xbb   : > { %v1170_v55 = vadd.f32 %v1169_v58, %v1168_v12  ;;  %v1256_v9 = vsel %vm1149_vm0, %v1222_v47, 0.0  ;;  %v1173_v18 = vsel %vm1149_vm0, %v3281_v19, 0.0  ;;  %v1175_v0 = vsel %vm1149_vm0, %v3285_v61, 0.0 }
  0xbc   : > { %v1225_v43 = vmul.f32 %v1123_v44, %v1123_v44  ;;  %v1255_v7 = vadd.f32 %v1254_v32, %v1253_v36  ;;  %v1226_v48 = vmul.f32 %v1124_v60, %v1124_v60  ;;  %v1245_v14 = vmul.f32 %v3304_v39, %v3304_v39 }
  0xbd   : > { %v1172_v4 = vadd.f32 %v1171_v30, %v1170_v55  ;;  %v1258_v10 = vsel %vm1149_vm0, %v1223_v2, 0.0  ;;  %v1246_v26 = vmul.f32 %v3309_v11, %v3309_v11  ;;  %v1247_v16 = vmul.f32 %v3312_v8, %v3312_v8  ;;  %v1628_v2 = vld [vmem:[%s1734_s19 + $0x142] sm:$0xff] }
  0xbe   : > { %v1248_v31 = vmul.f32 %v3315_v6, %v3315_v6  ;;  %v1257_v56 = vadd.f32 %v1256_v9, %v1255_v7  ;;  %v1249_v60 = vmul.f32 %v3322_v59, %v3322_v59  ;;  %v1250_v35 = vmul.f32 %v3328_v57, %v3328_v57 }
  0xbf   : > { %v1174_v44 = vadd.f32 %v1173_v18, %v1172_v4  ;;  %v1260_v24 = vsel %vm1149_vm0, %v1224_v63, 0.0  ;;  %v1177_v45 = vsel %vm1149_vm0, %v3292_v13, 0.0  ;;  %v1179_v25 = vsel %vm1149_vm0, %v3295_v1, 0.0  ;;  %v1629_v18 = vld [vmem:[%s1734_s19 + $0x152] sm:$0xff] }
  0xc0   : > { %v1227_v37 = vmul.f32 %v1125_v27, %v1125_v27  ;;  %v1259_v54 = vadd.f32 %v1258_v10, %v1257_v56  ;;  %v1228_v17 = vmul.f32 %v1126_v5, %v1126_v5  ;;  %v1262_v51 = vsel %vm1149_vm0, %v1225_v43, 0.0 }
  0xc1   : > { %v1176_v20 = vadd.f32 %v1175_v0, %v1174_v44  ;;  %v1264_v28 = vsel %vm1149_vm0, %v1226_v48, 0.0  ;;  %v3357_v33 = vsel %vm1149_vm0, %v1245_v14, 0.0  ;;  %v3360_v23 = vsel %vm1149_vm0, %v1246_v26, 0.0  ;;  %v1630_v48 = vld [vmem:[%s1734_s19 + $0x15a] sm:$0xff]  ;;  %v3881_v14 = vld [vmem:[#allocation40_spill] sm:$0xff] }
  0xc2   : > { %v1261_v21 = vadd.f32 %v1260_v24, %v1259_v54  ;;  %v3363_v47 = vsel %vm1149_vm0, %v1247_v16, 0.0  ;;  %v3366_v58 = vsel %vm1149_vm0, %v1248_v31, 0.0  ;;  %v3369_v5 = vsel %vm1149_vm0, %v1249_v60, 0.0  ;;  %v3883_v54 = vld [vmem:[#allocation36_spill] sm:$0xff] }
  0xc3   : > { %v1178_v27 = vadd.f32 %v1177_v45, %v1176_v20  ;;  %v3372_v12 = vsel %vm1149_vm0, %v1250_v35, 0.0  ;;  %v1097_v42 = vadd.f32 %v3211_v46, %v3116_v53  ;;  %v1134_v34 = vadd.f32 %v3183_v38, %v3258_v50 }
  0xc4   : > { %v1181_v30 = vsel %vm1149_vm0, %v3301_v29, 0.0  ;;  %v1263_v36 = vadd.f32 %v1262_v51, %v1261_v21  ;;  %v1068_v32 = vmul.f32 %v3083_v49, %v1627_v3  ;;  %v1229_v63 = vmul.f32 %v3275_v40, %v3275_v40 }
  0xc5   : > { %v1180_v55 = vadd.f32 %v1179_v25, %v1178_v27  ;;  %v1266_v9 = vsel %vm1149_vm0, %v1227_v37, 0.0  ;;  %v1098_v53 = vadd.f32 %v3226_v62, %v3119_v22  ;;  %v1135_v46 = vadd.f32 %v3183_v38, %v3263_v52 }
  0xc6   : > { %v1183_v50 = vsel %vm1149_vm0, %v1134_v34, 0.0  ;;  %v1265_v0 = vadd.f32 %v1264_v28, %v1263_v36  ;;  %v1069_v43 = vmul.f32 %v3083_v49, %v1628_v2  ;;  %v1230_v4 = vmul.f32 %v3278_v41, %v3278_v41  ;;  %v3882_v41 = vld [vmem:[#allocation35_spill] sm:$0xff] }
  0xc7   : > { %v1182_v7 = vadd.f32 %v1181_v30, %v1180_v55  ;;  %v1268_v40 = vsel %vm1149_vm0, %v1228_v17, 0.0  ;;  %v1099_v10 = vadd.f32 %v3881_v14, %v3122_v15  ;;  %v1136_v22 = vadd.f32 %v3183_v38, %v1097_v42  ;;  %v3885_v55 = vld [vmem:[#allocation39_spill] sm:$0xff] }
  0xc8   : > { %v1185_v62 = vsel %vm1149_vm0, %v1135_v46, 0.0  ;;  %v1267_v52 = vadd.f32 %v1266_v9, %v1265_v0  ;;  %v1070_v26 = vmul.f32 %v3083_v49, %v1629_v18  ;;  %v1231_v31 = vmul.f32 %v3281_v19, %v3281_v19 }
  0xc9   : > { %v1184_v16 = vadd.f32 %v1183_v50, %v1182_v7  ;;  %v1270_v56 = vsel %vm1149_vm0, %v1229_v63, 0.0  ;;  %v1100_v44 = vadd.f32 %v1068_v32, %v3882_v41  ;;  %v1137_v60 = vadd.f32 %v3183_v38, %v1098_v53 }
  0xca   : > { %v1187_v35 = vsel %vm1149_vm0, %v1136_v22, 0.0  ;;  %v1269_v15 = vadd.f32 %v1268_v40, %v1267_v52  ;;  %v1071_v24 = vmul.f32 %v3083_v49, %v1630_v48  ;;  %v1232_v25 = vmul.f32 %v3285_v61, %v3285_v61  ;;  %v3884_v49 = vld [vmem:[#allocation38_spill] sm:$0xff] }
  0xcb   : > { %v1186_v45 = vadd.f32 %v1185_v62, %v1184_v16  ;;  %v1272_v37 = vsel %vm1149_vm0, %v1230_v4, 0.0  ;;  %v1101_v20 = vadd.f32 %v1069_v43, %v3883_v54  ;;  %v1138_v19 = vadd.f32 %v3183_v38, %v1099_v10 }
  0xcc   : > { %v1189_v17 = vsel %vm1149_vm0, %v1137_v60, 0.0  ;;  %v1271_v51 = vadd.f32 %v1270_v56, %v1269_v15  ;;  %v1233_v3 = vmul.f32 %v3292_v13, %v3292_v13  ;;  %v1274_v21 = vsel %vm1149_vm0, %v1231_v31, 0.0 }
  0xcd   : > { %v1188_v28 = vadd.f32 %v1187_v35, %v1186_v45  ;;  %v1102_v27 = vadd.f32 %v1070_v26, %v3884_v49  ;;  %v1139_v2 = vadd.f32 %v3183_v38, %v1100_v44  ;;  %v1191_v61 = vsel %vm1149_vm0, %v1138_v19, 0.0 }
  0xce   : > { %v1273_v42 = vadd.f32 %v1272_v37, %v1271_v51  ;;  %v1234_v36 = vmul.f32 %v3295_v1, %v3295_v1  ;;  %v1276_v32 = vsel %vm1149_vm0, %v1232_v25, 0.0  ;;  %v1103_v63 = vadd.f32 %v1071_v24, %v3885_v55 }
  0xcf   : > { %v1190_v30 = vadd.f32 %v1189_v17, %v1188_v28  ;;  %v1140_v9 = vadd.f32 %v3183_v38, %v1101_v20  ;;  %v1193_v13 = vsel %vm1149_vm0, %v1139_v2, 0.0  ;;  %v1235_v50 = vmul.f32 %v3301_v29, %v3301_v29 }
  0xd0   : > { %v1275_v18 = vadd.f32 %v1274_v21, %v1273_v42  ;;  %v1278_v0 = vsel %vm1149_vm0, %v1233_v3, 0.0  ;;  %v1141_v43 = vadd.f32 %v3183_v38, %v1102_v27  ;;  %v1236_v40 = vmul.f32 %v1134_v34, %v1134_v34 }
  0xd1   : > { %v1192_v53 = vadd.f32 %v1191_v61, %v1190_v30  ;;  %v1195_v7 = vsel %vm1149_vm0, %v1140_v9, 0.0  ;;  %v1280_v48 = vsel %vm1149_vm0, %v1234_v36, 0.0  ;;  %v1142_v14 = vadd.f32 %v3183_v38, %v1103_v63 }
  0xd2   : > { %v1277_v1 = vadd.f32 %v1276_v32, %v1275_v18  ;;  %v1197_v10 = vsel %vm1149_vm0, %v1141_v43, 0.0  ;;  %v1237_v26 = vmul.f32 %v1135_v46, %v1135_v46  ;;  %v1282_v29 = vsel %vm1149_vm0, %v1235_v50, 0.0 }
  0xd3   : > { %v1194_v4 = vadd.f32 %v1193_v13, %v1192_v53  ;;  %v1199_v16 = vsel %vm1149_vm0, %v1142_v14, 0.0  ;;  %v1238_v41 = vmul.f32 %v1136_v22, %v1136_v22  ;;  %v1284_v44 = vsel %vm1149_vm0, %v1236_v40, 0.0 }
  0xd4   : > { %v1279_v62 = vadd.f32 %v1278_v0, %v1277_v1  ;;  %v1201_v34 = vsel %vm1149_vm0, %v3304_v39, 0.0  ;;  %v1239_v38 = vmul.f32 %v1137_v60, %v1137_v60  ;;  %v1286_v24 = vsel %vm1149_vm0, %v1237_v26, 0.0 }
  0xd5   : > { %v1196_v52 = vadd.f32 %v1195_v7, %v1194_v4  ;;  %v1203_v46 = vsel %vm1149_vm0, %v3309_v11, 0.0  ;;  %v1240_v37 = vmul.f32 %v1138_v19, %v1138_v19  ;;  %v1288_v54 = vsel %vm1149_vm0, %v1238_v41, 0.0 }
  0xd6   : > { %v1281_v31 = vadd.f32 %v1280_v48, %v1279_v62  ;;  %v1205_v22 = vsel %vm1149_vm0, %v3312_v8, 0.0  ;;  %v1241_v51 = vmul.f32 %v1139_v2, %v1139_v2  ;;  %v1290_v39 = vsel %vm1149_vm0, %v1239_v38, 0.0 }
  0xd7   : > { %v1198_v56 = vadd.f32 %v1197_v10, %v1196_v52  ;;  %v1207_v60 = vsel %vm1149_vm0, %v3315_v6, 0.0  ;;  %v1242_v21 = vmul.f32 %v1140_v9, %v1140_v9  ;;  %v1292_v11 = vsel %vm1149_vm0, %v1240_v37, 0.0 }
  0xd8   : > { %v1283_v35 = vadd.f32 %v1282_v29, %v1281_v31  ;;  %v1209_v19 = vsel %vm1149_vm0, %v3322_v59, 0.0  ;;  %v1243_v61 = vmul.f32 %v1141_v43, %v1141_v43  ;;  %v1294_v8 = vsel %vm1149_vm0, %v1241_v51, 0.0 }
  0xd9   : > { %v1200_v15 = vadd.f32 %v1199_v16, %v1198_v56  ;;  %v1211_v2 = vsel %vm1149_vm0, %v3328_v57, 0.0  ;;  %v1244_v6 = vmul.f32 %v1142_v14, %v1142_v14  ;;  %v1296_v36 = vsel %vm1149_vm0, %v1242_v21, 0.0 }
  0xda   : > { %v1285_v45 = vadd.f32 %v1284_v44, %v1283_v35  ;;  %v1298_v63 = vsel %vm1149_vm0, %v1243_v61, 0.0 }
  0xdb   : > { %v1202_v25 = vadd.f32 %v1201_v34, %v1200_v15  ;;  %v1300_v13 = vsel %vm1149_vm0, %v1244_v6, 0.0 }
  0xdc   : > { %v1287_v20 = vadd.f32 %v1286_v24, %v1285_v45 }
  0xdd   : > { %v1204_v17 = vadd.f32 %v1203_v46, %v1202_v25 }
  0xde   : > { %v1289_v28 = vadd.f32 %v1288_v54, %v1287_v20 }
  0xdf   : > { %v1206_v3 = vadd.f32 %v1205_v22, %v1204_v17 }
  0xe0   : > { %v1291_v49 = vadd.f32 %v1290_v39, %v1289_v28 }
  0xe1   : > { %v1208_v27 = vadd.f32 %v1207_v60, %v1206_v3 }
  0xe2   : > { %v1293_v42 = vadd.f32 %v1292_v11, %v1291_v49 }
  0xe3   : > { %v1210_v30 = vadd.f32 %v1209_v19, %v1208_v27 }
  0xe4   : > { %v1295_v32 = vadd.f32 %v1294_v8, %v1293_v42 }
  0xe5   : > { %v1212_v55 = vadd.f32 %v1211_v2, %v1210_v30 }
  0xe6   : > { %v1297_v9 = vadd.f32 %v1296_v36, %v1295_v32 }
  0xe7   : > { %v1213_v59 = vrot.slane %v1212_v55, 4 }
  0xe8   : > { %v1299_v18 = vadd.f32 %v1298_v63, %v1297_v9 }
  0xe9   : > { %v1214_v53 = vadd.f32 %v1213_v59, %v1212_v55 }
  0xea   : > { %v1301_v50 = vadd.f32 %v1300_v13, %v1299_v18 }
  0xeb   : > { %v1215_v0 = vrot.slane %v1214_v53, 2 }
  0xec   : > { %v1303_v57 = vadd.f32 %v3357_v33, %v1301_v50 }
  0xed   : > { %v1216_v43 = vadd.f32 %v1215_v0, %v1214_v53 }
  0xee   : > { %v1305_v7 = vadd.f32 %v3360_v23, %v1303_v57 }
  0xef   : > { %v1217_v1 = vrot.slane %v1216_v43, 1 }
  0xf0   : > { %v1307_v4 = vadd.f32 %v3363_v47, %v1305_v7 }
  0xf1   : > { %v1218_v40 = vadd.f32 %v1217_v1, %v1216_v43 }
  0xf2   : > { %v1309_v48 = vadd.f32 %v3366_v58, %v1307_v4 }
  0xf3   : > { %1321 = vst.msk [vmem:[%s230_s20] sm:$0x1] %vm1320_vm1, %v1218_v40 }
  0xf4   : > { %v1311_v14 = vadd.f32 %v3369_v5, %v1309_v48 }
  0xf6   : > { %v1313_v33 = vadd.f32 %v3372_v12, %v1311_v14 }
  0xf8   : > { %v1314_v10 = vrot.slane %v1313_v33, 4 }
  0xfa   : > { %v1315_v62 = vadd.f32 %v1314_v10, %v1313_v33 }
  0xfc   : > { %v1316_v52 = vrot.slane %v1315_v62, 2 }
  0xfe   : > { %v1317_v23 = vadd.f32 %v1316_v52, %v1315_v62 }
 0x100   : > { %v1318_v26 = vrot.slane %v1317_v23, 1 }
 0x102   : > { %v1319_v29 = vadd.f32 %v1318_v26, %v1317_v23 }
 0x104   : > { %1322 = vst.msk [vmem:[%s230_s20 + $0x1] sm:$0x1] %vm1320_vm1, %v1319_v29 }
 0x105 PF: > { %s13_s14 = sadd.s32 1, %s1688_s14   ;;  %s3886_s12 = smov %s1684_s13 }
 0x106   : > { %p10_p5 = scmp.ge.s32.totalorder %s13_s14, 4   ;;  %s3887_s13 = smov %s3889_s15 }
 0x108   :  { %12 = sbr.rel (!%p10_p5) target bundleno = 2 (0x2), region = 70 }

</bundles_post_ra>
